<compile_context>
chip_gen: v7x
topology: tpu7x:2x2x1
jax: 0.10.0
libtpu: 0.0.40
codegen_flags: <defaults>
</compile_context>

<pallas_src>
import functools

import jax
import jax.numpy as jnp
from jax.experimental import pallas as pl
from jax.experimental.pallas import tpu as pltpu

_C_PAD = 128                     # lane-dense conv output channels
_CONV_VMEM = 8 * 1024 * 1024     # conv blocks are tiny (<2 MiB even at 84x84)
_HEADS_VMEM = 32 * 1024 * 1024   # whole-K w1 double-buffered (~13 MiB at 84x84)


def _round_up(x, m):
    return (x + m - 1) // m * m


def _conv_geometry(input_shape):
    _, h, w = input_shape
    oh1, ow1 = (h - 8) // 4 + 1, (w - 8) // 4 + 1
    oh2, ow2 = (oh1 - 4) // 2 + 1, (ow1 - 4) // 2 + 1
    oh3, ow3 = oh2 - 2, ow2 - 2
    return (oh1, ow1), (oh2, ow2), (oh3, ow3)


# ---------------------------------------------------------------------------
# Pallas kernel 1: conv layer with in-kernel tap gather (stride pre-folded by
# a space-to-depth transform, so every tap is a static contiguous slice).
# One grid step = one batch element; bias + ReLU epilogue; lane-dense output.
# ---------------------------------------------------------------------------
def _conv_taps_kernel(x_ref, w_ref, b_ref, o_ref, *, kk, oh, ow, cin):
    # x_ref: (Hs, Ws, cin) bf16   (Hs >= oh + kk - 1, Ws >= ow + kk - 1)
    # w_ref: (kk*kk*cin, 128) bf16, rows grouped per (qh, qw) tap
    # b_ref: (1, 128) f32
    # o_ref: (oh, ow, 128) bf16
    bias = b_ref[...]
    for h in range(oh):                       # unrolled; small trip counts
        acc = jnp.zeros((ow, 128), jnp.float32)
        for qh in range(kk):
            for qw in range(kk):
                row = x_ref[h + qh, qw:qw + ow, :]                    # (ow, cin)
                t = qh * kk + qw
                wt = w_ref[t * cin:(t + 1) * cin, :]                  # (cin, 128)
                acc += jnp.dot(row, wt, preferred_element_type=jnp.float32)
        o_ref[h] = jnp.maximum(acc + bias, 0.0).astype(o_ref.dtype)


def conv_taps(x, w, b, *, kk, oh, ow):
    """x: (N, Hs, Ws, cin) bf16, w: (kk*kk*cin, 128) bf16, b: (1, 128) f32."""
    n, hs, ws, cs = x.shape
    cin = w.shape[0] // (kk * kk)
    assert cin == cs and w.shape[1] == _C_PAD
    assert hs >= oh + kk - 1 and ws >= ow + kk - 1
    return pl.pallas_call(
        functools.partial(_conv_taps_kernel, kk=kk, oh=oh, ow=ow, cin=cin),
        out_shape=jax.ShapeDtypeStruct((n, oh, ow, _C_PAD), jnp.bfloat16),
        grid=(n,),
        in_specs=[
            pl.BlockSpec((None, hs, ws, cs), lambda i: (i, 0, 0, 0)),
            pl.BlockSpec((kk * kk * cin, _C_PAD), lambda i: (0, 0)),
            pl.BlockSpec((1, _C_PAD), lambda i: (0, 0)),
        ],
        out_specs=pl.BlockSpec((None, oh, ow, _C_PAD), lambda i: (i, 0, 0, 0)),
        compiler_params=pltpu.CompilerParams(
            dimension_semantics=("parallel",),
            vmem_limit_bytes=_CONV_VMEM),
    )(x, w, b)


# ---------------------------------------------------------------------------
# Pallas kernel 2: fused policy/value heads (two GEMMs, hidden stays in VMEM).
# ---------------------------------------------------------------------------
def _heads_kernel(x_ref, w1_ref, b1_ref, w2_ref, b2_ref, o_ref):
    h = jnp.dot(x_ref[...], w1_ref[...], preferred_element_type=jnp.float32)
    h = jnp.maximum(h + b1_ref[...], 0.0)
    o = jnp.dot(h.astype(w2_ref.dtype), w2_ref[...],
                preferred_element_type=jnp.float32)
    o_ref[...] = o + b2_ref[...]


def fused_heads(flat, w1, b1, w2, b2, *, tm_max=128):
    """flat: (M, K) bf16; w1: (K, 1024) bf16; w2: (1024, 128) bf16."""
    M, K = flat.shape
    H = w1.shape[1]
    N = w2.shape[1]
    tm = min(tm_max, _round_up(M, 16))   # bf16 packs 16 rows per packed vreg
    Mp = _round_up(M, tm)
    if Mp != M:
        flat = jnp.pad(flat, ((0, Mp - M), (0, 0)))

    out = pl.pallas_call(
        _heads_kernel,
        out_shape=jax.ShapeDtypeStruct((Mp, N), jnp.float32),
        grid=(Mp // tm,),
        in_specs=[
            pl.BlockSpec((tm, K), lambda i: (i, 0)),
            pl.BlockSpec((K, H), lambda i: (0, 0)),
            pl.BlockSpec((1, H), lambda i: (0, 0)),
            pl.BlockSpec((H, N), lambda i: (0, 0)),
            pl.BlockSpec((1, N), lambda i: (0, 0)),
        ],
        out_specs=pl.BlockSpec((tm, N), lambda i: (i, 0)),
        compiler_params=pltpu.CompilerParams(
            dimension_semantics=("parallel",),
            vmem_limit_bytes=_HEADS_VMEM),
    )(flat.astype(jnp.bfloat16), w1, b1, w2, b2)
    return out[:M] if Mp != M else out


# ---------------------------------------------------------------------------
# Parameters: PyTorch layout -> kernel-ready layout (one-time prep)
# ---------------------------------------------------------------------------
def init_params(key, input_shape, n_actions):
    """PyTorch-layout parameters (same init style as nn.Linear/nn.Conv2d)."""
    c = input_shape[0]
    (_, _), (_, _), (oh3, ow3) = _conv_geometry(input_shape)
    cos = 64 * oh3 * ow3
    ks = jax.random.split(key, 14)

    def u(k, shape, fan_in):
        bound = 1.0 / jnp.sqrt(jnp.float32(fan_in))
        return jax.random.uniform(k, shape, jnp.float32, -bound, bound)

    return {
        "c1_w": u(ks[0], (32, c, 8, 8), c * 8 * 8),
        "c1_b": u(ks[1], (32,), c * 8 * 8),
        "c2_w": u(ks[2], (64, 32, 4, 4), 32 * 4 * 4),
        "c2_b": u(ks[3], (64,), 32 * 4 * 4),
        "c3_w": u(ks[4], (64, 64, 3, 3), 64 * 3 * 3),
        "c3_b": u(ks[5], (64,), 64 * 3 * 3),
        "p1_w": u(ks[6], (512, cos), cos),
        "p1_b": u(ks[7], (512,), cos),
        "p2_w": u(ks[8], (n_actions, 512), 512),
        "p2_b": u(ks[9], (n_actions,), 512),
        "v1_w": u(ks[10], (512, cos), cos),
        "v1_b": u(ks[11], (512,), cos),
        "v2_w": u(ks[12], (1, 512), 512),
        "v2_b": u(ks[13], (1,), 512),
    }


def prepare_params(params, input_shape, n_actions):
    """One-time weight reshape/transpose/pad/cast (no per-forward transposes)."""
    c_in = input_shape[0]
    (_, _), (_, _), (oh3, ow3) = _conv_geometry(input_shape)
    assert n_actions + 1 <= _C_PAD

    def pad_out(w2d, bias):
        o = w2d.shape[1]
        w2d = jnp.pad(w2d, ((0, 0), (0, _C_PAD - o))).astype(jnp.bfloat16)
        bias = jnp.pad(bias, (0, _C_PAD - o)).reshape(1, _C_PAD).astype(jnp.float32)
        return w2d, bias

    # conv1: fold /256 and the stride-4 space-to-depth into the weight.
    # Rows per tap (qh,qw) ordered (rh, rw, c) to match the wrapper's gather.
    w1 = params["c1_w"].astype(jnp.float32) * (1.0 / 256.0)        # (32, C, 8, 8)
    w1 = w1.reshape(32, c_in, 2, 4, 2, 4)                           # (o,c,qh,rh,qw,rw)
    w1 = w1.transpose(2, 4, 3, 5, 1, 0).reshape(2 * 2 * 16 * c_in, 32)
    c1_w, c1_b = pad_out(w1, params["c1_b"])

    # conv2: stride-2 space-to-depth; input channels zero-padded to 128 rows.
    w2 = params["c2_w"].transpose(2, 3, 1, 0)                       # (4,4,32,64)
    w2 = jnp.pad(w2, ((0, 0), (0, 0), (0, _C_PAD - 32), (0, 0)))    # (4,4,128,64)
    w2 = w2.reshape(2, 2, 2, 2, _C_PAD, 64).transpose(0, 2, 1, 3, 4, 5)
    w2 = w2.reshape(2 * 2 * 2 * 2 * _C_PAD, 64)                     # (2048, 64)
    c2_w, c2_b = pad_out(w2, params["c2_b"])

    # conv3: stride 1; input channels zero-padded to 128 rows.
    w3 = params["c3_w"].transpose(2, 3, 1, 0)                       # (3,3,64,64)
    w3 = jnp.pad(w3, ((0, 0), (0, 0), (0, _C_PAD - 64), (0, 0)))    # (3,3,128,64)
    w3 = w3.reshape(3 * 3 * _C_PAD, 64)
    c3_w, c3_b = pad_out(w3, params["c3_b"])

    # Heads layer 1: [policy | value], rows permuted from PyTorch's NCHW-flat
    # order to our NHWC-flat order; NO zero channel-pad rows (perf feedback).
    cos = 64 * oh3 * ow3
    w1h = jnp.concatenate([params["p1_w"].T, params["v1_w"].T], axis=1)  # (cos,1024)
    w1h = w1h.reshape(64, oh3, ow3, 1024).transpose(1, 2, 0, 3).reshape(cos, 1024)
    b1h = jnp.concatenate([params["p1_b"], params["v1_b"]]).reshape(1, 1024)

    # Heads layer 2: block-diagonal (1024, 128); cols = [policy | value | 0s].
    na = n_actions
    w2h = jnp.zeros((1024, _C_PAD), jnp.float32)
    w2h = w2h.at[:512, :na].set(params["p2_w"].T)
    w2h = w2h.at[512:, na:na + 1].set(params["v2_w"].T)
    b2h = jnp.zeros((_C_PAD,), jnp.float32)
    b2h = b2h.at[:na].set(params["p2_b"])
    b2h = b2h.at[na].set(params["v2_b"][0])

    return {
        "c1_w": c1_w, "c1_b": c1_b,
        "c2_w": c2_w, "c2_b": c2_b,
        "c3_w": c3_w, "c3_b": c3_b,
        "h1_w": w1h.astype(jnp.bfloat16), "h1_b": b1h.astype(jnp.float32),
        "h2_w": w2h.astype(jnp.bfloat16),
        "h2_b": b2h.reshape(1, _C_PAD).astype(jnp.float32),
    }


# ---------------------------------------------------------------------------
# Forward
# ---------------------------------------------------------------------------
def atari_a2c_forward(x, prep, n_actions):
    n, c_in, h, w = x.shape
    (oh1, ow1), (oh2, ow2), (oh3, ow3) = _conv_geometry((c_in, h, w))

    # NCHW uint8 -> stride-4 space-to-depth NHWC bf16 (one transpose+cast;
    # the /256 is already folded into conv1's weights).
    xb = x.astype(jnp.bfloat16)
    ph, pw = (-h) % 4, (-w) % 4
    if ph or pw:
        xb = jnp.pad(xb, ((0, 0), (0, 0), (0, ph), (0, pw)))
    hq, wq = (h + ph) // 4, (w + pw) // 4
    xs = xb.reshape(n, c_in, hq, 4, wq, 4).transpose(0, 2, 4, 3, 5, 1)
    xs = xs.reshape(n, hq, wq, 16 * c_in)

    y1 = conv_taps(xs, prep["c1_w"], prep["c1_b"], kk=2, oh=oh1, ow=ow1)

    # stride-2 space-to-depth for conv2 (channels stay lane-dense: 4*128).
    ph, pw = oh1 % 2, ow1 % 2
    if ph or pw:
        y1 = jnp.pad(y1, ((0, 0), (0, ph), (0, pw), (0, 0)))
    r2, c2 = (oh1 + ph) // 2, (ow1 + pw) // 2
    y1s = y1.reshape(n, r2, 2, c2, 2, _C_PAD).transpose(0, 1, 3, 2, 4, 5)
    y1s = y1s.reshape(n, r2, c2, 4 * _C_PAD)

    y2 = conv_taps(y1s, prep["c2_w"], prep["c2_b"], kk=2, oh=oh2, ow=ow2)
    y3 = conv_taps(y2, prep["c3_w"], prep["c3_b"], kk=3, oh=oh3, ow=ow3)

    # Drop the channel pad before the heads (halves the heads-GEMM K / w1 VMEM).
    flat = y3[..., :64].reshape(n, oh3 * ow3 * 64)
    heads = fused_heads(flat, prep["h1_w"], prep["h1_b"],
                        prep["h2_w"], prep["h2_b"])
    policy = heads[:, :n_actions]
    value = heads[:, n_actions:n_actions + 1]
    return policy, value


if __name__ == "__main__":
    key = jax.random.PRNGKey(0)
    kx, kp = jax.random.split(key)

    # Smallest spatial size for which the 3-conv Atari stack is valid: 36x36.
    batch, n_actions = 2, 6
    input_shape = (4, 36, 36)

    x = jax.random.randint(kx, (batch,) + input_shape, 0, 256).astype(jnp.uint8)
    params = init_params(kp, input_shape, n_actions)
    prep = prepare_params(params, input_shape, n_actions)

    fwd = jax.jit(lambda xx, pp: atari_a2c_forward(xx, pp, n_actions))
    policy, value = fwd(x, prep)
    jax.block_until_ready((policy, value))

    assert policy.shape == (batch, n_actions) and policy.dtype == jnp.float32
    assert value.shape == (batch, 1) and value.dtype == jnp.float32
    assert bool(jnp.isfinite(policy).all()) and bool(jnp.isfinite(value).all())
    print("KERNEL_OK")
</pallas_src>

<mosaic_0001>
module attributes {stable_mosaic.version = 11 : i64} {
  func.func @_conv_taps_kernel(%arg0: i32, %arg1: memref<1x9x9x64xbf16, #tpu.memory_space<vmem>>, %arg2: memref<256x128xbf16, #tpu.memory_space<vmem>>, %arg3: memref<1x128xf32, #tpu.memory_space<vmem>>, %arg4: memref<1x8x8x128xbf16, #tpu.memory_space<vmem>>) attributes {dimension_semantics = [#tpu.dimension_semantics<parallel>], iteration_bounds = array<i64: 2>, scalar_prefetch = 0 : i64, scratch_operands = 0 : i64, tpu.core_type = #tpu.core_type<tc>, window_params = [{transform_indices = @transform_0, window_bounds = array<i64: 1, 9, 9, 64>}, {pipeline_mode = #tpu.pipeline_mode<synchronous>, transform_indices = @transform_1, window_bounds = array<i64: 256, 128>}, {pipeline_mode = #tpu.pipeline_mode<synchronous>, transform_indices = @transform_2, window_bounds = array<i64: 1, 128>}, {transform_indices = @transform_3, window_bounds = array<i64: 1, 8, 8, 128>}]} {
    %c0 = arith.constant 0 : index
    %c0_0 = arith.constant 0 : index
    %0 = vector.load %arg3[%c0, %c0_0] : memref<1x128xf32, #tpu.memory_space<vmem>>, vector<1x128xf32>
    %cst = arith.constant 0.000000e+00 : f32
    %1 = vector.broadcast %cst : f32 to vector<8x128xf32>
    %c0_1 = arith.constant 0 : index
    %c0_2 = arith.constant 0 : index
    %c0_3 = arith.constant 0 : index
    %c0_4 = arith.constant 0 : index
    %2 = vector.load %arg1[%c0_1, %c0_2, %c0_3, %c0_4] : memref<1x9x9x64xbf16, #tpu.memory_space<vmem>>, vector<1x1x8x64xbf16>
    %3 = vector.shape_cast %2 : vector<1x1x8x64xbf16> to vector<8x64xbf16>
    %c0_5 = arith.constant 0 : index
    %c0_6 = arith.constant 0 : index
    %4 = vector.load %arg2[%c0_5, %c0_6] : memref<256x128xbf16, #tpu.memory_space<vmem>>, vector<64x128xbf16>
    %cst_7 = arith.constant dense<0.000000e+00> : vector<8x128xf32>
    %5 = tpu.matmul %3, %4, %cst_7 {dimension_numbers = #tpu.dot_dimension_numbers<[1], [0], [0], [1], [0, 0, 1, 1], [], []>} : vector<8x64xbf16>, vector<64x128xbf16>, vector<8x128xf32> -> vector<8x128xf32>
    %6 = arith.addf %1, %5 : vector<8x128xf32>
    %c0_8 = arith.constant 0 : index
    %c0_9 = arith.constant 0 : index
    %c1 = arith.constant 1 : index
    %c0_10 = arith.constant 0 : index
    %7 = vector.load %arg1[%c0_8, %c0_9, %c1, %c0_10] : memref<1x9x9x64xbf16, #tpu.memory_space<vmem>>, vector<1x1x8x64xbf16>
    %8 = vector.shape_cast %7 : vector<1x1x8x64xbf16> to vector<8x64xbf16>
    %c64 = arith.constant 64 : index
    %c0_11 = arith.constant 0 : index
    %9 = vector.load %arg2[%c64, %c0_11] : memref<256x128xbf16, #tpu.memory_space<vmem>>, vector<64x128xbf16>
    %cst_12 = arith.constant dense<0.000000e+00> : vector<8x128xf32>
    %10 = tpu.matmul %8, %9, %cst_12 {dimension_numbers = #tpu.dot_dimension_numbers<[1], [0], [0], [1], [0, 0, 1, 1], [], []>} : vector<8x64xbf16>, vector<64x128xbf16>, vector<8x128xf32> -> vector<8x128xf32>
    %11 = arith.addf %6, %10 : vector<8x128xf32>
    %c0_13 = arith.constant 0 : index
    %c1_14 = arith.constant 1 : index
    %c0_15 = arith.constant 0 : index
    %c0_16 = arith.constant 0 : index
    %12 = vector.load %arg1[%c0_13, %c1_14, %c0_15, %c0_16] : memref<1x9x9x64xbf16, #tpu.memory_space<vmem>>, vector<1x1x8x64xbf16>
    %13 = vector.shape_cast %12 : vector<1x1x8x64xbf16> to vector<8x64xbf16>
    %c128 = arith.constant 128 : index
    %c0_17 = arith.constant 0 : index
    %14 = vector.load %arg2[%c128, %c0_17] : memref<256x128xbf16, #tpu.memory_space<vmem>>, vector<64x128xbf16>
    %cst_18 = arith.constant dense<0.000000e+00> : vector<8x128xf32>
    %15 = tpu.matmul %13, %14, %cst_18 {dimension_numbers = #tpu.dot_dimension_numbers<[1], [0], [0], [1], [0, 0, 1, 1], [], []>} : vector<8x64xbf16>, vector<64x128xbf16>, vector<8x128xf32> -> vector<8x128xf32>
    %16 = arith.addf %11, %15 : vector<8x128xf32>
    %c0_19 = arith.constant 0 : index
    %c1_20 = arith.constant 1 : index
    %c1_21 = arith.constant 1 : index
    %c0_22 = arith.constant 0 : index
    %17 = vector.load %arg1[%c0_19, %c1_20, %c1_21, %c0_22] : memref<1x9x9x64xbf16, #tpu.memory_space<vmem>>, vector<1x1x8x64xbf16>
    %18 = vector.shape_cast %17 : vector<1x1x8x64xbf16> to vector<8x64xbf16>
    %c192 = arith.constant 192 : index
    %c0_23 = arith.constant 0 : index
    %19 = vector.load %arg2[%c192, %c0_23] : memref<256x128xbf16, #tpu.memory_space<vmem>>, vector<64x128xbf16>
    %cst_24 = arith.constant dense<0.000000e+00> : vector<8x128xf32>
    %20 = tpu.matmul %18, %19, %cst_24 {dimension_numbers = #tpu.dot_dimension_numbers<[1], [0], [0], [1], [0, 0, 1, 1], [], []>} : vector<8x64xbf16>, vector<64x128xbf16>, vector<8x128xf32> -> vector<8x128xf32>
    %21 = arith.addf %16, %20 : vector<8x128xf32>
    %22 = vector.broadcast %0 : vector<1x128xf32> to vector<8x128xf32>
    %23 = arith.addf %21, %22 : vector<8x128xf32>
    %cst_25 = arith.constant 0.000000e+00 : f32
    %24 = vector.broadcast %cst_25 : f32 to vector<8x128xf32>
    %25 = arith.maximumf %23, %24 : vector<8x128xf32>
    %26 = arith.truncf %25 : vector<8x128xf32> to vector<8x128xbf16>
    %c0_26 = arith.constant 0 : index
    %c0_27 = arith.constant 0 : index
    %c0_28 = arith.constant 0 : index
    %c0_29 = arith.constant 0 : index
    %27 = vector.load %arg4[%c0_26, %c0_27, %c0_28, %c0_29] : memref<1x8x8x128xbf16, #tpu.memory_space<vmem>>, vector<1x1x8x128xbf16>
    %28 = vector.shape_cast %27 : vector<1x1x8x128xbf16> to vector<8x128xbf16>
    %29 = vector.shape_cast %26 : vector<8x128xbf16> to vector<1x1x8x128xbf16>
    tpu.vector_store %arg4[%c0_26, %c0_27, %c0_28, %c0_29], %29 {strides = array<i32>} : memref<1x8x8x128xbf16, #tpu.memory_space<vmem>>, vector<1x1x8x128xbf16>,
    %cst_30 = arith.constant 0.000000e+00 : f32
    %30 = vector.broadcast %cst_30 : f32 to vector<8x128xf32>
    %c0_31 = arith.constant 0 : index
    %c1_32 = arith.constant 1 : index
    %c0_33 = arith.constant 0 : index
    %c0_34 = arith.constant 0 : index
    %31 = vector.load %arg1[%c0_31, %c1_32, %c0_33, %c0_34] : memref<1x9x9x64xbf16, #tpu.memory_space<vmem>>, vector<1x1x8x64xbf16>
    %32 = vector.shape_cast %31 : vector<1x1x8x64xbf16> to vector<8x64xbf16>
    %c0_35 = arith.constant 0 : index
    %c0_36 = arith.constant 0 : index
    %33 = vector.load %arg2[%c0_35, %c0_36] : memref<256x128xbf16, #tpu.memory_space<vmem>>, vector<64x128xbf16>
    %cst_37 = arith.constant dense<0.000000e+00> : vector<8x128xf32>
    %34 = tpu.matmul %32, %33, %cst_37 {dimension_numbers = #tpu.dot_dimension_numbers<[1], [0], [0], [1], [0, 0, 1, 1], [], []>} : vector<8x64xbf16>, vector<64x128xbf16>, vector<8x128xf32> -> vector<8x128xf32>
    %35 = arith.addf %30, %34 : vector<8x128xf32>
    %c0_38 = arith.constant 0 : index
    %c1_39 = arith.constant 1 : index
    %c1_40 = arith.constant 1 : index
    %c0_41 = arith.constant 0 : index
    %36 = vector.load %arg1[%c0_38, %c1_39, %c1_40, %c0_41] : memref<1x9x9x64xbf16, #tpu.memory_space<vmem>>, vector<1x1x8x64xbf16>
    %37 = vector.shape_cast %36 : vector<1x1x8x64xbf16> to vector<8x64xbf16>
    %c64_42 = arith.constant 64 : index
    %c0_43 = arith.constant 0 : index
    %38 = vector.load %arg2[%c64_42, %c0_43] : memref<256x128xbf16, #tpu.memory_space<vmem>>, vector<64x128xbf16>
    %cst_44 = arith.constant dense<0.000000e+00> : vector<8x128xf32>
    %39 = tpu.matmul %37, %38, %cst_44 {dimension_numbers = #tpu.dot_dimension_numbers<[1], [0], [0], [1], [0, 0, 1, 1], [], []>} : vector<8x64xbf16>, vector<64x128xbf16>, vector<8x128xf32> -> vector<8x128xf32>
    %40 = arith.addf %35, %39 : vector<8x128xf32>
    %c0_45 = arith.constant 0 : index
    %c2 = arith.constant 2 : index
    %c0_46 = arith.constant 0 : index
    %c0_47 = arith.constant 0 : index
    %41 = vector.load %arg1[%c0_45, %c2, %c0_46, %c0_47] : memref<1x9x9x64xbf16, #tpu.memory_space<vmem>>, vector<1x1x8x64xbf16>
    %42 = vector.shape_cast %41 : vector<1x1x8x64xbf16> to vector<8x64xbf16>
    %c128_48 = arith.constant 128 : index
    %c0_49 = arith.constant 0 : index
    %43 = vector.load %arg2[%c128_48, %c0_49] : memref<256x128xbf16, #tpu.memory_space<vmem>>, vector<64x128xbf16>
    %cst_50 = arith.constant dense<0.000000e+00> : vector<8x128xf32>
    %44 = tpu.matmul %42, %43, %cst_50 {dimension_numbers = #tpu.dot_dimension_numbers<[1], [0], [0], [1], [0, 0, 1, 1], [], []>} : vector<8x64xbf16>, vector<64x128xbf16>, vector<8x128xf32> -> vector<8x128xf32>
    %45 = arith.addf %40, %44 : vector<8x128xf32>
    %c0_51 = arith.constant 0 : index
    %c2_52 = arith.constant 2 : index
    %c1_53 = arith.constant 1 : index
    %c0_54 = arith.constant 0 : index
    %46 = vector.load %arg1[%c0_51, %c2_52, %c1_53, %c0_54] : memref<1x9x9x64xbf16, #tpu.memory_space<vmem>>, vector<1x1x8x64xbf16>
    %47 = vector.shape_cast %46 : vector<1x1x8x64xbf16> to vector<8x64xbf16>
    %c192_55 = arith.constant 192 : index
    %c0_56 = arith.constant 0 : index
    %48 = vector.load %arg2[%c192_55, %c0_56] : memref<256x128xbf16, #tpu.memory_space<vmem>>, vector<64x128xbf16>
    %cst_57 = arith.constant dense<0.000000e+00> : vector<8x128xf32>
    %49 = tpu.matmul %47, %48, %cst_57 {dimension_numbers = #tpu.dot_dimension_numbers<[1], [0], [0], [1], [0, 0, 1, 1], [], []>} : vector<8x64xbf16>, vector<64x128xbf16>, vector<8x128xf32> -> vector<8x128xf32>
    %50 = arith.addf %45, %49 : vector<8x128xf32>
    %51 = vector.broadcast %0 : vector<1x128xf32> to vector<8x128xf32>
    %52 = arith.addf %50, %51 : vector<8x128xf32>
    %cst_58 = arith.constant 0.000000e+00 : f32
    %53 = vector.broadcast %cst_58 : f32 to vector<8x128xf32>
    %54 = arith.maximumf %52, %53 : vector<8x128xf32>
    %55 = arith.truncf %54 : vector<8x128xf32> to vector<8x128xbf16>
    %c0_59 = arith.constant 0 : index
    %c1_60 = arith.constant 1 : index
    %c0_61 = arith.constant 0 : index
    %c0_62 = arith.constant 0 : index
    %56 = vector.load %arg4[%c0_59, %c1_60, %c0_61, %c0_62] : memref<1x8x8x128xbf16, #tpu.memory_space<vmem>>, vector<1x1x8x128xbf16>
    %57 = vector.shape_cast %56 : vector<1x1x8x128xbf16> to vector<8x128xbf16>
    %58 = vector.shape_cast %55 : vector<8x128xbf16> to vector<1x1x8x128xbf16>
    tpu.vector_store %arg4[%c0_59, %c1_60, %c0_61, %c0_62], %58 {strides = array<i32>} : memref<1x8x8x128xbf16, #tpu.memory_space<vmem>>, vector<1x1x8x128xbf16>,
    %cst_63 = arith.constant 0.000000e+00 : f32
    %59 = vector.broadcast %cst_63 : f32 to vector<8x128xf32>
    %c0_64 = arith.constant 0 : index
    %c2_65 = arith.constant 2 : index
    %c0_66 = arith.constant 0 : index
    %c0_67 = arith.constant 0 : index
    %60 = vector.load %arg1[%c0_64, %c2_65, %c0_66, %c0_67] : memref<1x9x9x64xbf16, #tpu.memory_space<vmem>>, vector<1x1x8x64xbf16>
    %61 = vector.shape_cast %60 : vector<1x1x8x64xbf16> to vector<8x64xbf16>
    %c0_68 = arith.constant 0 : index
    %c0_69 = arith.constant 0 : index
    %62 = vector.load %arg2[%c0_68, %c0_69] : memref<256x128xbf16, #tpu.memory_space<vmem>>, vector<64x128xbf16>
    %cst_70 = arith.constant dense<0.000000e+00> : vector<8x128xf32>
    %63 = tpu.matmul %61, %62, %cst_70 {dimension_numbers = #tpu.dot_dimension_numbers<[1], [0], [0], [1], [0, 0, 1, 1], [], []>} : vector<8x64xbf16>, vector<64x128xbf16>, vector<8x128xf32> -> vector<8x128xf32>
    %64 = arith.addf %59, %63 : vector<8x128xf32>
    %c0_71 = arith.constant 0 : index
    %c2_72 = arith.constant 2 : index
    %c1_73 = arith.constant 1 : index
    %c0_74 = arith.constant 0 : index
    %65 = vector.load %arg1[%c0_71, %c2_72, %c1_73, %c0_74] : memref<1x9x9x64xbf16, #tpu.memory_space<vmem>>, vector<1x1x8x64xbf16>
    %66 = vector.shape_cast %65 : vector<1x1x8x64xbf16> to vector<8x64xbf16>
    %c64_75 = arith.constant 64 : index
    %c0_76 = arith.constant 0 : index
    %67 = vector.load %arg2[%c64_75, %c0_76] : memref<256x128xbf16, #tpu.memory_space<vmem>>, vector<64x128xbf16>
    %cst_77 = arith.constant dense<0.000000e+00> : vector<8x128xf32>
    %68 = tpu.matmul %66, %67, %cst_77 {dimension_numbers = #tpu.dot_dimension_numbers<[1], [0], [0], [1], [0, 0, 1, 1], [], []>} : vector<8x64xbf16>, vector<64x128xbf16>, vector<8x128xf32> -> vector<8x128xf32>
    %69 = arith.addf %64, %68 : vector<8x128xf32>
    %c0_78 = arith.constant 0 : index
    %c3 = arith.constant 3 : index
    %c0_79 = arith.constant 0 : index
    %c0_80 = arith.constant 0 : index
    %70 = vector.load %arg1[%c0_78, %c3, %c0_79, %c0_80] : memref<1x9x9x64xbf16, #tpu.memory_space<vmem>>, vector<1x1x8x64xbf16>
    %71 = vector.shape_cast %70 : vector<1x1x8x64xbf16> to vector<8x64xbf16>
    %c128_81 = arith.constant 128 : index
    %c0_82 = arith.constant 0 : index
    %72 = vector.load %arg2[%c128_81, %c0_82] : memref<256x128xbf16, #tpu.memory_space<vmem>>, vector<64x128xbf16>
    %cst_83 = arith.constant dense<0.000000e+00> : vector<8x128xf32>
    %73 = tpu.matmul %71, %72, %cst_83 {dimension_numbers = #tpu.dot_dimension_numbers<[1], [0], [0], [1], [0, 0, 1, 1], [], []>} : vector<8x64xbf16>, vector<64x128xbf16>, vector<8x128xf32> -> vector<8x128xf32>
    %74 = arith.addf %69, %73 : vector<8x128xf32>
    %c0_84 = arith.constant 0 : index
    %c3_85 = arith.constant 3 : index
    %c1_86 = arith.constant 1 : index
    %c0_87 = arith.constant 0 : index
    %75 = vector.load %arg1[%c0_84, %c3_85, %c1_86, %c0_87] : memref<1x9x9x64xbf16, #tpu.memory_space<vmem>>, vector<1x1x8x64xbf16>
    %76 = vector.shape_cast %75 : vector<1x1x8x64xbf16> to vector<8x64xbf16>
    %c192_88 = arith.constant 192 : index
    %c0_89 = arith.constant 0 : index
    %77 = vector.load %arg2[%c192_88, %c0_89] : memref<256x128xbf16, #tpu.memory_space<vmem>>, vector<64x128xbf16>
    %cst_90 = arith.constant dense<0.000000e+00> : vector<8x128xf32>
    %78 = tpu.matmul %76, %77, %cst_90 {dimension_numbers = #tpu.dot_dimension_numbers<[1], [0], [0], [1], [0, 0, 1, 1], [], []>} : vector<8x64xbf16>, vector<64x128xbf16>, vector<8x128xf32> -> vector<8x128xf32>
    %79 = arith.addf %74, %78 : vector<8x128xf32>
    %80 = vector.broadcast %0 : vector<1x128xf32> to vector<8x128xf32>
    %81 = arith.addf %79, %80 : vector<8x128xf32>
    %cst_91 = arith.constant 0.000000e+00 : f32
    %82 = vector.broadcast %cst_91 : f32 to vector<8x128xf32>
    %83 = arith.maximumf %81, %82 : vector<8x128xf32>
    %84 = arith.truncf %83 : vector<8x128xf32> to vector<8x128xbf16>
    %c0_92 = arith.constant 0 : index
    %c2_93 = arith.constant 2 : index
    %c0_94 = arith.constant 0 : index
    %c0_95 = arith.constant 0 : index
    %85 = vector.load %arg4[%c0_92, %c2_93, %c0_94, %c0_95] : memref<1x8x8x128xbf16, #tpu.memory_space<vmem>>, vector<1x1x8x128xbf16>
    %86 = vector.shape_cast %85 : vector<1x1x8x128xbf16> to vector<8x128xbf16>
    %87 = vector.shape_cast %84 : vector<8x128xbf16> to vector<1x1x8x128xbf16>
    tpu.vector_store %arg4[%c0_92, %c2_93, %c0_94, %c0_95], %87 {strides = array<i32>} : memref<1x8x8x128xbf16, #tpu.memory_space<vmem>>, vector<1x1x8x128xbf16>,
    %cst_96 = arith.constant 0.000000e+00 : f32
    %88 = vector.broadcast %cst_96 : f32 to vector<8x128xf32>
    %c0_97 = arith.constant 0 : index
    %c3_98 = arith.constant 3 : index
    %c0_99 = arith.constant 0 : index
    %c0_100 = arith.constant 0 : index
    %89 = vector.load %arg1[%c0_97, %c3_98, %c0_99, %c0_100] : memref<1x9x9x64xbf16, #tpu.memory_space<vmem>>, vector<1x1x8x64xbf16>
    %90 = vector.shape_cast %89 : vector<1x1x8x64xbf16> to vector<8x64xbf16>
    %c0_101 = arith.constant 0 : index
    %c0_102 = arith.constant 0 : index
    %91 = vector.load %arg2[%c0_101, %c0_102] : memref<256x128xbf16, #tpu.memory_space<vmem>>, vector<64x128xbf16>
    %cst_103 = arith.constant dense<0.000000e+00> : vector<8x128xf32>
    %92 = tpu.matmul %90, %91, %cst_103 {dimension_numbers = #tpu.dot_dimension_numbers<[1], [0], [0], [1], [0, 0, 1, 1], [], []>} : vector<8x64xbf16>, vector<64x128xbf16>, vector<8x128xf32> -> vector<8x128xf32>
    %93 = arith.addf %88, %92 : vector<8x128xf32>
    %c0_104 = arith.constant 0 : index
    %c3_105 = arith.constant 3 : index
    %c1_106 = arith.constant 1 : index
    %c0_107 = arith.constant 0 : index
    %94 = vector.load %arg1[%c0_104, %c3_105, %c1_106, %c0_107] : memref<1x9x9x64xbf16, #tpu.memory_space<vmem>>, vector<1x1x8x64xbf16>
    %95 = vector.shape_cast %94 : vector<1x1x8x64xbf16> to vector<8x64xbf16>
    %c64_108 = arith.constant 64 : index
    %c0_109 = arith.constant 0 : index
    %96 = vector.load %arg2[%c64_108, %c0_109] : memref<256x128xbf16, #tpu.memory_space<vmem>>, vector<64x128xbf16>
    %cst_110 = arith.constant dense<0.000000e+00> : vector<8x128xf32>
    %97 = tpu.matmul %95, %96, %cst_110 {dimension_numbers = #tpu.dot_dimension_numbers<[1], [0], [0], [1], [0, 0, 1, 1], [], []>} : vector<8x64xbf16>, vector<64x128xbf16>, vector<8x128xf32> -> vector<8x128xf32>
    %98 = arith.addf %93, %97 : vector<8x128xf32>
    %c0_111 = arith.constant 0 : index
    %c4 = arith.constant 4 : index
    %c0_112 = arith.constant 0 : index
    %c0_113 = arith.constant 0 : index
    %99 = vector.load %arg1[%c0_111, %c4, %c0_112, %c0_113] : memref<1x9x9x64xbf16, #tpu.memory_space<vmem>>, vector<1x1x8x64xbf16>
    %100 = vector.shape_cast %99 : vector<1x1x8x64xbf16> to vector<8x64xbf16>
    %c128_114 = arith.constant 128 : index
    %c0_115 = arith.constant 0 : index
    %101 = vector.load %arg2[%c128_114, %c0_115] : memref<256x128xbf16, #tpu.memory_space<vmem>>, vector<64x128xbf16>
    %cst_116 = arith.constant dense<0.000000e+00> : vector<8x128xf32>
    %102 = tpu.matmul %100, %101, %cst_116 {dimension_numbers = #tpu.dot_dimension_numbers<[1], [0], [0], [1], [0, 0, 1, 1], [], []>} : vector<8x64xbf16>, vector<64x128xbf16>, vector<8x128xf32> -> vector<8x128xf32>
    %103 = arith.addf %98, %102 : vector<8x128xf32>
    %c0_117 = arith.constant 0 : index
    %c4_118 = arith.constant 4 : index
    %c1_119 = arith.constant 1 : index
    %c0_120 = arith.constant 0 : index
    %104 = vector.load %arg1[%c0_117, %c4_118, %c1_119, %c0_120] : memref<1x9x9x64xbf16, #tpu.memory_space<vmem>>, vector<1x1x8x64xbf16>
    %105 = vector.shape_cast %104 : vector<1x1x8x64xbf16> to vector<8x64xbf16>
    %c192_121 = arith.constant 192 : index
    %c0_122 = arith.constant 0 : index
    %106 = vector.load %arg2[%c192_121, %c0_122] : memref<256x128xbf16, #tpu.memory_space<vmem>>, vector<64x128xbf16>
    %cst_123 = arith.constant dense<0.000000e+00> : vector<8x128xf32>
    %107 = tpu.matmul %105, %106, %cst_123 {dimension_numbers = #tpu.dot_dimension_numbers<[1], [0], [0], [1], [0, 0, 1, 1], [], []>} : vector<8x64xbf16>, vector<64x128xbf16>, vector<8x128xf32> -> vector<8x128xf32>
    %108 = arith.addf %103, %107 : vector<8x128xf32>
    %109 = vector.broadcast %0 : vector<1x128xf32> to vector<8x128xf32>
    %110 = arith.addf %108, %109 : vector<8x128xf32>
    %cst_124 = arith.constant 0.000000e+00 : f32
    %111 = vector.broadcast %cst_124 : f32 to vector<8x128xf32>
    %112 = arith.maximumf %110, %111 : vector<8x128xf32>
    %113 = arith.truncf %112 : vector<8x128xf32> to vector<8x128xbf16>
    %c0_125 = arith.constant 0 : index
    %c3_126 = arith.constant 3 : index
    %c0_127 = arith.constant 0 : index
    %c0_128 = arith.constant 0 : index
    %114 = vector.load %arg4[%c0_125, %c3_126, %c0_127, %c0_128] : memref<1x8x8x128xbf16, #tpu.memory_space<vmem>>, vector<1x1x8x128xbf16>
    %115 = vector.shape_cast %114 : vector<1x1x8x128xbf16> to vector<8x128xbf16>
    %116 = vector.shape_cast %113 : vector<8x128xbf16> to vector<1x1x8x128xbf16>
    tpu.vector_store %arg4[%c0_125, %c3_126, %c0_127, %c0_128], %116 {strides = array<i32>} : memref<1x8x8x128xbf16, #tpu.memory_space<vmem>>, vector<1x1x8x128xbf16>,
    %cst_129 = arith.constant 0.000000e+00 : f32
    %117 = vector.broadcast %cst_129 : f32 to vector<8x128xf32>
    %c0_130 = arith.constant 0 : index
    %c4_131 = arith.constant 4 : index
    %c0_132 = arith.constant 0 : index
    %c0_133 = arith.constant 0 : index
    %118 = vector.load %arg1[%c0_130, %c4_131, %c0_132, %c0_133] : memref<1x9x9x64xbf16, #tpu.memory_space<vmem>>, vector<1x1x8x64xbf16>
    %119 = vector.shape_cast %118 : vector<1x1x8x64xbf16> to vector<8x64xbf16>
    %c0_134 = arith.constant 0 : index
    %c0_135 = arith.constant 0 : index
    %120 = vector.load %arg2[%c0_134, %c0_135] : memref<256x128xbf16, #tpu.memory_space<vmem>>, vector<64x128xbf16>
    %cst_136 = arith.constant dense<0.000000e+00> : vector<8x128xf32>
    %121 = tpu.matmul %119, %120, %cst_136 {dimension_numbers = #tpu.dot_dimension_numbers<[1], [0], [0], [1], [0, 0, 1, 1], [], []>} : vector<8x64xbf16>, vector<64x128xbf16>, vector<8x128xf32> -> vector<8x128xf32>
    %122 = arith.addf %117, %121 : vector<8x128xf32>
    %c0_137 = arith.constant 0 : index
    %c4_138 = arith.constant 4 : index
    %c1_139 = arith.constant 1 : index
    %c0_140 = arith.constant 0 : index
    %123 = vector.load %arg1[%c0_137, %c4_138, %c1_139, %c0_140] : memref<1x9x9x64xbf16, #tpu.memory_space<vmem>>, vector<1x1x8x64xbf16>
    %124 = vector.shape_cast %123 : vector<1x1x8x64xbf16> to vector<8x64xbf16>
    %c64_141 = arith.constant 64 : index
    %c0_142 = arith.constant 0 : index
    %125 = vector.load %arg2[%c64_141, %c0_142] : memref<256x128xbf16, #tpu.memory_space<vmem>>, vector<64x128xbf16>
    %cst_143 = arith.constant dense<0.000000e+00> : vector<8x128xf32>
    %126 = tpu.matmul %124, %125, %cst_143 {dimension_numbers = #tpu.dot_dimension_numbers<[1], [0], [0], [1], [0, 0, 1, 1], [], []>} : vector<8x64xbf16>, vector<64x128xbf16>, vector<8x128xf32> -> vector<8x128xf32>
    %127 = arith.addf %122, %126 : vector<8x128xf32>
    %c0_144 = arith.constant 0 : index
    %c5 = arith.constant 5 : index
    %c0_145 = arith.constant 0 : index
    %c0_146 = arith.constant 0 : index
    %128 = vector.load %arg1[%c0_144, %c5, %c0_145, %c0_146] : memref<1x9x9x64xbf16, #tpu.memory_space<vmem>>, vector<1x1x8x64xbf16>
    %129 = vector.shape_cast %128 : vector<1x1x8x64xbf16> to vector<8x64xbf16>
    %c128_147 = arith.constant 128 : index
    %c0_148 = arith.constant 0 : index
    %130 = vector.load %arg2[%c128_147, %c0_148] : memref<256x128xbf16, #tpu.memory_space<vmem>>, vector<64x128xbf16>
    %cst_149 = arith.constant dense<0.000000e+00> : vector<8x128xf32>
    %131 = tpu.matmul %129, %130, %cst_149 {dimension_numbers = #tpu.dot_dimension_numbers<[1], [0], [0], [1], [0, 0, 1, 1], [], []>} : vector<8x64xbf16>, vector<64x128xbf16>, vector<8x128xf32> -> vector<8x128xf32>
    %132 = arith.addf %127, %131 : vector<8x128xf32>
    %c0_150 = arith.constant 0 : index
    %c5_151 = arith.constant 5 : index
    %c1_152 = arith.constant 1 : index
    %c0_153 = arith.constant 0 : index
    %133 = vector.load %arg1[%c0_150, %c5_151, %c1_152, %c0_153] : memref<1x9x9x64xbf16, #tpu.memory_space<vmem>>, vector<1x1x8x64xbf16>
    %134 = vector.shape_cast %133 : vector<1x1x8x64xbf16> to vector<8x64xbf16>
    %c192_154 = arith.constant 192 : index
    %c0_155 = arith.constant 0 : index
    %135 = vector.load %arg2[%c192_154, %c0_155] : memref<256x128xbf16, #tpu.memory_space<vmem>>, vector<64x128xbf16>
    %cst_156 = arith.constant dense<0.000000e+00> : vector<8x128xf32>
    %136 = tpu.matmul %134, %135, %cst_156 {dimension_numbers = #tpu.dot_dimension_numbers<[1], [0], [0], [1], [0, 0, 1, 1], [], []>} : vector<8x64xbf16>, vector<64x128xbf16>, vector<8x128xf32> -> vector<8x128xf32>
    %137 = arith.addf %132, %136 : vector<8x128xf32>
    %138 = vector.broadcast %0 : vector<1x128xf32> to vector<8x128xf32>
    %139 = arith.addf %137, %138 : vector<8x128xf32>
    %cst_157 = arith.constant 0.000000e+00 : f32
    %140 = vector.broadcast %cst_157 : f32 to vector<8x128xf32>
    %141 = arith.maximumf %139, %140 : vector<8x128xf32>
    %142 = arith.truncf %141 : vector<8x128xf32> to vector<8x128xbf16>
    %c0_158 = arith.constant 0 : index
    %c4_159 = arith.constant 4 : index
    %c0_160 = arith.constant 0 : index
    %c0_161 = arith.constant 0 : index
    %143 = vector.load %arg4[%c0_158, %c4_159, %c0_160, %c0_161] : memref<1x8x8x128xbf16, #tpu.memory_space<vmem>>, vector<1x1x8x128xbf16>
    %144 = vector.shape_cast %143 : vector<1x1x8x128xbf16> to vector<8x128xbf16>
    %145 = vector.shape_cast %142 : vector<8x128xbf16> to vector<1x1x8x128xbf16>
    tpu.vector_store %arg4[%c0_158, %c4_159, %c0_160, %c0_161], %145 {strides = array<i32>} : memref<1x8x8x128xbf16, #tpu.memory_space<vmem>>, vector<1x1x8x128xbf16>,
    %cst_162 = arith.constant 0.000000e+00 : f32
    %146 = vector.broadcast %cst_162 : f32 to vector<8x128xf32>
    %c0_163 = arith.constant 0 : index
    %c5_164 = arith.constant 5 : index
    %c0_165 = arith.constant 0 : index
    %c0_166 = arith.constant 0 : index
    %147 = vector.load %arg1[%c0_163, %c5_164, %c0_165, %c0_166] : memref<1x9x9x64xbf16, #tpu.memory_space<vmem>>, vector<1x1x8x64xbf16>
    %148 = vector.shape_cast %147 : vector<1x1x8x64xbf16> to vector<8x64xbf16>
    %c0_167 = arith.constant 0 : index
    %c0_168 = arith.constant 0 : index
    %149 = vector.load %arg2[%c0_167, %c0_168] : memref<256x128xbf16, #tpu.memory_space<vmem>>, vector<64x128xbf16>
    %cst_169 = arith.constant dense<0.000000e+00> : vector<8x128xf32>
    %150 = tpu.matmul %148, %149, %cst_169 {dimension_numbers = #tpu.dot_dimension_numbers<[1], [0], [0], [1], [0, 0, 1, 1], [], []>} : vector<8x64xbf16>, vector<64x128xbf16>, vector<8x128xf32> -> vector<8x128xf32>
    %151 = arith.addf %146, %150 : vector<8x128xf32>
    %c0_170 = arith.constant 0 : index
    %c5_171 = arith.constant 5 : index
    %c1_172 = arith.constant 1 : index
    %c0_173 = arith.constant 0 : index
    %152 = vector.load %arg1[%c0_170, %c5_171, %c1_172, %c0_173] : memref<1x9x9x64xbf16, #tpu.memory_space<vmem>>, vector<1x1x8x64xbf16>
    %153 = vector.shape_cast %152 : vector<1x1x8x64xbf16> to vector<8x64xbf16>
    %c64_174 = arith.constant 64 : index
    %c0_175 = arith.constant 0 : index
    %154 = vector.load %arg2[%c64_174, %c0_175] : memref<256x128xbf16, #tpu.memory_space<vmem>>, vector<64x128xbf16>
    %cst_176 = arith.constant dense<0.000000e+00> : vector<8x128xf32>
    %155 = tpu.matmul %153, %154, %cst_176 {dimension_numbers = #tpu.dot_dimension_numbers<[1], [0], [0], [1], [0, 0, 1, 1], [], []>} : vector<8x64xbf16>, vector<64x128xbf16>, vector<8x128xf32> -> vector<8x128xf32>
    %156 = arith.addf %151, %155 : vector<8x128xf32>
    %c0_177 = arith.constant 0 : index
    %c6 = arith.constant 6 : index
    %c0_178 = arith.constant 0 : index
    %c0_179 = arith.constant 0 : index
    %157 = vector.load %arg1[%c0_177, %c6, %c0_178, %c0_179] : memref<1x9x9x64xbf16, #tpu.memory_space<vmem>>, vector<1x1x8x64xbf16>
    %158 = vector.shape_cast %157 : vector<1x1x8x64xbf16> to vector<8x64xbf16>
    %c128_180 = arith.constant 128 : index
    %c0_181 = arith.constant 0 : index
    %159 = vector.load %arg2[%c128_180, %c0_181] : memref<256x128xbf16, #tpu.memory_space<vmem>>, vector<64x128xbf16>
    %cst_182 = arith.constant dense<0.000000e+00> : vector<8x128xf32>
    %160 = tpu.matmul %158, %159, %cst_182 {dimension_numbers = #tpu.dot_dimension_numbers<[1], [0], [0], [1], [0, 0, 1, 1], [], []>} : vector<8x64xbf16>, vector<64x128xbf16>, vector<8x128xf32> -> vector<8x128xf32>
    %161 = arith.addf %156, %160 : vector<8x128xf32>
    %c0_183 = arith.constant 0 : index
    %c6_184 = arith.constant 6 : index
    %c1_185 = arith.constant 1 : index
    %c0_186 = arith.constant 0 : index
    %162 = vector.load %arg1[%c0_183, %c6_184, %c1_185, %c0_186] : memref<1x9x9x64xbf16, #tpu.memory_space<vmem>>, vector<1x1x8x64xbf16>
    %163 = vector.shape_cast %162 : vector<1x1x8x64xbf16> to vector<8x64xbf16>
    %c192_187 = arith.constant 192 : index
    %c0_188 = arith.constant 0 : index
    %164 = vector.load %arg2[%c192_187, %c0_188] : memref<256x128xbf16, #tpu.memory_space<vmem>>, vector<64x128xbf16>
    %cst_189 = arith.constant dense<0.000000e+00> : vector<8x128xf32>
    %165 = tpu.matmul %163, %164, %cst_189 {dimension_numbers = #tpu.dot_dimension_numbers<[1], [0], [0], [1], [0, 0, 1, 1], [], []>} : vector<8x64xbf16>, vector<64x128xbf16>, vector<8x128xf32> -> vector<8x128xf32>
    %166 = arith.addf %161, %165 : vector<8x128xf32>
    %167 = vector.broadcast %0 : vector<1x128xf32> to vector<8x128xf32>
    %168 = arith.addf %166, %167 : vector<8x128xf32>
    %cst_190 = arith.constant 0.000000e+00 : f32
    %169 = vector.broadcast %cst_190 : f32 to vector<8x128xf32>
    %170 = arith.maximumf %168, %169 : vector<8x128xf32>
    %171 = arith.truncf %170 : vector<8x128xf32> to vector<8x128xbf16>
    %c0_191 = arith.constant 0 : index
    %c5_192 = arith.constant 5 : index
    %c0_193 = arith.constant 0 : index
    %c0_194 = arith.constant 0 : index
    %172 = vector.load %arg4[%c0_191, %c5_192, %c0_193, %c0_194] : memref<1x8x8x128xbf16, #tpu.memory_space<vmem>>, vector<1x1x8x128xbf16>
    %173 = vector.shape_cast %172 : vector<1x1x8x128xbf16> to vector<8x128xbf16>
    %174 = vector.shape_cast %171 : vector<8x128xbf16> to vector<1x1x8x128xbf16>
    tpu.vector_store %arg4[%c0_191, %c5_192, %c0_193, %c0_194], %174 {strides = array<i32>} : memref<1x8x8x128xbf16, #tpu.memory_space<vmem>>, vector<1x1x8x128xbf16>,
    %cst_195 = arith.constant 0.000000e+00 : f32
    %175 = vector.broadcast %cst_195 : f32 to vector<8x128xf32>
    %c0_196 = arith.constant 0 : index
    %c6_197 = arith.constant 6 : index
    %c0_198 = arith.constant 0 : index
    %c0_199 = arith.constant 0 : index
    %176 = vector.load %arg1[%c0_196, %c6_197, %c0_198, %c0_199] : memref<1x9x9x64xbf16, #tpu.memory_space<vmem>>, vector<1x1x8x64xbf16>
    %177 = vector.shape_cast %176 : vector<1x1x8x64xbf16> to vector<8x64xbf16>
    %c0_200 = arith.constant 0 : index
    %c0_201 = arith.constant 0 : index
    %178 = vector.load %arg2[%c0_200, %c0_201] : memref<256x128xbf16, #tpu.memory_space<vmem>>, vector<64x128xbf16>
    %cst_202 = arith.constant dense<0.000000e+00> : vector<8x128xf32>
    %179 = tpu.matmul %177, %178, %cst_202 {dimension_numbers = #tpu.dot_dimension_numbers<[1], [0], [0], [1], [0, 0, 1, 1], [], []>} : vector<8x64xbf16>, vector<64x128xbf16>, vector<8x128xf32> -> vector<8x128xf32>
    %180 = arith.addf %175, %179 : vector<8x128xf32>
    %c0_203 = arith.constant 0 : index
    %c6_204 = arith.constant 6 : index
    %c1_205 = arith.constant 1 : index
    %c0_206 = arith.constant 0 : index
    %181 = vector.load %arg1[%c0_203, %c6_204, %c1_205, %c0_206] : memref<1x9x9x64xbf16, #tpu.memory_space<vmem>>, vector<1x1x8x64xbf16>
    %182 = vector.shape_cast %181 : vector<1x1x8x64xbf16> to vector<8x64xbf16>
    %c64_207 = arith.constant 64 : index
    %c0_208 = arith.constant 0 : index
    %183 = vector.load %arg2[%c64_207, %c0_208] : memref<256x128xbf16, #tpu.memory_space<vmem>>, vector<64x128xbf16>
    %cst_209 = arith.constant dense<0.000000e+00> : vector<8x128xf32>
    %184 = tpu.matmul %182, %183, %cst_209 {dimension_numbers = #tpu.dot_dimension_numbers<[1], [0], [0], [1], [0, 0, 1, 1], [], []>} : vector<8x64xbf16>, vector<64x128xbf16>, vector<8x128xf32> -> vector<8x128xf32>
    %185 = arith.addf %180, %184 : vector<8x128xf32>
    %c0_210 = arith.constant 0 : index
    %c7 = arith.constant 7 : index
    %c0_211 = arith.constant 0 : index
    %c0_212 = arith.constant 0 : index
    %186 = vector.load %arg1[%c0_210, %c7, %c0_211, %c0_212] : memref<1x9x9x64xbf16, #tpu.memory_space<vmem>>, vector<1x1x8x64xbf16>
    %187 = vector.shape_cast %186 : vector<1x1x8x64xbf16> to vector<8x64xbf16>
    %c128_213 = arith.constant 128 : index
    %c0_214 = arith.constant 0 : index
    %188 = vector.load %arg2[%c128_213, %c0_214] : memref<256x128xbf16, #tpu.memory_space<vmem>>, vector<64x128xbf16>
    %cst_215 = arith.constant dense<0.000000e+00> : vector<8x128xf32>
    %189 = tpu.matmul %187, %188, %cst_215 {dimension_numbers = #tpu.dot_dimension_numbers<[1], [0], [0], [1], [0, 0, 1, 1], [], []>} : vector<8x64xbf16>, vector<64x128xbf16>, vector<8x128xf32> -> vector<8x128xf32>
    %190 = arith.addf %185, %189 : vector<8x128xf32>
    %c0_216 = arith.constant 0 : index
    %c7_217 = arith.constant 7 : index
    %c1_218 = arith.constant 1 : index
    %c0_219 = arith.constant 0 : index
    %191 = vector.load %arg1[%c0_216, %c7_217, %c1_218, %c0_219] : memref<1x9x9x64xbf16, #tpu.memory_space<vmem>>, vector<1x1x8x64xbf16>
    %192 = vector.shape_cast %191 : vector<1x1x8x64xbf16> to vector<8x64xbf16>
    %c192_220 = arith.constant 192 : index
    %c0_221 = arith.constant 0 : index
    %193 = vector.load %arg2[%c192_220, %c0_221] : memref<256x128xbf16, #tpu.memory_space<vmem>>, vector<64x128xbf16>
    %cst_222 = arith.constant dense<0.000000e+00> : vector<8x128xf32>
    %194 = tpu.matmul %192, %193, %cst_222 {dimension_numbers = #tpu.dot_dimension_numbers<[1], [0], [0], [1], [0, 0, 1, 1], [], []>} : vector<8x64xbf16>, vector<64x128xbf16>, vector<8x128xf32> -> vector<8x128xf32>
    %195 = arith.addf %190, %194 : vector<8x128xf32>
    %196 = vector.broadcast %0 : vector<1x128xf32> to vector<8x128xf32>
    %197 = arith.addf %195, %196 : vector<8x128xf32>
    %cst_223 = arith.constant 0.000000e+00 : f32
    %198 = vector.broadcast %cst_223 : f32 to vector<8x128xf32>
    %199 = arith.maximumf %197, %198 : vector<8x128xf32>
    %200 = arith.truncf %199 : vector<8x128xf32> to vector<8x128xbf16>
    %c0_224 = arith.constant 0 : index
    %c6_225 = arith.constant 6 : index
    %c0_226 = arith.constant 0 : index
    %c0_227 = arith.constant 0 : index
    %201 = vector.load %arg4[%c0_224, %c6_225, %c0_226, %c0_227] : memref<1x8x8x128xbf16, #tpu.memory_space<vmem>>, vector<1x1x8x128xbf16>
    %202 = vector.shape_cast %201 : vector<1x1x8x128xbf16> to vector<8x128xbf16>
    %203 = vector.shape_cast %200 : vector<8x128xbf16> to vector<1x1x8x128xbf16>
    tpu.vector_store %arg4[%c0_224, %c6_225, %c0_226, %c0_227], %203 {strides = array<i32>} : memref<1x8x8x128xbf16, #tpu.memory_space<vmem>>, vector<1x1x8x128xbf16>,
    %cst_228 = arith.constant 0.000000e+00 : f32
    %204 = vector.broadcast %cst_228 : f32 to vector<8x128xf32>
    %c0_229 = arith.constant 0 : index
    %c7_230 = arith.constant 7 : index
    %c0_231 = arith.constant 0 : index
    %c0_232 = arith.constant 0 : index
    %205 = vector.load %arg1[%c0_229, %c7_230, %c0_231, %c0_232] : memref<1x9x9x64xbf16, #tpu.memory_space<vmem>>, vector<1x1x8x64xbf16>
    %206 = vector.shape_cast %205 : vector<1x1x8x64xbf16> to vector<8x64xbf16>
    %c0_233 = arith.constant 0 : index
    %c0_234 = arith.constant 0 : index
    %207 = vector.load %arg2[%c0_233, %c0_234] : memref<256x128xbf16, #tpu.memory_space<vmem>>, vector<64x128xbf16>
    %cst_235 = arith.constant dense<0.000000e+00> : vector<8x128xf32>
    %208 = tpu.matmul %206, %207, %cst_235 {dimension_numbers = #tpu.dot_dimension_numbers<[1], [0], [0], [1], [0, 0, 1, 1], [], []>} : vector<8x64xbf16>, vector<64x128xbf16>, vector<8x128xf32> -> vector<8x128xf32>
    %209 = arith.addf %204, %208 : vector<8x128xf32>
    %c0_236 = arith.constant 0 : index
    %c7_237 = arith.constant 7 : index
    %c1_238 = arith.constant 1 : index
    %c0_239 = arith.constant 0 : index
    %210 = vector.load %arg1[%c0_236, %c7_237, %c1_238, %c0_239] : memref<1x9x9x64xbf16, #tpu.memory_space<vmem>>, vector<1x1x8x64xbf16>
    %211 = vector.shape_cast %210 : vector<1x1x8x64xbf16> to vector<8x64xbf16>
    %c64_240 = arith.constant 64 : index
    %c0_241 = arith.constant 0 : index
    %212 = vector.load %arg2[%c64_240, %c0_241] : memref<256x128xbf16, #tpu.memory_space<vmem>>, vector<64x128xbf16>
    %cst_242 = arith.constant dense<0.000000e+00> : vector<8x128xf32>
    %213 = tpu.matmul %211, %212, %cst_242 {dimension_numbers = #tpu.dot_dimension_numbers<[1], [0], [0], [1], [0, 0, 1, 1], [], []>} : vector<8x64xbf16>, vector<64x128xbf16>, vector<8x128xf32> -> vector<8x128xf32>
    %214 = arith.addf %209, %213 : vector<8x128xf32>
    %c0_243 = arith.constant 0 : index
    %c8 = arith.constant 8 : index
    %c0_244 = arith.constant 0 : index
    %c0_245 = arith.constant 0 : index
    %215 = vector.load %arg1[%c0_243, %c8, %c0_244, %c0_245] : memref<1x9x9x64xbf16, #tpu.memory_space<vmem>>, vector<1x1x8x64xbf16>
    %216 = vector.shape_cast %215 : vector<1x1x8x64xbf16> to vector<8x64xbf16>
    %c128_246 = arith.constant 128 : index
    %c0_247 = arith.constant 0 : index
    %217 = vector.load %arg2[%c128_246, %c0_247] : memref<256x128xbf16, #tpu.memory_space<vmem>>, vector<64x128xbf16>
    %cst_248 = arith.constant dense<0.000000e+00> : vector<8x128xf32>
    %218 = tpu.matmul %216, %217, %cst_248 {dimension_numbers = #tpu.dot_dimension_numbers<[1], [0], [0], [1], [0, 0, 1, 1], [], []>} : vector<8x64xbf16>, vector<64x128xbf16>, vector<8x128xf32> -> vector<8x128xf32>
    %219 = arith.addf %214, %218 : vector<8x128xf32>
    %c0_249 = arith.constant 0 : index
    %c8_250 = arith.constant 8 : index
    %c1_251 = arith.constant 1 : index
    %c0_252 = arith.constant 0 : index
    %220 = vector.load %arg1[%c0_249, %c8_250, %c1_251, %c0_252] : memref<1x9x9x64xbf16, #tpu.memory_space<vmem>>, vector<1x1x8x64xbf16>
    %221 = vector.shape_cast %220 : vector<1x1x8x64xbf16> to vector<8x64xbf16>
    %c192_253 = arith.constant 192 : index
    %c0_254 = arith.constant 0 : index
    %222 = vector.load %arg2[%c192_253, %c0_254] : memref<256x128xbf16, #tpu.memory_space<vmem>>, vector<64x128xbf16>
    %cst_255 = arith.constant dense<0.000000e+00> : vector<8x128xf32>
    %223 = tpu.matmul %221, %222, %cst_255 {dimension_numbers = #tpu.dot_dimension_numbers<[1], [0], [0], [1], [0, 0, 1, 1], [], []>} : vector<8x64xbf16>, vector<64x128xbf16>, vector<8x128xf32> -> vector<8x128xf32>
    %224 = arith.addf %219, %223 : vector<8x128xf32>
    %225 = vector.broadcast %0 : vector<1x128xf32> to vector<8x128xf32>
    %226 = arith.addf %224, %225 : vector<8x128xf32>
    %cst_256 = arith.constant 0.000000e+00 : f32
    %227 = vector.broadcast %cst_256 : f32 to vector<8x128xf32>
    %228 = arith.maximumf %226, %227 : vector<8x128xf32>
    %229 = arith.truncf %228 : vector<8x128xf32> to vector<8x128xbf16>
    %c0_257 = arith.constant 0 : index
    %c7_258 = arith.constant 7 : index
    %c0_259 = arith.constant 0 : index
    %c0_260 = arith.constant 0 : index
    %230 = vector.load %arg4[%c0_257, %c7_258, %c0_259, %c0_260] : memref<1x8x8x128xbf16, #tpu.memory_space<vmem>>, vector<1x1x8x128xbf16>
    %231 = vector.shape_cast %230 : vector<1x1x8x128xbf16> to vector<8x128xbf16>
    %232 = vector.shape_cast %229 : vector<8x128xbf16> to vector<1x1x8x128xbf16>
    tpu.vector_store %arg4[%c0_257, %c7_258, %c0_259, %c0_260], %232 {strides = array<i32>} : memref<1x8x8x128xbf16, #tpu.memory_space<vmem>>, vector<1x1x8x128xbf16>,
    return
  }
  func.func @transform_0(%arg0: i32) -> (i32, i32, i32, i32) {
    %c0_i32 = arith.constant 0 : i32
    %c0_i32_0 = arith.constant 0 : i32
    %c0_i32_1 = arith.constant 0 : i32
    %c0_i32_2 = arith.constant 0 : i32
    return %arg0, %c0_i32, %c0_i32_0, %c0_i32_1 : i32, i32, i32, i32
  }
  func.func @transform_1(%arg0: i32) -> (i32, i32) {
    %c0_i32 = arith.constant 0 : i32
    %c0_i32_0 = arith.constant 0 : i32
    %c0_i32_1 = arith.constant 0 : i32
    return %c0_i32, %c0_i32_0 : i32, i32
  }
  func.func @transform_2(%arg0: i32) -> (i32, i32) {
    %c0_i32 = arith.constant 0 : i32
    %c0_i32_0 = arith.constant 0 : i32
    %c0_i32_1 = arith.constant 0 : i32
    return %c0_i32, %c0_i32_0 : i32, i32
  }
  func.func @transform_3(%arg0: i32) -> (i32, i32, i32, i32) {
    %c0_i32 = arith.constant 0 : i32
    %c0_i32_0 = arith.constant 0 : i32
    %c0_i32_1 = arith.constant 0 : i32
    %c0_i32_2 = arith.constant 0 : i32
    return %arg0, %c0_i32, %c0_i32_0, %c0_i32_1 : i32, i32, i32, i32
  }
}

module attributes {stable_mosaic.version = 11 : i64} {
  func.func @_conv_taps_kernel(%arg0: i32, %arg1: memref<1x4x4x512xbf16, #tpu.memory_space<vmem>>, %arg2: memref<2048x128xbf16, #tpu.memory_space<vmem>>, %arg3: memref<1x128xf32, #tpu.memory_space<vmem>>, %arg4: memref<1x3x3x128xbf16, #tpu.memory_space<vmem>>) attributes {dimension_semantics = [#tpu.dimension_semantics<parallel>], iteration_bounds = array<i64: 2>, scalar_prefetch = 0 : i64, scratch_operands = 0 : i64, tpu.core_type = #tpu.core_type<tc>, window_params = [{transform_indices = @transform_0, window_bounds = array<i64: 1, 4, 4, 512>}, {pipeline_mode = #tpu.pipeline_mode<synchronous>, transform_indices = @transform_1, window_bounds = array<i64: 2048, 128>}, {pipeline_mode = #tpu.pipeline_mode<synchronous>, transform_indices = @transform_2, window_bounds = array<i64: 1, 128>}, {transform_indices = @transform_3, window_bounds = array<i64: 1, 3, 3, 128>}]} {
    %c0 = arith.constant 0 : index
    %c0_0 = arith.constant 0 : index
    %0 = vector.load %arg3[%c0, %c0_0] : memref<1x128xf32, #tpu.memory_space<vmem>>, vector<1x128xf32>
    %cst = arith.constant 0.000000e+00 : f32
    %1 = vector.broadcast %cst : f32 to vector<3x128xf32>
    %c0_1 = arith.constant 0 : index
    %c0_2 = arith.constant 0 : index
    %c0_3 = arith.constant 0 : index
    %c0_4 = arith.constant 0 : index
    %2 = vector.load %arg1[%c0_1, %c0_2, %c0_3, %c0_4] : memref<1x4x4x512xbf16, #tpu.memory_space<vmem>>, vector<1x1x3x512xbf16>
    %3 = vector.shape_cast %2 : vector<1x1x3x512xbf16> to vector<3x512xbf16>
    %c0_5 = arith.constant 0 : index
    %c0_6 = arith.constant 0 : index
    %4 = vector.load %arg2[%c0_5, %c0_6] : memref<2048x128xbf16, #tpu.memory_space<vmem>>, vector<512x128xbf16>
    %cst_7 = arith.constant dense<0.000000e+00> : vector<3x128xf32>
    %5 = tpu.matmul %3, %4, %cst_7 {dimension_numbers = #tpu.dot_dimension_numbers<[1], [0], [0], [1], [0, 0, 1, 1], [], []>} : vector<3x512xbf16>, vector<512x128xbf16>, vector<3x128xf32> -> vector<3x128xf32>
    %6 = arith.addf %1, %5 : vector<3x128xf32>
    %c0_8 = arith.constant 0 : index
    %c0_9 = arith.constant 0 : index
    %c1 = arith.constant 1 : index
    %c0_10 = arith.constant 0 : index
    %7 = vector.load %arg1[%c0_8, %c0_9, %c1, %c0_10] : memref<1x4x4x512xbf16, #tpu.memory_space<vmem>>, vector<1x1x3x512xbf16>
    %8 = vector.shape_cast %7 : vector<1x1x3x512xbf16> to vector<3x512xbf16>
    %c512 = arith.constant 512 : index
    %c0_11 = arith.constant 0 : index
    %9 = vector.load %arg2[%c512, %c0_11] : memref<2048x128xbf16, #tpu.memory_space<vmem>>, vector<512x128xbf16>
    %cst_12 = arith.constant dense<0.000000e+00> : vector<3x128xf32>
    %10 = tpu.matmul %8, %9, %cst_12 {dimension_numbers = #tpu.dot_dimension_numbers<[1], [0], [0], [1], [0, 0, 1, 1], [], []>} : vector<3x512xbf16>, vector<512x128xbf16>, vector<3x128xf32> -> vector<3x128xf32>
    %11 = arith.addf %6, %10 : vector<3x128xf32>
    %c0_13 = arith.constant 0 : index
    %c1_14 = arith.constant 1 : index
    %c0_15 = arith.constant 0 : index
    %c0_16 = arith.constant 0 : index
    %12 = vector.load %arg1[%c0_13, %c1_14, %c0_15, %c0_16] : memref<1x4x4x512xbf16, #tpu.memory_space<vmem>>, vector<1x1x3x512xbf16>
    %13 = vector.shape_cast %12 : vector<1x1x3x512xbf16> to vector<3x512xbf16>
    %c1024 = arith.constant 1024 : index
    %c0_17 = arith.constant 0 : index
    %14 = vector.load %arg2[%c1024, %c0_17] : memref<2048x128xbf16, #tpu.memory_space<vmem>>, vector<512x128xbf16>
    %cst_18 = arith.constant dense<0.000000e+00> : vector<3x128xf32>
    %15 = tpu.matmul %13, %14, %cst_18 {dimension_numbers = #tpu.dot_dimension_numbers<[1], [0], [0], [1], [0, 0, 1, 1], [], []>} : vector<3x512xbf16>, vector<512x128xbf16>, vector<3x128xf32> -> vector<3x128xf32>
    %16 = arith.addf %11, %15 : vector<3x128xf32>
    %c0_19 = arith.constant 0 : index
    %c1_20 = arith.constant 1 : index
    %c1_21 = arith.constant 1 : index
    %c0_22 = arith.constant 0 : index
    %17 = vector.load %arg1[%c0_19, %c1_20, %c1_21, %c0_22] : memref<1x4x4x512xbf16, #tpu.memory_space<vmem>>, vector<1x1x3x512xbf16>
    %18 = vector.shape_cast %17 : vector<1x1x3x512xbf16> to vector<3x512xbf16>
    %c1536 = arith.constant 1536 : index
    %c0_23 = arith.constant 0 : index
    %19 = vector.load %arg2[%c1536, %c0_23] : memref<2048x128xbf16, #tpu.memory_space<vmem>>, vector<512x128xbf16>
    %cst_24 = arith.constant dense<0.000000e+00> : vector<3x128xf32>
    %20 = tpu.matmul %18, %19, %cst_24 {dimension_numbers = #tpu.dot_dimension_numbers<[1], [0], [0], [1], [0, 0, 1, 1], [], []>} : vector<3x512xbf16>, vector<512x128xbf16>, vector<3x128xf32> -> vector<3x128xf32>
    %21 = arith.addf %16, %20 : vector<3x128xf32>
    %22 = vector.broadcast %0 : vector<1x128xf32> to vector<3x128xf32>
    %23 = arith.addf %21, %22 : vector<3x128xf32>
    %cst_25 = arith.constant 0.000000e+00 : f32
    %24 = vector.broadcast %cst_25 : f32 to vector<3x128xf32>
    %25 = arith.maximumf %23, %24 : vector<3x128xf32>
    %26 = arith.truncf %25 : vector<3x128xf32> to vector<3x128xbf16>
    %c0_26 = arith.constant 0 : index
    %c0_27 = arith.constant 0 : index
    %c0_28 = arith.constant 0 : index
    %c0_29 = arith.constant 0 : index
    %27 = vector.load %arg4[%c0_26, %c0_27, %c0_28, %c0_29] : memref<1x3x3x128xbf16, #tpu.memory_space<vmem>>, vector<1x1x3x128xbf16>
    %28 = vector.shape_cast %27 : vector<1x1x3x128xbf16> to vector<3x128xbf16>
    %29 = vector.shape_cast %26 : vector<3x128xbf16> to vector<1x1x3x128xbf16>
    tpu.vector_store %arg4[%c0_26, %c0_27, %c0_28, %c0_29], %29 {strides = array<i32>} : memref<1x3x3x128xbf16, #tpu.memory_space<vmem>>, vector<1x1x3x128xbf16>,
    %cst_30 = arith.constant 0.000000e+00 : f32
    %30 = vector.broadcast %cst_30 : f32 to vector<3x128xf32>
    %c0_31 = arith.constant 0 : index
    %c1_32 = arith.constant 1 : index
    %c0_33 = arith.constant 0 : index
    %c0_34 = arith.constant 0 : index
    %31 = vector.load %arg1[%c0_31, %c1_32, %c0_33, %c0_34] : memref<1x4x4x512xbf16, #tpu.memory_space<vmem>>, vector<1x1x3x512xbf16>
    %32 = vector.shape_cast %31 : vector<1x1x3x512xbf16> to vector<3x512xbf16>
    %c0_35 = arith.constant 0 : index
    %c0_36 = arith.constant 0 : index
    %33 = vector.load %arg2[%c0_35, %c0_36] : memref<2048x128xbf16, #tpu.memory_space<vmem>>, vector<512x128xbf16>
    %cst_37 = arith.constant dense<0.000000e+00> : vector<3x128xf32>
    %34 = tpu.matmul %32, %33, %cst_37 {dimension_numbers = #tpu.dot_dimension_numbers<[1], [0], [0], [1], [0, 0, 1, 1], [], []>} : vector<3x512xbf16>, vector<512x128xbf16>, vector<3x128xf32> -> vector<3x128xf32>
    %35 = arith.addf %30, %34 : vector<3x128xf32>
    %c0_38 = arith.constant 0 : index
    %c1_39 = arith.constant 1 : index
    %c1_40 = arith.constant 1 : index
    %c0_41 = arith.constant 0 : index
    %36 = vector.load %arg1[%c0_38, %c1_39, %c1_40, %c0_41] : memref<1x4x4x512xbf16, #tpu.memory_space<vmem>>, vector<1x1x3x512xbf16>
    %37 = vector.shape_cast %36 : vector<1x1x3x512xbf16> to vector<3x512xbf16>
    %c512_42 = arith.constant 512 : index
    %c0_43 = arith.constant 0 : index
    %38 = vector.load %arg2[%c512_42, %c0_43] : memref<2048x128xbf16, #tpu.memory_space<vmem>>, vector<512x128xbf16>
    %cst_44 = arith.constant dense<0.000000e+00> : vector<3x128xf32>
    %39 = tpu.matmul %37, %38, %cst_44 {dimension_numbers = #tpu.dot_dimension_numbers<[1], [0], [0], [1], [0, 0, 1, 1], [], []>} : vector<3x512xbf16>, vector<512x128xbf16>, vector<3x128xf32> -> vector<3x128xf32>
    %40 = arith.addf %35, %39 : vector<3x128xf32>
    %c0_45 = arith.constant 0 : index
    %c2 = arith.constant 2 : index
    %c0_46 = arith.constant 0 : index
    %c0_47 = arith.constant 0 : index
    %41 = vector.load %arg1[%c0_45, %c2, %c0_46, %c0_47] : memref<1x4x4x512xbf16, #tpu.memory_space<vmem>>, vector<1x1x3x512xbf16>
    %42 = vector.shape_cast %41 : vector<1x1x3x512xbf16> to vector<3x512xbf16>
    %c1024_48 = arith.constant 1024 : index
    %c0_49 = arith.constant 0 : index
    %43 = vector.load %arg2[%c1024_48, %c0_49] : memref<2048x128xbf16, #tpu.memory_space<vmem>>, vector<512x128xbf16>
    %cst_50 = arith.constant dense<0.000000e+00> : vector<3x128xf32>
    %44 = tpu.matmul %42, %43, %cst_50 {dimension_numbers = #tpu.dot_dimension_numbers<[1], [0], [0], [1], [0, 0, 1, 1], [], []>} : vector<3x512xbf16>, vector<512x128xbf16>, vector<3x128xf32> -> vector<3x128xf32>
    %45 = arith.addf %40, %44 : vector<3x128xf32>
    %c0_51 = arith.constant 0 : index
    %c2_52 = arith.constant 2 : index
    %c1_53 = arith.constant 1 : index
    %c0_54 = arith.constant 0 : index
    %46 = vector.load %arg1[%c0_51, %c2_52, %c1_53, %c0_54] : memref<1x4x4x512xbf16, #tpu.memory_space<vmem>>, vector<1x1x3x512xbf16>
    %47 = vector.shape_cast %46 : vector<1x1x3x512xbf16> to vector<3x512xbf16>
    %c1536_55 = arith.constant 1536 : index
    %c0_56 = arith.constant 0 : index
    %48 = vector.load %arg2[%c1536_55, %c0_56] : memref<2048x128xbf16, #tpu.memory_space<vmem>>, vector<512x128xbf16>
    %cst_57 = arith.constant dense<0.000000e+00> : vector<3x128xf32>
    %49 = tpu.matmul %47, %48, %cst_57 {dimension_numbers = #tpu.dot_dimension_numbers<[1], [0], [0], [1], [0, 0, 1, 1], [], []>} : vector<3x512xbf16>, vector<512x128xbf16>, vector<3x128xf32> -> vector<3x128xf32>
    %50 = arith.addf %45, %49 : vector<3x128xf32>
    %51 = vector.broadcast %0 : vector<1x128xf32> to vector<3x128xf32>
    %52 = arith.addf %50, %51 : vector<3x128xf32>
    %cst_58 = arith.constant 0.000000e+00 : f32
    %53 = vector.broadcast %cst_58 : f32 to vector<3x128xf32>
    %54 = arith.maximumf %52, %53 : vector<3x128xf32>
    %55 = arith.truncf %54 : vector<3x128xf32> to vector<3x128xbf16>
    %c0_59 = arith.constant 0 : index
    %c1_60 = arith.constant 1 : index
    %c0_61 = arith.constant 0 : index
    %c0_62 = arith.constant 0 : index
    %56 = vector.load %arg4[%c0_59, %c1_60, %c0_61, %c0_62] : memref<1x3x3x128xbf16, #tpu.memory_space<vmem>>, vector<1x1x3x128xbf16>
    %57 = vector.shape_cast %56 : vector<1x1x3x128xbf16> to vector<3x128xbf16>
    %58 = vector.shape_cast %55 : vector<3x128xbf16> to vector<1x1x3x128xbf16>
    tpu.vector_store %arg4[%c0_59, %c1_60, %c0_61, %c0_62], %58 {strides = array<i32>} : memref<1x3x3x128xbf16, #tpu.memory_space<vmem>>, vector<1x1x3x128xbf16>,
    %cst_63 = arith.constant 0.000000e+00 : f32
    %59 = vector.broadcast %cst_63 : f32 to vector<3x128xf32>
    %c0_64 = arith.constant 0 : index
    %c2_65 = arith.constant 2 : index
    %c0_66 = arith.constant 0 : index
    %c0_67 = arith.constant 0 : index
    %60 = vector.load %arg1[%c0_64, %c2_65, %c0_66, %c0_67] : memref<1x4x4x512xbf16, #tpu.memory_space<vmem>>, vector<1x1x3x512xbf16>
    %61 = vector.shape_cast %60 : vector<1x1x3x512xbf16> to vector<3x512xbf16>
    %c0_68 = arith.constant 0 : index
    %c0_69 = arith.constant 0 : index
    %62 = vector.load %arg2[%c0_68, %c0_69] : memref<2048x128xbf16, #tpu.memory_space<vmem>>, vector<512x128xbf16>
    %cst_70 = arith.constant dense<0.000000e+00> : vector<3x128xf32>
    %63 = tpu.matmul %61, %62, %cst_70 {dimension_numbers = #tpu.dot_dimension_numbers<[1], [0], [0], [1], [0, 0, 1, 1], [], []>} : vector<3x512xbf16>, vector<512x128xbf16>, vector<3x128xf32> -> vector<3x128xf32>
    %64 = arith.addf %59, %63 : vector<3x128xf32>
    %c0_71 = arith.constant 0 : index
    %c2_72 = arith.constant 2 : index
    %c1_73 = arith.constant 1 : index
    %c0_74 = arith.constant 0 : index
    %65 = vector.load %arg1[%c0_71, %c2_72, %c1_73, %c0_74] : memref<1x4x4x512xbf16, #tpu.memory_space<vmem>>, vector<1x1x3x512xbf16>
    %66 = vector.shape_cast %65 : vector<1x1x3x512xbf16> to vector<3x512xbf16>
    %c512_75 = arith.constant 512 : index
    %c0_76 = arith.constant 0 : index
    %67 = vector.load %arg2[%c512_75, %c0_76] : memref<2048x128xbf16, #tpu.memory_space<vmem>>, vector<512x128xbf16>
    %cst_77 = arith.constant dense<0.000000e+00> : vector<3x128xf32>
    %68 = tpu.matmul %66, %67, %cst_77 {dimension_numbers = #tpu.dot_dimension_numbers<[1], [0], [0], [1], [0, 0, 1, 1], [], []>} : vector<3x512xbf16>, vector<512x128xbf16>, vector<3x128xf32> -> vector<3x128xf32>
    %69 = arith.addf %64, %68 : vector<3x128xf32>
    %c0_78 = arith.constant 0 : index
    %c3 = arith.constant 3 : index
    %c0_79 = arith.constant 0 : index
    %c0_80 = arith.constant 0 : index
    %70 = vector.load %arg1[%c0_78, %c3, %c0_79, %c0_80] : memref<1x4x4x512xbf16, #tpu.memory_space<vmem>>, vector<1x1x3x512xbf16>
    %71 = vector.shape_cast %70 : vector<1x1x3x512xbf16> to vector<3x512xbf16>
    %c1024_81 = arith.constant 1024 : index
    %c0_82 = arith.constant 0 : index
    %72 = vector.load %arg2[%c1024_81, %c0_82] : memref<2048x128xbf16, #tpu.memory_space<vmem>>, vector<512x128xbf16>
    %cst_83 = arith.constant dense<0.000000e+00> : vector<3x128xf32>
    %73 = tpu.matmul %71, %72, %cst_83 {dimension_numbers = #tpu.dot_dimension_numbers<[1], [0], [0], [1], [0, 0, 1, 1], [], []>} : vector<3x512xbf16>, vector<512x128xbf16>, vector<3x128xf32> -> vector<3x128xf32>
    %74 = arith.addf %69, %73 : vector<3x128xf32>
    %c0_84 = arith.constant 0 : index
    %c3_85 = arith.constant 3 : index
    %c1_86 = arith.constant 1 : index
    %c0_87 = arith.constant 0 : index
    %75 = vector.load %arg1[%c0_84, %c3_85, %c1_86, %c0_87] : memref<1x4x4x512xbf16, #tpu.memory_space<vmem>>, vector<1x1x3x512xbf16>
    %76 = vector.shape_cast %75 : vector<1x1x3x512xbf16> to vector<3x512xbf16>
    %c1536_88 = arith.constant 1536 : index
    %c0_89 = arith.constant 0 : index
    %77 = vector.load %arg2[%c1536_88, %c0_89] : memref<2048x128xbf16, #tpu.memory_space<vmem>>, vector<512x128xbf16>
    %cst_90 = arith.constant dense<0.000000e+00> : vector<3x128xf32>
    %78 = tpu.matmul %76, %77, %cst_90 {dimension_numbers = #tpu.dot_dimension_numbers<[1], [0], [0], [1], [0, 0, 1, 1], [], []>} : vector<3x512xbf16>, vector<512x128xbf16>, vector<3x128xf32> -> vector<3x128xf32>
    %79 = arith.addf %74, %78 : vector<3x128xf32>
    %80 = vector.broadcast %0 : vector<1x128xf32> to vector<3x128xf32>
    %81 = arith.addf %79, %80 : vector<3x128xf32>
    %cst_91 = arith.constant 0.000000e+00 : f32
    %82 = vector.broadcast %cst_91 : f32 to vector<3x128xf32>
    %83 = arith.maximumf %81, %82 : vector<3x128xf32>
    %84 = arith.truncf %83 : vector<3x128xf32> to vector<3x128xbf16>
    %c0_92 = arith.constant 0 : index
    %c2_93 = arith.constant 2 : index
    %c0_94 = arith.constant 0 : index
    %c0_95 = arith.constant 0 : index
    %85 = vector.load %arg4[%c0_92, %c2_93, %c0_94, %c0_95] : memref<1x3x3x128xbf16, #tpu.memory_space<vmem>>, vector<1x1x3x128xbf16>
    %86 = vector.shape_cast %85 : vector<1x1x3x128xbf16> to vector<3x128xbf16>
    %87 = vector.shape_cast %84 : vector<3x128xbf16> to vector<1x1x3x128xbf16>
    tpu.vector_store %arg4[%c0_92, %c2_93, %c0_94, %c0_95], %87 {strides = array<i32>} : memref<1x3x3x128xbf16, #tpu.memory_space<vmem>>, vector<1x1x3x128xbf16>,
    return
  }
  func.func @transform_0(%arg0: i32) -> (i32, i32, i32, i32) {
    %c0_i32 = arith.constant 0 : i32
    %c0_i32_0 = arith.constant 0 : i32
    %c0_i32_1 = arith.constant 0 : i32
    %c0_i32_2 = arith.constant 0 : i32
    return %arg0, %c0_i32, %c0_i32_0, %c0_i32_1 : i32, i32, i32, i32
  }
  func.func @transform_1(%arg0: i32) -> (i32, i32) {
    %c0_i32 = arith.constant 0 : i32
    %c0_i32_0 = arith.constant 0 : i32
    %c0_i32_1 = arith.constant 0 : i32
    return %c0_i32, %c0_i32_0 : i32, i32
  }
  func.func @transform_2(%arg0: i32) -> (i32, i32) {
    %c0_i32 = arith.constant 0 : i32
    %c0_i32_0 = arith.constant 0 : i32
    %c0_i32_1 = arith.constant 0 : i32
    return %c0_i32, %c0_i32_0 : i32, i32
  }
  func.func @transform_3(%arg0: i32) -> (i32, i32, i32, i32) {
    %c0_i32 = arith.constant 0 : i32
    %c0_i32_0 = arith.constant 0 : i32
    %c0_i32_1 = arith.constant 0 : i32
    %c0_i32_2 = arith.constant 0 : i32
    return %arg0, %c0_i32, %c0_i32_0, %c0_i32_1 : i32, i32, i32, i32
  }
}

module attributes {stable_mosaic.version = 11 : i64} {
  func.func @_conv_taps_kernel(%arg0: i32, %arg1: memref<1x3x3x128xbf16, #tpu.memory_space<vmem>>, %arg2: memref<1152x128xbf16, #tpu.memory_space<vmem>>, %arg3: memref<1x128xf32, #tpu.memory_space<vmem>>, %arg4: memref<1x1x1x128xbf16, #tpu.memory_space<vmem>>) attributes {dimension_semantics = [#tpu.dimension_semantics<parallel>], iteration_bounds = array<i64: 2>, scalar_prefetch = 0 : i64, scratch_operands = 0 : i64, tpu.core_type = #tpu.core_type<tc>, window_params = [{transform_indices = @transform_0, window_bounds = array<i64: 1, 3, 3, 128>}, {pipeline_mode = #tpu.pipeline_mode<synchronous>, transform_indices = @transform_1, window_bounds = array<i64: 1152, 128>}, {pipeline_mode = #tpu.pipeline_mode<synchronous>, transform_indices = @transform_2, window_bounds = array<i64: 1, 128>}, {transform_indices = @transform_3, window_bounds = array<i64: 1, 1, 1, 128>}]} {
    %c0 = arith.constant 0 : index
    %c0_0 = arith.constant 0 : index
    %0 = vector.load %arg3[%c0, %c0_0] : memref<1x128xf32, #tpu.memory_space<vmem>>, vector<1x128xf32>
    %cst = arith.constant 0.000000e+00 : f32
    %1 = vector.broadcast %cst : f32 to vector<1x128xf32>
    %c0_1 = arith.constant 0 : index
    %c0_2 = arith.constant 0 : index
    %c0_3 = arith.constant 0 : index
    %c0_4 = arith.constant 0 : index
    %2 = vector.load %arg1[%c0_1, %c0_2, %c0_3, %c0_4] : memref<1x3x3x128xbf16, #tpu.memory_space<vmem>>, vector<1x1x1x128xbf16>
    %3 = vector.shape_cast %2 : vector<1x1x1x128xbf16> to vector<1x128xbf16>
    %c0_5 = arith.constant 0 : index
    %c0_6 = arith.constant 0 : index
    %4 = vector.load %arg2[%c0_5, %c0_6] : memref<1152x128xbf16, #tpu.memory_space<vmem>>, vector<128x128xbf16>
    %cst_7 = arith.constant dense<0.000000e+00> : vector<1x128xf32>
    %5 = tpu.matmul %3, %4, %cst_7 {dimension_numbers = #tpu.dot_dimension_numbers<[1], [0], [0], [1], [0, 0, 1, 1], [], []>} : vector<1x128xbf16>, vector<128x128xbf16>, vector<1x128xf32> -> vector<1x128xf32>
    %6 = arith.addf %1, %5 : vector<1x128xf32>
    %c0_8 = arith.constant 0 : index
    %c0_9 = arith.constant 0 : index
    %c1 = arith.constant 1 : index
    %c0_10 = arith.constant 0 : index
    %7 = vector.load %arg1[%c0_8, %c0_9, %c1, %c0_10] : memref<1x3x3x128xbf16, #tpu.memory_space<vmem>>, vector<1x1x1x128xbf16>
    %8 = vector.shape_cast %7 : vector<1x1x1x128xbf16> to vector<1x128xbf16>
    %c128 = arith.constant 128 : index
    %c0_11 = arith.constant 0 : index
    %9 = vector.load %arg2[%c128, %c0_11] : memref<1152x128xbf16, #tpu.memory_space<vmem>>, vector<128x128xbf16>
    %cst_12 = arith.constant dense<0.000000e+00> : vector<1x128xf32>
    %10 = tpu.matmul %8, %9, %cst_12 {dimension_numbers = #tpu.dot_dimension_numbers<[1], [0], [0], [1], [0, 0, 1, 1], [], []>} : vector<1x128xbf16>, vector<128x128xbf16>, vector<1x128xf32> -> vector<1x128xf32>
    %11 = arith.addf %6, %10 : vector<1x128xf32>
    %c0_13 = arith.constant 0 : index
    %c0_14 = arith.constant 0 : index
    %c2 = arith.constant 2 : index
    %c0_15 = arith.constant 0 : index
    %12 = vector.load %arg1[%c0_13, %c0_14, %c2, %c0_15] : memref<1x3x3x128xbf16, #tpu.memory_space<vmem>>, vector<1x1x1x128xbf16>
    %13 = vector.shape_cast %12 : vector<1x1x1x128xbf16> to vector<1x128xbf16>
    %c256 = arith.constant 256 : index
    %c0_16 = arith.constant 0 : index
    %14 = vector.load %arg2[%c256, %c0_16] : memref<1152x128xbf16, #tpu.memory_space<vmem>>, vector<128x128xbf16>
    %cst_17 = arith.constant dense<0.000000e+00> : vector<1x128xf32>
    %15 = tpu.matmul %13, %14, %cst_17 {dimension_numbers = #tpu.dot_dimension_numbers<[1], [0], [0], [1], [0, 0, 1, 1], [], []>} : vector<1x128xbf16>, vector<128x128xbf16>, vector<1x128xf32> -> vector<1x128xf32>
    %16 = arith.addf %11, %15 : vector<1x128xf32>
    %c0_18 = arith.constant 0 : index
    %c1_19 = arith.constant 1 : index
    %c0_20 = arith.constant 0 : index
    %c0_21 = arith.constant 0 : index
    %17 = vector.load %arg1[%c0_18, %c1_19, %c0_20, %c0_21] : memref<1x3x3x128xbf16, #tpu.memory_space<vmem>>, vector<1x1x1x128xbf16>
    %18 = vector.shape_cast %17 : vector<1x1x1x128xbf16> to vector<1x128xbf16>
    %c384 = arith.constant 384 : index
    %c0_22 = arith.constant 0 : index
    %19 = vector.load %arg2[%c384, %c0_22] : memref<1152x128xbf16, #tpu.memory_space<vmem>>, vector<128x128xbf16>
    %cst_23 = arith.constant dense<0.000000e+00> : vector<1x128xf32>
    %20 = tpu.matmul %18, %19, %cst_23 {dimension_numbers = #tpu.dot_dimension_numbers<[1], [0], [0], [1], [0, 0, 1, 1], [], []>} : vector<1x128xbf16>, vector<128x128xbf16>, vector<1x128xf32> -> vector<1x128xf32>
    %21 = arith.addf %16, %20 : vector<1x128xf32>
    %c0_24 = arith.constant 0 : index
    %c1_25 = arith.constant 1 : index
    %c1_26 = arith.constant 1 : index
    %c0_27 = arith.constant 0 : index
    %22 = vector.load %arg1[%c0_24, %c1_25, %c1_26, %c0_27] : memref<1x3x3x128xbf16, #tpu.memory_space<vmem>>, vector<1x1x1x128xbf16>
    %23 = vector.shape_cast %22 : vector<1x1x1x128xbf16> to vector<1x128xbf16>
    %c512 = arith.constant 512 : index
    %c0_28 = arith.constant 0 : index
    %24 = vector.load %arg2[%c512, %c0_28] : memref<1152x128xbf16, #tpu.memory_space<vmem>>, vector<128x128xbf16>
    %cst_29 = arith.constant dense<0.000000e+00> : vector<1x128xf32>
    %25 = tpu.matmul %23, %24, %cst_29 {dimension_numbers = #tpu.dot_dimension_numbers<[1], [0], [0], [1], [0, 0, 1, 1], [], []>} : vector<1x128xbf16>, vector<128x128xbf16>, vector<1x128xf32> -> vector<1x128xf32>
    %26 = arith.addf %21, %25 : vector<1x128xf32>
    %c0_30 = arith.constant 0 : index
    %c1_31 = arith.constant 1 : index
    %c2_32 = arith.constant 2 : index
    %c0_33 = arith.constant 0 : index
    %27 = vector.load %arg1[%c0_30, %c1_31, %c2_32, %c0_33] : memref<1x3x3x128xbf16, #tpu.memory_space<vmem>>, vector<1x1x1x128xbf16>
    %28 = vector.shape_cast %27 : vector<1x1x1x128xbf16> to vector<1x128xbf16>
    %c640 = arith.constant 640 : index
    %c0_34 = arith.constant 0 : index
    %29 = vector.load %arg2[%c640, %c0_34] : memref<1152x128xbf16, #tpu.memory_space<vmem>>, vector<128x128xbf16>
    %cst_35 = arith.constant dense<0.000000e+00> : vector<1x128xf32>
    %30 = tpu.matmul %28, %29, %cst_35 {dimension_numbers = #tpu.dot_dimension_numbers<[1], [0], [0], [1], [0, 0, 1, 1], [], []>} : vector<1x128xbf16>, vector<128x128xbf16>, vector<1x128xf32> -> vector<1x128xf32>
    %31 = arith.addf %26, %30 : vector<1x128xf32>
    %c0_36 = arith.constant 0 : index
    %c2_37 = arith.constant 2 : index
    %c0_38 = arith.constant 0 : index
    %c0_39 = arith.constant 0 : index
    %32 = vector.load %arg1[%c0_36, %c2_37, %c0_38, %c0_39] : memref<1x3x3x128xbf16, #tpu.memory_space<vmem>>, vector<1x1x1x128xbf16>
    %33 = vector.shape_cast %32 : vector<1x1x1x128xbf16> to vector<1x128xbf16>
    %c768 = arith.constant 768 : index
    %c0_40 = arith.constant 0 : index
    %34 = vector.load %arg2[%c768, %c0_40] : memref<1152x128xbf16, #tpu.memory_space<vmem>>, vector<128x128xbf16>
    %cst_41 = arith.constant dense<0.000000e+00> : vector<1x128xf32>
    %35 = tpu.matmul %33, %34, %cst_41 {dimension_numbers = #tpu.dot_dimension_numbers<[1], [0], [0], [1], [0, 0, 1, 1], [], []>} : vector<1x128xbf16>, vector<128x128xbf16>, vector<1x128xf32> -> vector<1x128xf32>
    %36 = arith.addf %31, %35 : vector<1x128xf32>
    %c0_42 = arith.constant 0 : index
    %c2_43 = arith.constant 2 : index
    %c1_44 = arith.constant 1 : index
    %c0_45 = arith.constant 0 : index
    %37 = vector.load %arg1[%c0_42, %c2_43, %c1_44, %c0_45] : memref<1x3x3x128xbf16, #tpu.memory_space<vmem>>, vector<1x1x1x128xbf16>
    %38 = vector.shape_cast %37 : vector<1x1x1x128xbf16> to vector<1x128xbf16>
    %c896 = arith.constant 896 : index
    %c0_46 = arith.constant 0 : index
    %39 = vector.load %arg2[%c896, %c0_46] : memref<1152x128xbf16, #tpu.memory_space<vmem>>, vector<128x128xbf16>
    %cst_47 = arith.constant dense<0.000000e+00> : vector<1x128xf32>
    %40 = tpu.matmul %38, %39, %cst_47 {dimension_numbers = #tpu.dot_dimension_numbers<[1], [0], [0], [1], [0, 0, 1, 1], [], []>} : vector<1x128xbf16>, vector<128x128xbf16>, vector<1x128xf32> -> vector<1x128xf32>
    %41 = arith.addf %36, %40 : vector<1x128xf32>
    %c0_48 = arith.constant 0 : index
    %c2_49 = arith.constant 2 : index
    %c2_50 = arith.constant 2 : index
    %c0_51 = arith.constant 0 : index
    %42 = vector.load %arg1[%c0_48, %c2_49, %c2_50, %c0_51] : memref<1x3x3x128xbf16, #tpu.memory_space<vmem>>, vector<1x1x1x128xbf16>
    %43 = vector.shape_cast %42 : vector<1x1x1x128xbf16> to vector<1x128xbf16>
    %c1024 = arith.constant 1024 : index
    %c0_52 = arith.constant 0 : index
    %44 = vector.load %arg2[%c1024, %c0_52] : memref<1152x128xbf16, #tpu.memory_space<vmem>>, vector<128x128xbf16>
    %cst_53 = arith.constant dense<0.000000e+00> : vector<1x128xf32>
    %45 = tpu.matmul %43, %44, %cst_53 {dimension_numbers = #tpu.dot_dimension_numbers<[1], [0], [0], [1], [0, 0, 1, 1], [], []>} : vector<1x128xbf16>, vector<128x128xbf16>, vector<1x128xf32> -> vector<1x128xf32>
    %46 = arith.addf %41, %45 : vector<1x128xf32>
    %47 = arith.addf %46, %0 : vector<1x128xf32>
    %cst_54 = arith.constant 0.000000e+00 : f32
    %48 = vector.broadcast %cst_54 : f32 to vector<1x128xf32>
    %49 = arith.maximumf %47, %48 : vector<1x128xf32>
    %50 = arith.truncf %49 : vector<1x128xf32> to vector<1x128xbf16>
    %c0_55 = arith.constant 0 : index
    %c0_56 = arith.constant 0 : index
    %c0_57 = arith.constant 0 : index
    %c0_58 = arith.constant 0 : index
    %51 = vector.load %arg4[%c0_55, %c0_56, %c0_57, %c0_58] : memref<1x1x1x128xbf16, #tpu.memory_space<vmem>>, vector<1x1x1x128xbf16>
    %52 = vector.shape_cast %51 : vector<1x1x1x128xbf16> to vector<1x128xbf16>
    %53 = vector.shape_cast %50 : vector<1x128xbf16> to vector<1x1x1x128xbf16>
    tpu.vector_store %arg4[%c0_55, %c0_56, %c0_57, %c0_58], %53 {strides = array<i32>} : memref<1x1x1x128xbf16, #tpu.memory_space<vmem>>, vector<1x1x1x128xbf16>,
    return
  }
  func.func @transform_0(%arg0: i32) -> (i32, i32, i32, i32) {
    %c0_i32 = arith.constant 0 : i32
    %c0_i32_0 = arith.constant 0 : i32
    %c0_i32_1 = arith.constant 0 : i32
    %c0_i32_2 = arith.constant 0 : i32
    return %arg0, %c0_i32, %c0_i32_0, %c0_i32_1 : i32, i32, i32, i32
  }
  func.func @transform_1(%arg0: i32) -> (i32, i32) {
    %c0_i32 = arith.constant 0 : i32
    %c0_i32_0 = arith.constant 0 : i32
    %c0_i32_1 = arith.constant 0 : i32
    return %c0_i32, %c0_i32_0 : i32, i32
  }
  func.func @transform_2(%arg0: i32) -> (i32, i32) {
    %c0_i32 = arith.constant 0 : i32
    %c0_i32_0 = arith.constant 0 : i32
    %c0_i32_1 = arith.constant 0 : i32
    return %c0_i32, %c0_i32_0 : i32, i32
  }
  func.func @transform_3(%arg0: i32) -> (i32, i32, i32, i32) {
    %c0_i32 = arith.constant 0 : i32
    %c0_i32_0 = arith.constant 0 : i32
    %c0_i32_1 = arith.constant 0 : i32
    %c0_i32_2 = arith.constant 0 : i32
    return %arg0, %c0_i32, %c0_i32_0, %c0_i32_1 : i32, i32, i32, i32
  }
}

module attributes {stable_mosaic.version = 11 : i64} {
  func.func @_heads_kernel(%arg0: i32, %arg1: memref<16x64xbf16, #tpu.memory_space<vmem>>, %arg2: memref<64x1024xbf16, #tpu.memory_space<vmem>>, %arg3: memref<1x1024xf32, #tpu.memory_space<vmem>>, %arg4: memref<1024x128xbf16, #tpu.memory_space<vmem>>, %arg5: memref<1x128xf32, #tpu.memory_space<vmem>>, %arg6: memref<16x128xf32, #tpu.memory_space<vmem>>) attributes {dimension_semantics = [#tpu.dimension_semantics<parallel>], iteration_bounds = array<i64: 1>, scalar_prefetch = 0 : i64, scratch_operands = 0 : i64, tpu.core_type = #tpu.core_type<tc>, window_params = [{transform_indices = @transform_0, window_bounds = array<i64: 16, 64>}, {pipeline_mode = #tpu.pipeline_mode<synchronous>, transform_indices = @transform_1, window_bounds = array<i64: 64, 1024>}, {pipeline_mode = #tpu.pipeline_mode<synchronous>, transform_indices = @transform_2, window_bounds = array<i64: 1, 1024>}, {pipeline_mode = #tpu.pipeline_mode<synchronous>, transform_indices = @transform_3, window_bounds = array<i64: 1024, 128>}, {pipeline_mode = #tpu.pipeline_mode<synchronous>, transform_indices = @transform_4, window_bounds = array<i64: 1, 128>}, {transform_indices = @transform_5, window_bounds = array<i64: 16, 128>}]} {
    %c0 = arith.constant 0 : index
    %c0_0 = arith.constant 0 : index
    %0 = vector.load %arg1[%c0, %c0_0] : memref<16x64xbf16, #tpu.memory_space<vmem>>, vector<16x64xbf16>
    %c0_1 = arith.constant 0 : index
    %c0_2 = arith.constant 0 : index
    %1 = vector.load %arg2[%c0_1, %c0_2] : memref<64x1024xbf16, #tpu.memory_space<vmem>>, vector<64x1024xbf16>
    %cst = arith.constant dense<0.000000e+00> : vector<16x1024xf32>
    %2 = tpu.matmul %0, %1, %cst {dimension_numbers = #tpu.dot_dimension_numbers<[1], [0], [0], [1], [0, 0, 1, 1], [], []>} : vector<16x64xbf16>, vector<64x1024xbf16>, vector<16x1024xf32> -> vector<16x1024xf32>
    %c0_3 = arith.constant 0 : index
    %c0_4 = arith.constant 0 : index
    %3 = vector.load %arg3[%c0_3, %c0_4] : memref<1x1024xf32, #tpu.memory_space<vmem>>, vector<1x1024xf32>
    %4 = vector.broadcast %3 : vector<1x1024xf32> to vector<16x1024xf32>
    %5 = arith.addf %2, %4 : vector<16x1024xf32>
    %cst_5 = arith.constant 0.000000e+00 : f32
    %6 = vector.broadcast %cst_5 : f32 to vector<16x1024xf32>
    %7 = arith.maximumf %5, %6 : vector<16x1024xf32>
    %8 = arith.truncf %7 : vector<16x1024xf32> to vector<16x1024xbf16>
    %c0_6 = arith.constant 0 : index
    %c0_7 = arith.constant 0 : index
    %9 = vector.load %arg4[%c0_6, %c0_7] : memref<1024x128xbf16, #tpu.memory_space<vmem>>, vector<1024x128xbf16>
    %cst_8 = arith.constant dense<0.000000e+00> : vector<16x128xf32>
    %10 = tpu.matmul %8, %9, %cst_8 {dimension_numbers = #tpu.dot_dimension_numbers<[1], [0], [0], [1], [0, 0, 1, 1], [], []>} : vector<16x1024xbf16>, vector<1024x128xbf16>, vector<16x128xf32> -> vector<16x128xf32>
    %c0_9 = arith.constant 0 : index
    %c0_10 = arith.constant 0 : index
    %11 = vector.load %arg5[%c0_9, %c0_10] : memref<1x128xf32, #tpu.memory_space<vmem>>, vector<1x128xf32>
    %12 = vector.broadcast %11 : vector<1x128xf32> to vector<16x128xf32>
    %13 = arith.addf %10, %12 : vector<16x128xf32>
    %c0_11 = arith.constant 0 : index
    %c0_12 = arith.constant 0 : index
    %14 = vector.load %arg6[%c0_11, %c0_12] : memref<16x128xf32, #tpu.memory_space<vmem>>, vector<16x128xf32>
    tpu.vector_store %arg6[%c0_11, %c0_12], %13 {strides = array<i32>} : memref<16x128xf32, #tpu.memory_space<vmem>>, vector<16x128xf32>,
    return
  }
  func.func @transform_0(%arg0: i32) -> (i32, i32) {
    %c0_i32 = arith.constant 0 : i32
    %c0_i32_0 = arith.constant 0 : i32
    return %arg0, %c0_i32 : i32, i32
  }
  func.func @transform_1(%arg0: i32) -> (i32, i32) {
    %c0_i32 = arith.constant 0 : i32
    %c0_i32_0 = arith.constant 0 : i32
    %c0_i32_1 = arith.constant 0 : i32
    return %c0_i32, %c0_i32_0 : i32, i32
  }
  func.func @transform_2(%arg0: i32) -> (i32, i32) {
    %c0_i32 = arith.constant 0 : i32
    %c0_i32_0 = arith.constant 0 : i32
    %c0_i32_1 = arith.constant 0 : i32
    return %c0_i32, %c0_i32_0 : i32, i32
  }
  func.func @transform_3(%arg0: i32) -> (i32, i32) {
    %c0_i32 = arith.constant 0 : i32
    %c0_i32_0 = arith.constant 0 : i32
    %c0_i32_1 = arith.constant 0 : i32
    return %c0_i32, %c0_i32_0 : i32, i32
  }
  func.func @transform_4(%arg0: i32) -> (i32, i32) {
    %c0_i32 = arith.constant 0 : i32
    %c0_i32_0 = arith.constant 0 : i32
    %c0_i32_1 = arith.constant 0 : i32
    return %c0_i32, %c0_i32_0 : i32, i32
  }
  func.func @transform_5(%arg0: i32) -> (i32, i32) {
    %c0_i32 = arith.constant 0 : i32
    %c0_i32_0 = arith.constant 0 : i32
    return %arg0, %c0_i32 : i32, i32
  }
}

</mosaic_0001>

<bundles_post_ra>
// kernel: _lambda_.4
= control target key start
LH: loop header
LB: loop body
LE: loop exit
PB: predicated region body
PF: predicated region fallthrough
CT: control target
= control target key end

     0   :  { %s3892_s12 = smov 0   ;;  %s4578_s0 = inlined_call_operand.vmem [shape: bf16[2,9,9,64], index: 0, kind: input, shape index: {}]   ;;  %s4579_s1 = inlined_call_operand.vmem [shape: bf16[256,128], index: 1, kind: input, shape index: {}]   ;;  %s4580_s2 = inlined_call_operand.vmem [shape: f32[1,128], index: 2, kind: input, shape index: {}]   ;;  %s4581_s3 = inlined_call_operand.vmem [shape: bf16[2,8,8,128], index: 3, kind: output, shape index: {}]  }
   0x1 LB: > { %s2930_s13 = sadd.s32 4294967295, %s3868_s12   ;;  %p2934_p0 = scmp.ge.s32.totalorder %s3868_s12, 1  ;;  %s3868_s12 = sphi %s3892_s12, %s13_s12  }
   0x2   : > { %p137_p1 = scmp.lt.s32.totalorder %s3868_s12, 3 }
   0x4   : > { %p138_p2 = pnand %p2934_p0, %p137_p1 }
   0x5   : > { %v3718_v0 = vld [vmem:[%s4579_s1 + $0x20] sm:$0xff] (!%p138_p2)   ;;  %v3870_v1 = vmov (!%p138_p2), 0.0   ;;  %v3720_v3 = vld [vmem:[%s4579_s1 + $0x28] sm:$0xff] (!%p138_p2)   ;;  %vm3871_vm0 = vmmov (!%p138_p2), 0   ;;  %p161_p3 = scmp.lt.s32.totalorder (!%p138_p2), %s2930_s13, 1  ;;  %v3722_v5 = vld [vmem:[%s4579_s1 + $0x30] sm:$0xff] (!%p138_p2)  }
   0x6   : > { %141 = sbr.rel (%p138_p2) target bundleno = 489 (0x1e9), region = 32  ;;  %3323 = vmatprep.subr.bf16.mxu0 (!%p138_p2), %v3870_v1  ;;  %3335 = vmatprep.subr.bf16.mxu1 (!%p138_p2), %v3870_v1  ;;  %v3719_v2 = vld [vmem:[%s4579_s1] sm:$0xff] (!%p138_p2)   ;;  %v3721_v4 = vld [vmem:[%s4579_s1 + $0x8] sm:$0xff] (!%p138_p2)   ;;  %v3723_v6 = vld [vmem:[%s4579_s1 + $0x10] sm:$0xff] (!%p138_p2)   ;;  %vm227_vm1 = vcmask (!%p138_p2), 523264  }
   0x7   : > { %3324 = vmatpush3.bf16.msra.mxu0 (!%p138_p2), %v3718_v0  ;;  %3331 = vmatprep.mubr.msk.bf16.mxu0 (!%p138_p2), %vm3871_vm0, %v3870_v1  ;;  %v3724_v9 = vld [vmem:[%s4579_s1 + $0x38] sm:$0xff] (!%p138_p2)   ;;  %v3727_v15 = vld [vmem:[%s4579_s1 + $0x40] sm:$0xff] (!%p138_p2)   ;;  %v3729_v18 = vld [vmem:[%s4579_s1 + $0x48] sm:$0xff] (!%p138_p2)  }
   0x8   : > { %3336 = vmatpush3.bf16.msra.mxu1 (!%p138_p2), %v3719_v2  ;;  %3325 = vmatprep.subr.bf16.mxu0 (!%p138_p2), %v3870_v1  ;;  %v3725_v11 = vld [vmem:[%s4579_s1 + $0x18] sm:$0xff] (!%p138_p2)   ;;  %v3728_v16 = vld [vmem:[%s4579_s1 + $0x60] sm:$0xff] (!%p138_p2)   ;;  %v3730_v20 = vld [vmem:[%s4579_s1 + $0x68] sm:$0xff] (!%p138_p2)  }
   0x9   : > { %3337 = vmatprep.subr.bf16.mxu1 (!%p138_p2), %v3870_v1  ;;  %3343 = vmatprep.mubr.msk.bf16.mxu1 (!%p138_p2), %vm3871_vm0, %v3870_v1  ;;  %v3731_v21 = vld [vmem:[%s4579_s1 + $0x50] sm:$0xff] (!%p138_p2)   ;;  %v3733_v24 = vld [vmem:[%s4579_s1 + $0x58] sm:$0xff] (!%p138_p2)   ;;  %v3736_v29 = vld [vmem:[%s4579_s1 + $0x20] sm:$0xff] (!%p138_p2)  }
   0xa   : > { %v3732_v23 = vld [vmem:[%s4579_s1 + $0x70] sm:$0xff] (!%p138_p2)   ;;  %v3734_v27 = vld [vmem:[%s4579_s1 + $0x78] sm:$0xff] (!%p138_p2)   ;;  %v3737_v30 = vld [vmem:[%s4579_s1] sm:$0xff] (!%p138_p2)  }
   0xb   : > { %3326 = vmatpush3.bf16.msra.mxu0 (!%p138_p2), %v3720_v3  ;;  %v3738_v35 = vld [vmem:[%s4579_s1 + $0x28] sm:$0xff] (!%p138_p2)   ;;  %v3740_v37 = vld [vmem:[%s4579_s1 + $0x30] sm:$0xff] (!%p138_p2)   ;;  %v3742_v40 = vld [vmem:[%s4579_s1 + $0x38] sm:$0xff] (!%p138_p2)  }
   0xc   : > { %3338 = vmatpush3.bf16.msra.mxu1 (!%p138_p2), %v3721_v4  ;;  %3327 = vmatprep.subr.bf16.mxu0 (!%p138_p2), %v3870_v1  ;;  %v3739_v36 = vld [vmem:[%s4579_s1 + $0x8] sm:$0xff] (!%p138_p2)   ;;  %v3741_v38 = vld [vmem:[%s4579_s1 + $0x10] sm:$0xff] (!%p138_p2)   ;;  %v3743_v43 = vld [vmem:[%s4579_s1 + $0x18] sm:$0xff] (!%p138_p2)  }
   0xd   : > { %s4583_s13 = smov (!%p161_p3, %s2930_s13), 1  ;;  %3339 = vmatprep.subr.bf16.mxu1 %v3870_v1  ;;  %v3745_v45 = vld [vmem:[%s4579_s1 + $0x40] sm:$0xff]   ;;  %v3747_v47 = vld [vmem:[%s4579_s1 + $0x48] sm:$0xff]   ;;  %v3749_v50 = vld [vmem:[%s4579_s1 + $0x50] sm:$0xff]  }
   0xe   : > { %s3707_s24 = smul.u32 72, %s4583_s13  ;;  %v3746_v46 = vld [vmem:[%s4579_s1 + $0x60] sm:$0xff]   ;;  %v3748_v49 = vld [vmem:[%s4579_s1 + $0x68] sm:$0xff]   ;;  %v3750_v52 = vld [vmem:[%s4579_s1 + $0x70] sm:$0xff]   ;;  %s3162_s5 = sshll.u32 %s4583_s13, 5 }
   0xf   : > { %3328 = vmatpush3.bf16.msra.mxu0 %v3722_v5  ;;  %v3751_v53 = vld [vmem:[%s4579_s1 + $0x58] sm:$0xff]   ;;  %v3754_v58 = vld [vmem:[%s4579_s1 + $0x20] sm:$0xff]   ;;  %v3756_v63 = vld [vmem:[%s4579_s1 + $0x28] sm:$0xff]   ;;  %s4555_s11 = scalar_lea.vmem %s4581_s3, %s3162_s5 }
  0x10   : > { %s3934_s29 = scalar_lea.vmem %s4578_s0, %s3707_s24  ;;  %3340 = vmatpush3.bf16.msra.mxu1 %v3723_v6  ;;  %3329 = vmatprep.subr.bf16.mxu0 %v3870_v1  ;;  %v3752_v56 = vld [vmem:[%s4579_s1 + $0x78] sm:$0xff]   ;;  %v3755_v60 = vld [vmem:[%s4579_s1] sm:$0xff]   ;;  %v3757_v0 = vld [vmem:[%s4579_s1 + $0x8] sm:$0xff]  }
  0x11   : > { %v173_v7 = vld [vmem:[%s3934_s29] sm:$0xf]  ;;  %v182_v8 = vld [vmem:[%s3934_s29 + $0x4] sm:$0x1]  ;;  %3341 = vmatprep.subr.bf16.mxu1 %v3870_v1  ;;  %v3735_v19 = vld [vmem:[%s3934_s29 + $0x8] sm:$0x1f]  }
  0x12   : > { %v2938_v10 = vcombine.low %v173_v7, %v182_v8  ;;  %v434_v22 = vshll.u32 %v3735_v19, 16  ;;  %v432_v25 = vshrl.u32 %v3735_v19, 16  ;;  %v2949_v28 = vld [vmem:[%s3934_s29 + $0x8] sm:$0xf]  ;;  %v2965_v33 = vld [vmem:[%s3934_s29 + $0xc] sm:$0x1] }
  0x13   : > { %3330 = vmatpush3.bf16.msra.mxu0 %v3724_v9  ;;  %v2964_v32 = vld [vmem:[%s3934_s29 + $0x8] sm:$0xf]  ;;  %v3753_v48 = vld [vmem:[%s3934_s29 + $0x10] sm:$0x1f]   ;;  %v3760_v6 = vld [vmem:[%s4579_s1 + $0x38] sm:$0xff]  }
  0x14   : > { %v197_v12 = vshrl.u32 %v2938_v10, 16  ;;  %v199_v13 = vshll.u32 %v2938_v10, 16  ;;  %3342 = vmatpush3.bf16.msra.mxu1 %v3725_v11  ;;  %3347 = vmatprep.subr.bf16.mxu0 %v3870_v1  ;;  %v436_v26 = vrot.slane %v434_v22, 1  ;;  %v2966_v34 = vcombine.low %v2964_v32, %v2965_v33  ;;  %v2977_v57 = vld [vmem:[%s3934_s29 + $0x10] sm:$0xf]  ;;  %v3763_v11 = vld [vmem:[%s4579_s1 + $0x40] sm:$0xff]  }
  0x15   : > { %3359 = vmatprep.subr.bf16.mxu1 %v3870_v1  ;;  %v776_v51 = vshll.u32 %v3753_v48, 16  ;;  %v774_v54 = vshrl.u32 %v3753_v48, 16  ;;  %v2992_v61 = vld [vmem:[%s3934_s29 + $0x10] sm:$0xf]  ;;  %v2993_v62 = vld [vmem:[%s3934_s29 + $0x14] sm:$0x1] }
  0x16   : > { %v201_v14 = vrot.slane %v199_v13, 1  ;;  %v437_v31 = vor.u32 %v436_v26, %v432_v25  ;;  %v542_v39 = vshll.u32 %v2966_v34, 16  ;;  %v540_v41 = vshrl.u32 %v2966_v34, 16  ;;  %v3758_v4 = vld [vmem:[%s4579_s1 + $0x30] sm:$0xff]   ;;  %v3765_v13 = vld [vmem:[%s4579_s1 + $0x48] sm:$0xff]   ;;  %v3769_v19 = vld [vmem:[%s4579_s1 + $0x58] sm:$0xff]  }
  0x17   : > { %3344 = vmatmul.mubr.msk.bf16.vlgmr.msra.gmra.mrb[0].mxu1 %vm227_vm1, %v173_v7  ;;  %v778_v55 = vrot.slane %v776_v51, 1  ;;  %v2994_v2 = vcombine.low %v2992_v61, %v2993_v62  ;;  %v3759_v5 = vld [vmem:[%s4579_s1 + $0x10] sm:$0xff]   ;;  %v3761_v7 = vld [vmem:[%s4579_s1 + $0x18] sm:$0xff]   ;;  %v3773_v25 = vld [vmem:[%s4579_s1] sm:$0xff]  }
  0x18   : > { %v202_v17 = vor.u32 %v201_v14, %v197_v12  ;;  %3360 = vmatpush3.bf16.msra.mxu1 %v3728_v16  ;;  %3367 = vmatprep.mubr.msk.bf16.mxu1 %vm3871_vm0, %v3870_v1  ;;  %v544_v42 = vrot.slane %v542_v39, 1  ;;  %v3764_v12 = vld [vmem:[%s4579_s1 + $0x60] sm:$0xff]   ;;  %v3771_v14 = vld [vmem:[%s3934_s29 + $0x18] sm:$0x1f]   ;;  %v3767_v16 = vld [vmem:[%s4579_s1 + $0x50] sm:$0xff]  }
  0x19   : > { %3361 = vmatprep.subr.bf16.mxu1 %v3870_v1  ;;  %v779_v59 = vor.u32 %v778_v55, %v774_v54  ;;  %v879_v3 = vshll.u32 %v2994_v2, 16  ;;  %v877_v8 = vshrl.u32 %v2994_v2, 16  ;;  %v3770_v22 = vld [vmem:[%s4579_s1 + $0x78] sm:$0xff]   ;;  %v3777_v33 = vld [vmem:[%s4579_s1 + $0x10] sm:$0xff]   ;;  %v3791_v54 = vld [vmem:[%s4579_s1] sm:$0xff]  }
  0x1a   : > { %3332 = vmatmul.mubr.msk.bf16.vlgmr.msra.gmra.mrb[0].mxu0 %vm227_vm1, %v202_v17  ;;  %v545_v44 = vor.u32 %v544_v42, %v540_v41  ;;  %v1113_v17 = vshll.u32 %v3771_v14, 16  ;;  %v3782_v41 = vld [vmem:[%s4579_s1 + $0x60] sm:$0xff]   ;;  %v3783_v42 = vld [vmem:[%s4579_s1 + $0x48] sm:$0xff]   ;;  %v3787_v48 = vld [vmem:[%s4579_s1 + $0x58] sm:$0xff]  }
  0x1b   : > { %3348 = vmatpush3.bf16.msra.mxu0 %v3727_v15  ;;  %3355 = vmatprep.mubr.msk.bf16.mxu0 %vm3871_vm0, %v3870_v1  ;;  %v881_v9 = vrot.slane %v879_v3, 1  ;;  %v3766_v15 = vld [vmem:[%s4579_s1 + $0x68] sm:$0xff]   ;;  %v3788_v51 = vld [vmem:[%s4579_s1 + $0x78] sm:$0xff]  }
  0x1c   : > { %3349 = vmatprep.subr.bf16.mxu0 %v3870_v1  ;;  %3362 = vmatpush3.bf16.msra.mxu1 %v3730_v20  ;;  %v1111_v20 = vshrl.u32 %v3771_v14, 16  ;;  %v3797_v2 = vld [vmem:[%s4579_s1 + $0x18] sm:$0xff]  }
  0x1d   : > { %3363 = vmatprep.subr.bf16.mxu1 %v3870_v1  ;;  %v882_v10 = vor.u32 %v881_v9, %v877_v8  ;;  %v3807_v8 = vld [vmem:[%s3934_s29 + $0x28] sm:$0x1f]  }
  0x1e   : > { %v3801_v9 = vld [vmem:[%s4579_s1 + $0x48] sm:$0xff]   ;;  %v1785_v14 = vshrl.u32 %v3807_v8, 16 }
  0x1f   : > { %3350 = vmatpush3.bf16.msra.mxu0 %v3729_v18  ;;  %v3768_v18 = vld [vmem:[%s4579_s1 + $0x70] sm:$0xff]  }
  0x20   : > { %3351 = vmatprep.subr.bf16.mxu0 %v3870_v1  ;;  %3364 = vmatpush3.bf16.msra.mxu1 %v3732_v23  ;;  %v3005_v23 = vld [vmem:[%s3934_s29 + $0x18] sm:$0xf] }
  0x21   : > { %3365 = vmatprep.subr.bf16.mxu1 %v3870_v1 }
  0x23   : > { %3352 = vmatpush3.bf16.msra.mxu0 %v3731_v21  ;;  %v1115_v21 = vrot.slane %v1113_v17, 1  ;;  %v3806_v17 = vld [vmem:[%s4579_s1 + $0x78] sm:$0xff]  }
  0x24   : > { %3353 = vmatprep.subr.bf16.mxu0 %v3870_v1  ;;  %3366 = vmatpush3.bf16.msra.mxu1 %v3734_v27  ;;  %v3020_v27 = vld [vmem:[%s3934_s29 + $0x18] sm:$0xf] }
  0x25   : > { %3383 = vmatprep.subr.bf16.mxu1 %v3870_v1  ;;  %v1116_v26 = vor.u32 %v1115_v21, %v1111_v20  ;;  %v3808_v20 = vld [vmem:[%s4579_s1 + $0x20] sm:$0xff]  }
  0x26   : > { %v3809_v21 = vld [vmem:[%s4579_s1] sm:$0xff]  }
  0x27   : > { %3354 = vmatpush3.bf16.msra.mxu0 %v3733_v24  ;;  %3368 = vmatmul.mubr.msk.bf16.vlgmr.msra.gmra.mrb[4].mxu1 %vm227_vm1, %v437_v31  ;;  %v3772_v24 = vld [vmem:[%s4579_s1 + $0x20] sm:$0xff]   ;;  %v3775_v31 = vld [vmem:[%s4579_s1 + $0x8] sm:$0xff]  }
  0x28   : > { %3371 = vmatprep.subr.bf16.mxu0 %v3870_v1  ;;  %3384 = vmatpush3.bf16.msra.mxu1 %v3737_v30 }
  0x29   : > { %3385 = vmatprep.subr.bf16.mxu1 %v3870_v1  ;;  %3391 = vmatprep.mubr.msk.bf16.mxu1 %vm3871_vm0, %v3870_v1 }
  0x2a   : > { %3356 = vmatmul.mubr.msk.bf16.vlgmr.msra.gmra.mrb[4].mxu0 %vm227_vm1, %v2949_v28  ;;  %v3021_v28 = vld [vmem:[%s3934_s29 + $0x1c] sm:$0x1] }
  0x2b   : > { %3372 = vmatpush3.bf16.msra.mxu0 %v3736_v29  ;;  %3379 = vmatprep.mubr.msk.bf16.mxu0 %vm3871_vm0, %v3870_v1  ;;  %v3774_v29 = vld [vmem:[%s4579_s1 + $0x28] sm:$0xff]   ;;  %v3022_v30 = vcombine.low %v3020_v27, %v3021_v28  ;;  %v3812_v28 = vld [vmem:[%s4579_s1 + $0x30] sm:$0xff]  }
  0x2c   : > { %3373 = vmatprep.subr.bf16.mxu0 %v3870_v1  ;;  %3386 = vmatpush3.bf16.msra.mxu1 %v3739_v36 }
  0x2d   : > { %3387 = vmatprep.subr.bf16.mxu1 %v3870_v1  ;;  %v1216_v34 = vshll.u32 %v3022_v30, 16 }
  0x2f   : > { %3374 = vmatpush3.bf16.msra.mxu0 %v3738_v35  ;;  %v1214_v35 = vshrl.u32 %v3022_v30, 16  ;;  %v1218_v36 = vrot.slane %v1216_v34, 1 }
  0x30   : > { %3375 = vmatprep.subr.bf16.mxu0 %v3870_v1  ;;  %3388 = vmatpush3.bf16.msra.mxu1 %v3741_v38  ;;  %v3779_v38 = vld [vmem:[%s4579_s1 + $0x18] sm:$0xff]  }
  0x31   : > { %3389 = vmatprep.subr.bf16.mxu1 %v3870_v1  ;;  %v1219_v39 = vor.u32 %v1218_v36, %v1214_v35  ;;  %v3817_v35 = vld [vmem:[%s4579_s1 + $0x40] sm:$0xff]  }
  0x32   : > { %v3818_v36 = vld [vmem:[%s4579_s1 + $0x60] sm:$0xff]  }
  0x33   : > { %3376 = vmatpush3.bf16.msra.mxu0 %v3740_v37  ;;  %v3778_v37 = vld [vmem:[%s4579_s1 + $0x38] sm:$0xff]  }
  0x34   : > { %3377 = vmatprep.subr.bf16.mxu0 %v3870_v1  ;;  %3390 = vmatpush3.bf16.msra.mxu1 %v3743_v43  ;;  %v3789_v43 = vld [vmem:[%s3934_s29 + $0x20] sm:$0x1f]  }
  0x35   : > { %3407 = vmatprep.subr.bf16.mxu1 %v3870_v1 }
  0x37   : > { %3378 = vmatpush3.bf16.msra.mxu0 %v3742_v40  ;;  %3392 = vmatmul.mubr.msk.bf16.vlgmr.msra.gmra.mrb[8].mxu1 %vm227_vm1, %v2964_v32  ;;  %v3776_v32 = vld [vmem:[%s4579_s1 + $0x30] sm:$0xff]   ;;  %v3781_v40 = vld [vmem:[%s4579_s1 + $0x40] sm:$0xff]  }
  0x38   : > { %3395 = vmatprep.subr.bf16.mxu0 %v3870_v1  ;;  %3408 = vmatpush3.bf16.msra.mxu1 %v3746_v46  ;;  %v1450_v46 = vshll.u32 %v3789_v43, 16 }
  0x39   : > { %3409 = vmatprep.subr.bf16.mxu1 %v3870_v1  ;;  %3415 = vmatprep.mubr.msk.bf16.mxu1 %vm3871_vm0, %v3870_v1 }
  0x3a   : > { %3380 = vmatmul.mubr.msk.bf16.vlgmr.msra.gmra.mrb[8].mxu0 %vm227_vm1, %v545_v44  ;;  %v3784_v44 = vld [vmem:[%s4579_s1 + $0x68] sm:$0xff]  }
  0x3b   : > { %3396 = vmatpush3.bf16.msra.mxu0 %v3745_v45  ;;  %3403 = vmatprep.mubr.msk.bf16.mxu0 %vm3871_vm0, %v3870_v1  ;;  %v3785_v45 = vld [vmem:[%s4579_s1 + $0x50] sm:$0xff]  }
  0x3c   : > { %3397 = vmatprep.subr.bf16.mxu0 %v3870_v1  ;;  %3410 = vmatpush3.bf16.msra.mxu1 %v3748_v49  ;;  %v1448_v49 = vshrl.u32 %v3789_v43, 16 }
  0x3d   : > { %3411 = vmatprep.subr.bf16.mxu1 %v3870_v1 }
  0x3f   : > { %3398 = vmatpush3.bf16.msra.mxu0 %v3747_v47  ;;  %v3786_v47 = vld [vmem:[%s4579_s1 + $0x70] sm:$0xff]  }
  0x40   : > { %3399 = vmatprep.subr.bf16.mxu0 %v3870_v1  ;;  %3412 = vmatpush3.bf16.msra.mxu1 %v3750_v52  ;;  %v3033_v52 = vld [vmem:[%s3934_s29 + $0x20] sm:$0xf] }
  0x41   : > { %3413 = vmatprep.subr.bf16.mxu1 %v3870_v1 }
  0x43   : > { %3400 = vmatpush3.bf16.msra.mxu0 %v3749_v50  ;;  %v1452_v50 = vrot.slane %v1450_v46, 1  ;;  %v3824_v46 = vld [vmem:[%s4579_s1 + $0x78] sm:$0xff]  }
  0x44   : > { %3401 = vmatprep.subr.bf16.mxu0 %v3870_v1  ;;  %3414 = vmatpush3.bf16.msra.mxu1 %v3752_v56  ;;  %v3048_v56 = vld [vmem:[%s3934_s29 + $0x20] sm:$0xf] }
  0x45   : > { %3431 = vmatprep.subr.bf16.mxu1 %v3870_v1  ;;  %v1453_v55 = vor.u32 %v1452_v50, %v1448_v49  ;;  %v3826_v49 = vld [vmem:[%s4579_s1 + $0x20] sm:$0xff]  }
  0x46   : > { %v3827_v50 = vld [vmem:[%s4579_s1] sm:$0xff]  }
  0x47   : > { %3402 = vmatpush3.bf16.msra.mxu0 %v3751_v53  ;;  %3416 = vmatmul.mubr.msk.bf16.vlgmr.msra.gmra.mrb[12].mxu1 %vm227_vm1, %v779_v59  ;;  %v3790_v53 = vld [vmem:[%s4579_s1 + $0x20] sm:$0xff]  }
  0x48   : > { %3419 = vmatprep.subr.bf16.mxu0 %v3870_v1  ;;  %3432 = vmatpush3.bf16.msra.mxu1 %v3755_v60  ;;  %v3793_v60 = vld [vmem:[%s4579_s1 + $0x8] sm:$0xff]  }
  0x49   : > { %3433 = vmatprep.subr.bf16.mxu1 %v3870_v1  ;;  %3439 = vmatprep.mubr.msk.bf16.mxu1 %vm3871_vm0, %v3870_v1 }
  0x4a   : > { %3404 = vmatmul.mubr.msk.bf16.vlgmr.msra.gmra.mrb[12].mxu0 %vm227_vm1, %v2977_v57  ;;  %v3049_v57 = vld [vmem:[%s3934_s29 + $0x24] sm:$0x1] }
  0x4b   : > { %3420 = vmatpush3.bf16.msra.mxu0 %v3754_v58  ;;  %3427 = vmatprep.mubr.msk.bf16.mxu0 %vm3871_vm0, %v3870_v1  ;;  %v3792_v58 = vld [vmem:[%s4579_s1 + $0x28] sm:$0xff]   ;;  %v3050_v59 = vcombine.low %v3048_v56, %v3049_v57  ;;  %v3830_v57 = vld [vmem:[%s4579_s1 + $0x30] sm:$0xff]  }
  0x4c   : > { %3421 = vmatprep.subr.bf16.mxu0 %v3870_v1  ;;  %3434 = vmatpush3.bf16.msra.mxu1 %v3757_v0  ;;  %v3796_v0 = vld [vmem:[%s4579_s1 + $0x38] sm:$0xff]  }
  0x4d   : > { %3435 = vmatprep.subr.bf16.mxu1 %v3870_v1  ;;  %v1553_v62 = vshll.u32 %v3050_v59, 16  ;;  %v1551_v3 = vshrl.u32 %v3050_v59, 16 }
  0x4f   : > { %3422 = vmatpush3.bf16.msra.mxu0 %v3756_v63  ;;  %v3795_v63 = vld [vmem:[%s4579_s1 + $0x10] sm:$0xff]  }
  0x50   : > { %3423 = vmatprep.subr.bf16.mxu0 %v3870_v1  ;;  %3436 = vmatpush3.bf16.msra.mxu1 %v3759_v5 }
  0x51   : > { %3437 = vmatprep.subr.bf16.mxu1 %v3870_v1 }
  0x53   : > { %3424 = vmatpush3.bf16.msra.mxu0 %v3758_v4  ;;  %v1555_v4 = vrot.slane %v1553_v62, 1  ;;  %v3833_v62 = vld [vmem:[%s4579_s1 + $0x18] sm:$0xff]  }
  0x54   : > { %3425 = vmatprep.subr.bf16.mxu0 %v3870_v1  ;;  %3438 = vmatpush3.bf16.msra.mxu1 %v3761_v7  ;;  %v3800_v7 = vld [vmem:[%s4579_s1 + $0x60] sm:$0xff]  }
  0x55   : > { %3455 = vmatprep.subr.bf16.mxu1 %v3870_v1  ;;  %v1556_v5 = vor.u32 %v1555_v4, %v1551_v3  ;;  %v3843_v3 = vld [vmem:[%s3934_s29 + $0x38] sm:$0x1f]   ;;  %v3837_v4 = vld [vmem:[%s4579_s1 + $0x48] sm:$0xff]  }
  0x57   : > { %3426 = vmatpush3.bf16.msra.mxu0 %v3760_v6  ;;  %3440 = vmatmul.mubr.msk.bf16.vlgmr.msra.gmra.mrb[16].mxu1 %vm227_vm1, %v2992_v61  ;;  %v3794_v61 = vld [vmem:[%s4579_s1 + $0x30] sm:$0xff]   ;;  %v3799_v6 = vld [vmem:[%s4579_s1 + $0x40] sm:$0xff]  }
  0x58   : > { %3443 = vmatprep.subr.bf16.mxu0 %v3870_v1  ;;  %3456 = vmatpush3.bf16.msra.mxu1 %v3764_v12  ;;  %v3803_v12 = vld [vmem:[%s4579_s1 + $0x50] sm:$0xff]  }
  0x59   : > { %3457 = vmatprep.subr.bf16.mxu1 %v3870_v1  ;;  %3463 = vmatprep.mubr.msk.bf16.mxu1 %vm3871_vm0, %v3870_v1 }
  0x5a   : > { %3428 = vmatmul.mubr.msk.bf16.vlgmr.msra.gmra.mrb[16].mxu0 %vm227_vm1, %v882_v10  ;;  %v3802_v10 = vld [vmem:[%s4579_s1 + $0x68] sm:$0xff]  }
  0x5b   : > { %3444 = vmatpush3.bf16.msra.mxu0 %v3763_v11  ;;  %3451 = vmatprep.mubr.msk.bf16.mxu0 %vm3871_vm0, %v3870_v1  ;;  %v1787_v11 = vshll.u32 %v3807_v8, 16  ;;  %v3840_v8 = vld [vmem:[%s4579_s1 + $0x70] sm:$0xff]  }
  0x5c   : > { %3445 = vmatprep.subr.bf16.mxu0 %v3870_v1  ;;  %3458 = vmatpush3.bf16.msra.mxu1 %v3766_v15 }
  0x5d   : > { %3459 = vmatprep.subr.bf16.mxu1 %v3870_v1  ;;  %v1789_v15 = vrot.slane %v1787_v11, 1  ;;  %v3841_v11 = vld [vmem:[%s4579_s1 + $0x58] sm:$0xff]  }
  0x5f   : > { %3446 = vmatpush3.bf16.msra.mxu0 %v3765_v13  ;;  %v3804_v13 = vld [vmem:[%s4579_s1 + $0x70] sm:$0xff]  }
  0x60   : > { %3447 = vmatprep.subr.bf16.mxu0 %v3870_v1  ;;  %3460 = vmatpush3.bf16.msra.mxu1 %v3768_v18  ;;  %v3061_v18 = vld [vmem:[%s3934_s29 + $0x28] sm:$0xf] }
  0x61   : > { %3461 = vmatprep.subr.bf16.mxu1 %v3870_v1 }
  0x63   : > { %3448 = vmatpush3.bf16.msra.mxu0 %v3767_v16  ;;  %v3805_v16 = vld [vmem:[%s4579_s1 + $0x58] sm:$0xff]  }
  0x64   : > { %3449 = vmatprep.subr.bf16.mxu0 %v3870_v1  ;;  %3462 = vmatpush3.bf16.msra.mxu1 %v3770_v22  ;;  %v3076_v22 = vld [vmem:[%s3934_s29 + $0x28] sm:$0xf] }
  0x65   : > { %3479 = vmatprep.subr.bf16.mxu1 %v3870_v1 }
  0x67   : > { %3450 = vmatpush3.bf16.msra.mxu0 %v3769_v19  ;;  %3464 = vmatmul.mubr.msk.bf16.vlgmr.msra.gmra.mrb[20].mxu1 %vm227_vm1, %v1116_v26  ;;  %v1790_v19 = vor.u32 %v1789_v15, %v1785_v14  ;;  %v3811_v26 = vld [vmem:[%s4579_s1 + $0x8] sm:$0xff]   ;;  %v3844_v15 = vld [vmem:[%s4579_s1 + $0x20] sm:$0xff]  }
  0x68   : > { %3467 = vmatprep.subr.bf16.mxu0 %v3870_v1  ;;  %3480 = vmatpush3.bf16.msra.mxu1 %v3773_v25  ;;  %v3810_v25 = vld [vmem:[%s4579_s1 + $0x28] sm:$0xff]  }
  0x69   : > { %3481 = vmatprep.subr.bf16.mxu1 %v3870_v1  ;;  %3487 = vmatprep.mubr.msk.bf16.mxu1 %vm3871_vm0, %v3870_v1 }
  0x6a   : > { %3452 = vmatmul.mubr.msk.bf16.vlgmr.msra.gmra.mrb[20].mxu0 %vm227_vm1, %v3005_v23  ;;  %v3077_v23 = vld [vmem:[%s3934_s29 + $0x2c] sm:$0x1] }
  0x6b   : > { %3468 = vmatpush3.bf16.msra.mxu0 %v3772_v24  ;;  %3475 = vmatprep.mubr.msk.bf16.mxu0 %vm3871_vm0, %v3870_v1  ;;  %v3078_v24 = vcombine.low %v3076_v22, %v3077_v23 }
  0x6c   : > { %3469 = vmatprep.subr.bf16.mxu0 %v3870_v1  ;;  %3482 = vmatpush3.bf16.msra.mxu1 %v3775_v31 }
  0x6d   : > { %3483 = vmatprep.subr.bf16.mxu1 %v3870_v1  ;;  %v1888_v30 = vshrl.u32 %v3078_v24, 16 }
  0x6f   : > { %3470 = vmatpush3.bf16.msra.mxu0 %v3774_v29  ;;  %v3813_v29 = vld [vmem:[%s4579_s1 + $0x10] sm:$0xff]  }
  0x70   : > { %3471 = vmatprep.subr.bf16.mxu0 %v3870_v1  ;;  %3484 = vmatpush3.bf16.msra.mxu1 %v3777_v33  ;;  %v3815_v33 = vld [vmem:[%s4579_s1 + $0x18] sm:$0xff]  }
  0x71   : > { %3485 = vmatprep.subr.bf16.mxu1 %v3870_v1 }
  0x73   : > { %3472 = vmatpush3.bf16.msra.mxu0 %v3776_v32  ;;  %v3814_v32 = vld [vmem:[%s4579_s1 + $0x38] sm:$0xff]  }
  0x74   : > { %3473 = vmatprep.subr.bf16.mxu0 %v3870_v1  ;;  %3486 = vmatpush3.bf16.msra.mxu1 %v3779_v38  ;;  %v3819_v38 = vld [vmem:[%s4579_s1 + $0x48] sm:$0xff]  }
  0x75   : > { %3503 = vmatprep.subr.bf16.mxu1 %v3870_v1 }
  0x77   : > { %3474 = vmatpush3.bf16.msra.mxu0 %v3778_v37  ;;  %3488 = vmatmul.mubr.msk.bf16.vlgmr.msra.gmra.mrb[24].mxu1 %vm227_vm1, %v3020_v27  ;;  %v1890_v27 = vshll.u32 %v3078_v24, 16  ;;  %v3825_v37 = vld [vmem:[%s3934_s29 + $0x30] sm:$0x1f]  }
  0x78   : > { %3491 = vmatprep.subr.bf16.mxu0 %v3870_v1  ;;  %3504 = vmatpush3.bf16.msra.mxu1 %v3782_v41  ;;  %v3821_v41 = vld [vmem:[%s4579_s1 + $0x50] sm:$0xff]   ;;  %v2122_v43 = vshrl.u32 %v3825_v37, 16 }
  0x79   : > { %3505 = vmatprep.subr.bf16.mxu1 %v3870_v1  ;;  %3511 = vmatprep.mubr.msk.bf16.mxu1 %vm3871_vm0, %v3870_v1  ;;  %v1892_v31 = vrot.slane %v1890_v27, 1 }
  0x7a   : > { %3476 = vmatmul.mubr.msk.bf16.vlgmr.msra.gmra.mrb[24].mxu0 %vm227_vm1, %v1219_v39  ;;  %v3820_v39 = vld [vmem:[%s4579_s1 + $0x68] sm:$0xff]  }
  0x7b   : > { %3492 = vmatpush3.bf16.msra.mxu0 %v3781_v40  ;;  %3499 = vmatprep.mubr.msk.bf16.mxu0 %vm3871_vm0, %v3870_v1  ;;  %v1893_v34 = vor.u32 %v1892_v31, %v1888_v30  ;;  %v2124_v40 = vshll.u32 %v3825_v37, 16  ;;  %v3848_v30 = vld [vmem:[%s4579_s1 + $0x30] sm:$0xff]   ;;  %v3851_v37 = vld [vmem:[%s4579_s1 + $0x18] sm:$0xff]  }
  0x7c   : > { %3493 = vmatprep.subr.bf16.mxu0 %v3870_v1  ;;  %3506 = vmatpush3.bf16.msra.mxu1 %v3784_v44  ;;  %v3849_v31 = vld [vmem:[%s4579_s1 + $0x10] sm:$0xff]  }
  0x7d   : > { %3507 = vmatprep.subr.bf16.mxu1 %v3870_v1  ;;  %v2126_v44 = vrot.slane %v2124_v40, 1  ;;  %v3854_v40 = vld [vmem:[%s4579_s1 + $0x60] sm:$0xff]  }
  0x7f   : > { %3494 = vmatpush3.bf16.msra.mxu0 %v3783_v42  ;;  %v3822_v42 = vld [vmem:[%s4579_s1 + $0x70] sm:$0xff]  }
  0x80   : > { %3495 = vmatprep.subr.bf16.mxu0 %v3870_v1  ;;  %3508 = vmatpush3.bf16.msra.mxu1 %v3786_v47  ;;  %v3089_v47 = vld [vmem:[%s3934_s29 + $0x30] sm:$0xf] }
  0x81   : > { %3509 = vmatprep.subr.bf16.mxu1 %v3870_v1 }
  0x83   : > { %3496 = vmatpush3.bf16.msra.mxu0 %v3785_v45  ;;  %v3823_v45 = vld [vmem:[%s4579_s1 + $0x58] sm:$0xff]  }
  0x84   : > { %3497 = vmatprep.subr.bf16.mxu0 %v3870_v1  ;;  %3510 = vmatpush3.bf16.msra.mxu1 %v3788_v51  ;;  %v3104_v51 = vld [vmem:[%s3934_s29 + $0x30] sm:$0xf] }
  0x85   : > { %3527 = vmatprep.subr.bf16.mxu1 %v3870_v1 }
  0x87   : > { %3498 = vmatpush3.bf16.msra.mxu0 %v3787_v48  ;;  %3512 = vmatmul.mubr.msk.bf16.vlgmr.msra.gmra.mrb[28].mxu1 %vm227_vm1, %v1453_v55  ;;  %v2127_v48 = vor.u32 %v2126_v44, %v2122_v43  ;;  %v3829_v55 = vld [vmem:[%s4579_s1 + $0x8] sm:$0xff]  }
  0x88   : > { %3515 = vmatprep.subr.bf16.mxu0 %v3870_v1  ;;  %3528 = vmatpush3.bf16.msra.mxu1 %v3791_v54  ;;  %v3828_v54 = vld [vmem:[%s4579_s1 + $0x28] sm:$0xff]  }
  0x89   : > { %3529 = vmatprep.subr.bf16.mxu1 %v3870_v1  ;;  %3535 = vmatprep.mubr.msk.bf16.mxu1 %vm3871_vm0, %v3870_v1  ;;  %v3856_v43 = vld [vmem:[%s4579_s1 + $0x68] sm:$0xff]  }
  0x8a   : > { %3500 = vmatmul.mubr.msk.bf16.vlgmr.msra.gmra.mrb[28].mxu0 %vm227_vm1, %v3033_v52  ;;  %v3105_v52 = vld [vmem:[%s3934_s29 + $0x34] sm:$0x1] }
  0x8b   : > { %3516 = vmatpush3.bf16.msra.mxu0 %v3790_v53  ;;  %3523 = vmatprep.mubr.msk.bf16.mxu0 %vm3871_vm0, %v3870_v1  ;;  %v3106_v53 = vcombine.low %v3104_v51, %v3105_v52 }
  0x8c   : > { %3517 = vmatprep.subr.bf16.mxu0 %v3870_v1  ;;  %3530 = vmatpush3.bf16.msra.mxu1 %v3793_v60 }
  0x8d   : > { %3531 = vmatprep.subr.bf16.mxu1 %v3870_v1  ;;  %v2225_v59 = vshrl.u32 %v3106_v53, 16 }
  0x8f   : > { %3518 = vmatpush3.bf16.msra.mxu0 %v3792_v58  ;;  %v3831_v58 = vld [vmem:[%s4579_s1 + $0x10] sm:$0xff]  }
  0x90   : > { %3519 = vmatprep.subr.bf16.mxu0 %v3870_v1  ;;  %3532 = vmatpush3.bf16.msra.mxu1 %v3795_v63 }
  0x91   : > { %3533 = vmatprep.subr.bf16.mxu1 %v3870_v1 }
  0x93   : > { %3520 = vmatpush3.bf16.msra.mxu0 %v3794_v61  ;;  %v3832_v61 = vld [vmem:[%s4579_s1 + $0x38] sm:$0xff]  }
  0x94   : > { %3521 = vmatprep.subr.bf16.mxu0 %v3870_v1  ;;  %3534 = vmatpush3.bf16.msra.mxu1 %v3797_v2  ;;  %v3836_v2 = vld [vmem:[%s4579_s1 + $0x60] sm:$0xff]  }
  0x95   : > { %3551 = vmatprep.subr.bf16.mxu1 %v3870_v1 }
  0x97   : > { %3522 = vmatpush3.bf16.msra.mxu0 %v3796_v0  ;;  %3536 = vmatmul.mubr.msk.bf16.vlgmr.msra.gmra.mrb[32].mxu1 %vm227_vm1, %v3048_v56  ;;  %v2227_v56 = vshll.u32 %v3106_v53, 16  ;;  %v3835_v0 = vld [vmem:[%s4579_s1 + $0x40] sm:$0xff]   ;;  %v3857_v53 = vld [vmem:[%s4579_s1 + $0x50] sm:$0xff]  }
  0x98   : > { %3539 = vmatprep.subr.bf16.mxu0 %v3870_v1  ;;  %3552 = vmatpush3.bf16.msra.mxu1 %v3800_v7  ;;  %v3839_v7 = vld [vmem:[%s4579_s1 + $0x50] sm:$0xff]  }
  0x99   : > { %3553 = vmatprep.subr.bf16.mxu1 %v3870_v1  ;;  %3559 = vmatprep.mubr.msk.bf16.mxu1 %vm3871_vm0, %v3870_v1  ;;  %v2229_v60 = vrot.slane %v2227_v56, 1 }
  0x9a   : > { %3524 = vmatmul.mubr.msk.bf16.vlgmr.msra.gmra.mrb[32].mxu0 %vm227_vm1, %v1556_v5  ;;  %v3838_v5 = vld [vmem:[%s4579_s1 + $0x68] sm:$0xff]  }
  0x9b   : > { %3540 = vmatpush3.bf16.msra.mxu0 %v3799_v6  ;;  %3547 = vmatprep.mubr.msk.bf16.mxu0 %vm3871_vm0, %v3870_v1  ;;  %v2230_v63 = vor.u32 %v2229_v60, %v2225_v59  ;;  %v2461_v6 = vshll.u32 %v3843_v3, 16 }
  0x9c   : > { %3541 = vmatprep.subr.bf16.mxu0 %v3870_v1  ;;  %3554 = vmatpush3.bf16.msra.mxu1 %v3802_v10 }
  0x9d   : > { %3555 = vmatprep.subr.bf16.mxu1 %v3870_v1  ;;  %v2463_v10 = vrot.slane %v2461_v6, 1 }
  0x9f   : > { %3542 = vmatpush3.bf16.msra.mxu0 %v3801_v9  ;;  %v2459_v9 = vshrl.u32 %v3843_v3, 16  ;;  %v3145_v3 = vld [vmem:[%s3934_s29 + $0x40] sm:$0xf] }
  0xa0   : > { %3543 = vmatprep.subr.bf16.mxu0 %v3870_v1  ;;  %3556 = vmatpush3.bf16.msra.mxu1 %v3804_v13  ;;  %v3117_v13 = vld [vmem:[%s3934_s29 + $0x38] sm:$0xf] }
  0xa1   : > { %3557 = vmatprep.subr.bf16.mxu1 %v3870_v1  ;;  %v2464_v14 = vor.u32 %v2463_v10, %v2459_v9 }
  0xa3   : > { %3544 = vmatpush3.bf16.msra.mxu0 %v3803_v12  ;;  %v3842_v12 = vld [vmem:[%s4579_s1 + $0x78] sm:$0xff]  }
  0xa4   : > { %3545 = vmatprep.subr.bf16.mxu0 %v3870_v1  ;;  %3558 = vmatpush3.bf16.msra.mxu1 %v3806_v17  ;;  %v3132_v17 = vld [vmem:[%s3934_s29 + $0x38] sm:$0xf] }
  0xa5   : > { %3575 = vmatprep.subr.bf16.mxu1 %v3870_v1 }
  0xa7   : > { %3546 = vmatpush3.bf16.msra.mxu0 %v3805_v16  ;;  %3560 = vmatmul.mubr.msk.bf16.vlgmr.msra.gmra.mrb[36].mxu1 %vm227_vm1, %v1790_v19  ;;  %v3845_v16 = vld [vmem:[%s4579_s1] sm:$0xff]  }
  0xa8   : > { %3563 = vmatprep.subr.bf16.mxu0 %v3870_v1  ;;  %3576 = vmatpush3.bf16.msra.mxu1 %v3809_v21  ;;  %v3847_v21 = vld [vmem:[%s4579_s1 + $0x8] sm:$0xff]  }
  0xa9   : > { %3577 = vmatprep.subr.bf16.mxu1 %v3870_v1  ;;  %3583 = vmatprep.mubr.msk.bf16.mxu1 %vm3871_vm0, %v3870_v1 }
  0xaa   : > { %3548 = vmatmul.mubr.msk.bf16.vlgmr.msra.gmra.mrb[36].mxu0 %vm227_vm1, %v3061_v18  ;;  %v3133_v18 = vld [vmem:[%s3934_s29 + $0x3c] sm:$0x1] }
  0xab   : > { %3564 = vmatpush3.bf16.msra.mxu0 %v3808_v20  ;;  %3571 = vmatprep.mubr.msk.bf16.mxu0 %vm3871_vm0, %v3870_v1  ;;  %v3134_v19 = vcombine.low %v3132_v17, %v3133_v18  ;;  %v3846_v20 = vld [vmem:[%s4579_s1 + $0x28] sm:$0xff]  }
  0xac   : > { %3565 = vmatprep.subr.bf16.mxu0 %v3870_v1  ;;  %3578 = vmatpush3.bf16.msra.mxu1 %v3811_v26 }
  0xad   : > { %3579 = vmatprep.subr.bf16.mxu1 %v3870_v1  ;;  %v2564_v27 = vshll.u32 %v3134_v19, 16 }
  0xaf   : > { %3566 = vmatpush3.bf16.msra.mxu0 %v3810_v25 }
  0xb0   : > { %3567 = vmatprep.subr.bf16.mxu0 %v3870_v1  ;;  %3580 = vmatpush3.bf16.msra.mxu1 %v3813_v29 }
  0xb1   : > { %3581 = vmatprep.subr.bf16.mxu1 %v3870_v1 }
  0xb3   : > { %3568 = vmatpush3.bf16.msra.mxu0 %v3812_v28 }
  0xb4   : > { %3569 = vmatprep.subr.bf16.mxu0 %v3870_v1  ;;  %3582 = vmatpush3.bf16.msra.mxu1 %v3815_v33 }
  0xb5   : > { %3599 = vmatprep.subr.bf16.mxu1 %v3870_v1 }
  0xb7   : > { %3570 = vmatpush3.bf16.msra.mxu0 %v3814_v32  ;;  %3584 = vmatmul.mubr.msk.bf16.vlgmr.msra.gmra.mrb[40].mxu1 %vm227_vm1, %v3076_v22 }
  0xb8   : > { %3587 = vmatprep.subr.bf16.mxu0 %v3870_v1  ;;  %3600 = vmatpush3.bf16.msra.mxu1 %v3818_v36  ;;  %v3850_v36 = vld [vmem:[%s4579_s1 + $0x38] sm:$0xff]  }
  0xb9   : > { %3601 = vmatprep.subr.bf16.mxu1 %v3870_v1  ;;  %3607 = vmatprep.mubr.msk.bf16.mxu1 %vm3871_vm0, %v3870_v1 }
  0xba   : > { %3572 = vmatmul.mubr.msk.bf16.vlgmr.msra.gmra.mrb[40].mxu0 %vm227_vm1, %v1893_v34  ;;  %v2562_v34 = vshrl.u32 %v3134_v19, 16 }
  0xbb   : > { %3588 = vmatpush3.bf16.msra.mxu0 %v3817_v35  ;;  %3595 = vmatprep.mubr.msk.bf16.mxu0 %vm3871_vm0, %v3870_v1  ;;  %v2566_v35 = vrot.slane %v2564_v27, 1 }
  0xbc   : > { %3589 = vmatprep.subr.bf16.mxu0 %v3870_v1  ;;  %3602 = vmatpush3.bf16.msra.mxu1 %v3820_v39  ;;  %v3853_v39 = vld [vmem:[%s4579_s1 + $0x40] sm:$0xff]  }
  0xbd   : > { %3603 = vmatprep.subr.bf16.mxu1 %v3870_v1 }
  0xbf   : > { %3590 = vmatpush3.bf16.msra.mxu0 %v3819_v38  ;;  %v2567_v38 = vor.u32 %v2566_v35, %v2562_v34 }
  0xc0   : > { %3591 = vmatprep.subr.bf16.mxu0 %v3870_v1  ;;  %3604 = vmatpush3.bf16.msra.mxu1 %v3822_v42  ;;  %v3855_v42 = vld [vmem:[%s4579_s1 + $0x48] sm:$0xff]  }
  0xc1   : > { %3605 = vmatprep.subr.bf16.mxu1 %v3870_v1 }
  0xc3   : > { %3592 = vmatpush3.bf16.msra.mxu0 %v3821_v41  ;;  %v3861_v41 = vld [vmem:[%s3934_s29 + $0x40] sm:$0x1f]  }
  0xc4   : > { %3593 = vmatprep.subr.bf16.mxu0 %v3870_v1  ;;  %3606 = vmatpush3.bf16.msra.mxu1 %v3824_v46  ;;  %v2796_v59 = vshrl.u32 %v3861_v41, 16 }
  0xc5   : > { %3623 = vmatprep.subr.bf16.mxu1 %v3870_v1 }
  0xc7   : > { %3594 = vmatpush3.bf16.msra.mxu0 %v3823_v45  ;;  %3608 = vmatmul.mubr.msk.bf16.vlgmr.msra.gmra.mrb[44].mxu1 %vm227_vm1, %v2127_v48 }
  0xc8   : > { %3611 = vmatprep.subr.bf16.mxu0 %v3870_v1  ;;  %3624 = vmatpush3.bf16.msra.mxu1 %v3827_v50  ;;  %v4532_v50 = vld [vmem:[%s4580_s2] ss:$0 sm:$0xff] }
  0xc9   : > { %3625 = vmatprep.subr.bf16.mxu1 %v3870_v1  ;;  %3631 = vmatprep.mubr.msk.bf16.mxu1 %vm3871_vm0, %v3870_v1 }
  0xca   : > { %3596 = vmatmul.mubr.msk.bf16.vlgmr.msra.gmra.mrb[44].mxu0 %vm227_vm1, %v3089_v47 }
  0xcb   : > { %3612 = vmatpush3.bf16.msra.mxu0 %v3826_v49  ;;  %3619 = vmatprep.mubr.msk.bf16.mxu0 %vm3871_vm0, %v3870_v1  ;;  %v2798_v49 = vshll.u32 %v3861_v41, 16 }
  0xcc   : > { %3613 = vmatprep.subr.bf16.mxu0 %v3870_v1  ;;  %3626 = vmatpush3.bf16.msra.mxu1 %v3829_v55 }
  0xcd   : > { %3627 = vmatprep.subr.bf16.mxu1 %v3870_v1  ;;  %v2800_v60 = vrot.slane %v2798_v49, 1 }
  0xcf   : > { %3614 = vmatpush3.bf16.msra.mxu0 %v3828_v54  ;;  %v3858_v54 = vld [vmem:[%s4579_s1 + $0x70] sm:$0xff]  }
  0xd0   : > { %3615 = vmatprep.subr.bf16.mxu0 %v3870_v1  ;;  %3628 = vmatpush3.bf16.msra.mxu1 %v3831_v58 }
  0xd1   : > { %3629 = vmatprep.subr.bf16.mxu1 %v3870_v1 }
  0xd3   : > { %3616 = vmatpush3.bf16.msra.mxu0 %v3830_v57 }
  0xd4   : > { %3617 = vmatprep.subr.bf16.mxu0 %v3870_v1  ;;  %3630 = vmatpush3.bf16.msra.mxu1 %v3833_v62  ;;  %v3860_v62 = vld [vmem:[%s4579_s1 + $0x78] sm:$0xff]  }
  0xd5   : > { %3647 = vmatprep.subr.bf16.mxu1 %v3870_v1 }
  0xd7   : > { %3618 = vmatpush3.bf16.msra.mxu0 %v3832_v61  ;;  %3632 = vmatmul.mubr.msk.bf16.vlgmr.msra.gmra.mrb[48].mxu1 %vm227_vm1, %v3104_v51  ;;  %v3859_v61 = vld [vmem:[%s4579_s1 + $0x58] sm:$0xff]  }
  0xd8   : > { %3635 = vmatprep.subr.bf16.mxu0 %v3870_v1  ;;  %3648 = vmatpush3.bf16.msra.mxu1 %v3836_v2  ;;  %v2801_v2 = vor.u32 %v2800_v60, %v2796_v59 }
  0xd9   : > { %3649 = vmatprep.subr.bf16.mxu1 %v3870_v1  ;;  %3655 = vmatprep.mubr.msk.bf16.mxu1 %vm3871_vm0, %v3870_v1 }
  0xda   : > { %3620 = vmatmul.mubr.msk.bf16.vlgmr.msra.gmra.mrb[48].mxu0 %vm227_vm1, %v2230_v63 }
  0xdb   : > { %3636 = vmatpush3.bf16.msra.mxu0 %v3835_v0  ;;  %3643 = vmatprep.mubr.msk.bf16.mxu0 %vm3871_vm0, %v3870_v1 }
  0xdc   : > { %3637 = vmatprep.subr.bf16.mxu0 %v3870_v1  ;;  %3650 = vmatpush3.bf16.msra.mxu1 %v3838_v5 }
  0xdd   : > { %3651 = vmatprep.subr.bf16.mxu1 %v3870_v1 }
  0xdf   : > { %3638 = vmatpush3.bf16.msra.mxu0 %v3837_v4 }
  0xe0   : > { %3639 = vmatprep.subr.bf16.mxu0 %v3870_v1  ;;  %3652 = vmatpush3.bf16.msra.mxu1 %v3840_v8 }
  0xe1   : > { %3653 = vmatprep.subr.bf16.mxu1 %v3870_v1 }
  0xe3   : > { %3640 = vmatpush3.bf16.msra.mxu0 %v3839_v7 }
  0xe4   : > { %3641 = vmatprep.subr.bf16.mxu0 %v3870_v1  ;;  %3654 = vmatpush3.bf16.msra.mxu1 %v3842_v12 }
  0xe5   : > { %3671 = vmatprep.subr.bf16.mxu1 %v3870_v1 }
  0xe7   : > { %3642 = vmatpush3.bf16.msra.mxu0 %v3841_v11  ;;  %3656 = vmatmul.mubr.msk.bf16.vlgmr.msra.gmra.mrb[52].mxu1 %vm227_vm1, %v2464_v14 }
  0xe8   : > { %3659 = vmatprep.subr.bf16.mxu0 %v3870_v1  ;;  %3672 = vmatpush3.bf16.msra.mxu1 %v3845_v16 }
  0xe9   : > { %3673 = vmatprep.subr.bf16.mxu1 %v3870_v1  ;;  %3679 = vmatprep.mubr.msk.bf16.mxu1 %vm3871_vm0, %v3870_v1 }
  0xea   : > { %3644 = vmatmul.mubr.msk.bf16.vlgmr.msra.gmra.mrb[52].mxu0 %vm227_vm1, %v3117_v13  ;;  %v332_v23 = vpop.f32.mrb[0].mxu1 }
  0xeb   : > { %3660 = vmatpush3.bf16.msra.mxu0 %v3844_v15  ;;  %3667 = vmatprep.mubr.msk.bf16.mxu0 %vm3871_vm0, %v3870_v1  ;;  %v3345_v26 = vpop.f32.mrb[1].mxu1 }
  0xec   : > { %3661 = vmatprep.subr.bf16.mxu0 %v3870_v1  ;;  %v335_v29 = vpop.f32.mrb[2].mxu1  ;;  %3674 = vmatpush3.bf16.msra.mxu1 %v3847_v21 }
  0xed   : > { %v265_v22 = vpop.f32.mrb[0].mxu0  ;;  %v3346_v33 = vpop.f32.mrb[3].mxu1  ;;  %3675 = vmatprep.subr.bf16.mxu1 %v3870_v1 }
  0xee   : > { %v333_v24 = vadd.f32 %v332_v23, %v265_v22  ;;  %v3333_v25 = vpop.f32.mrb[1].mxu0 }
  0xef   : > { %v268_v28 = vpop.f32.mrb[2].mxu0  ;;  %3662 = vmatpush3.bf16.msra.mxu0 %v3846_v20 }
  0xf0   : > { %v3334_v32 = vpop.f32.mrb[3].mxu0  ;;  %3663 = vmatprep.subr.bf16.mxu0 %v3870_v1  ;;  %3676 = vmatpush3.bf16.msra.mxu1 %v3849_v31 }
  0xf1   : > { %3677 = vmatprep.subr.bf16.mxu1 %v3870_v1 }
  0xf3   : > { %3664 = vmatpush3.bf16.msra.mxu0 %v3848_v30 }
  0xf4   : > { %3665 = vmatprep.subr.bf16.mxu0 %v3870_v1  ;;  %3678 = vmatpush3.bf16.msra.mxu1 %v3851_v37 }
  0xf5   : > { %3695 = vmatprep.subr.bf16.mxu1 %v3870_v1 }
  0xf7   : > { %3666 = vmatpush3.bf16.msra.mxu0 %v3850_v36  ;;  %3680 = vmatmul.mubr.msk.bf16.vlgmr.msra.gmra.mrb[56].mxu1 %vm227_vm1, %v3132_v17 }
  0xf8   : > { %3683 = vmatprep.subr.bf16.mxu0 %v3870_v1  ;;  %3696 = vmatpush3.bf16.msra.mxu1 %v3854_v40 }
  0xf9   : > { %3697 = vmatprep.subr.bf16.mxu1 %v3870_v1  ;;  %3703 = vmatprep.mubr.msk.bf16.mxu1 %vm3871_vm0, %v3870_v1 }
  0xfa   : > { %3668 = vmatmul.mubr.msk.bf16.vlgmr.msra.gmra.mrb[56].mxu0 %vm227_vm1, %v2567_v38  ;;  %v499_v45 = vpop.f32.mrb[4].mxu1 }
  0xfb   : > { %3684 = vmatpush3.bf16.msra.mxu0 %v3853_v39  ;;  %3691 = vmatprep.mubr.msk.bf16.mxu0 %vm3871_vm0, %v3870_v1  ;;  %v3369_v48 = vpop.f32.mrb[5].mxu1 }
  0xfc   : > { %3685 = vmatprep.subr.bf16.mxu0 %v3870_v1  ;;  %v502_v52 = vpop.f32.mrb[6].mxu1  ;;  %3698 = vmatpush3.bf16.msra.mxu1 %v3856_v43 }
  0xfd   : > { %v409_v44 = vpop.f32.mrb[4].mxu0  ;;  %v3370_v57 = vpop.f32.mrb[7].mxu1  ;;  %3699 = vmatprep.subr.bf16.mxu1 %v3870_v1 }
  0xfe   : > { %v415_v46 = vadd.f32 %v409_v44, %v333_v24  ;;  %v3357_v47 = vpop.f32.mrb[5].mxu0 }
  0xff   : > { %v412_v51 = vpop.f32.mrb[6].mxu0  ;;  %3686 = vmatpush3.bf16.msra.mxu0 %v3855_v42 }
 0x100   : > { %v505_v55 = vadd.f32 %v499_v45, %v415_v46  ;;  %v3358_v56 = vpop.f32.mrb[7].mxu0  ;;  %3687 = vmatprep.subr.bf16.mxu0 %v3870_v1  ;;  %3700 = vmatpush3.bf16.msra.mxu1 %v3858_v54 }
 0x101   : > { %3701 = vmatprep.subr.bf16.mxu1 %v3870_v1 }
 0x102   : > { %v512_v58 = vadd.f32 %v4532_v50, %v505_v55 }
 0x103   : > { %3688 = vmatpush3.bf16.msra.mxu0 %v3857_v53 }
 0x104   : > { %v513_v63 = vmax.f32 %v512_v58, 0.0  ;;  %3689 = vmatprep.subr.bf16.mxu0 %v3870_v1  ;;  %3702 = vmatpush3.bf16.msra.mxu1 %v3860_v62 }
 0x106   : > { %v514_v0 = vpack.c.bf16 %v513_v63, %v513_v63 }
 0x107   : > { %3690 = vmatpush3.bf16.msra.mxu0 %v3859_v61  ;;  %3704 = vmatmul.mubr.msk.bf16.vlgmr.msra.gmra.mrb[60].mxu1 %vm227_vm1, %v2801_v2 }
 0x108   : > { %515 = vst [vmem:[%s4555_s11] sm:$0xf] %v514_v0 }
 0x10a   : > { %3692 = vmatmul.mubr.msk.bf16.vlgmr.msra.gmra.mrb[60].mxu0 %vm227_vm1, %v3145_v3  ;;  %v674_v5 = vpop.f32.mrb[8].mxu1 }
 0x10b   : > { %v3393_v7 = vpop.f32.mrb[9].mxu1 }
 0x10c   : > { %v677_v9 = vpop.f32.mrb[10].mxu1 }
 0x10d   : > { %v607_v4 = vpop.f32.mrb[8].mxu0  ;;  %v3394_v11 = vpop.f32.mrb[11].mxu1 }
 0x10e   : > { %v675_v6 = vadd.f32 %v674_v5, %v607_v4  ;;  %v3381_v1 = vpop.f32.mrb[9].mxu0 }
 0x10f   : > { %v610_v8 = vpop.f32.mrb[10].mxu0 }
 0x110   : > { %v3382_v10 = vpop.f32.mrb[11].mxu0 }
 0x11a   : > { %v841_v13 = vpop.f32.mrb[12].mxu1 }
 0x11b   : > { %v3417_v16 = vpop.f32.mrb[13].mxu1 }
 0x11c   : > { %v844_v18 = vpop.f32.mrb[14].mxu1 }
 0x11d   : > { %v751_v12 = vpop.f32.mrb[12].mxu0  ;;  %v3418_v21 = vpop.f32.mrb[15].mxu1 }
 0x11e   : > { %v757_v14 = vadd.f32 %v751_v12, %v675_v6  ;;  %v3405_v15 = vpop.f32.mrb[13].mxu0 }
 0x11f   : > { %v754_v17 = vpop.f32.mrb[14].mxu0 }
 0x120   : > { %v847_v19 = vadd.f32 %v841_v13, %v757_v14  ;;  %v3406_v20 = vpop.f32.mrb[15].mxu0 }
 0x122   : > { %v848_v22 = vadd.f32 %v4532_v50, %v847_v19 }
 0x124   : > { %v849_v23 = vmax.f32 %v848_v22, 0.0 }
 0x126   : > { %v850_v24 = vpack.c.bf16 %v849_v23, %v849_v23 }
 0x128   : > { %2991 = vst [vmem:[%s4555_s11 + $0x4] sm:$0xf] %v850_v24 }
 0x12a   : > { %v1011_v26 = vpop.f32.mrb[16].mxu1 }
 0x12b   : > { %v3441_v29 = vpop.f32.mrb[17].mxu1 }
 0x12c   : > { %v1014_v31 = vpop.f32.mrb[18].mxu1 }
 0x12d   : > { %v944_v25 = vpop.f32.mrb[16].mxu0  ;;  %v3442_v33 = vpop.f32.mrb[19].mxu1 }
 0x12e   : > { %v1012_v27 = vadd.f32 %v1011_v26, %v944_v25  ;;  %v3429_v28 = vpop.f32.mrb[17].mxu0 }
 0x12f   : > { %v947_v30 = vpop.f32.mrb[18].mxu0 }
 0x130   : > { %v3430_v32 = vpop.f32.mrb[19].mxu0 }
 0x13a   : > { %v1178_v35 = vpop.f32.mrb[20].mxu1 }
 0x13b   : > { %v3465_v38 = vpop.f32.mrb[21].mxu1 }
 0x13c   : > { %v1181_v40 = vpop.f32.mrb[22].mxu1 }
 0x13d   : > { %v1088_v34 = vpop.f32.mrb[20].mxu0  ;;  %v3466_v43 = vpop.f32.mrb[23].mxu1 }
 0x13e   : > { %v1094_v36 = vadd.f32 %v1088_v34, %v1012_v27  ;;  %v3453_v37 = vpop.f32.mrb[21].mxu0 }
 0x13f   : > { %v1091_v39 = vpop.f32.mrb[22].mxu0 }
 0x140   : > { %v1184_v41 = vadd.f32 %v1178_v35, %v1094_v36  ;;  %v3454_v42 = vpop.f32.mrb[23].mxu0 }
 0x142   : > { %v1185_v44 = vadd.f32 %v4532_v50, %v1184_v41 }
 0x144   : > { %v1186_v45 = vmax.f32 %v1185_v44, 0.0 }
 0x146   : > { %v1187_v46 = vpack.c.bf16 %v1186_v45, %v1186_v45 }
 0x148   : > { %3019 = vst [vmem:[%s4555_s11 + $0x8] sm:$0xf] %v1187_v46 }
 0x14a   : > { %v1348_v48 = vpop.f32.mrb[24].mxu1 }
 0x14b   : > { %v3489_v52 = vpop.f32.mrb[25].mxu1 }
 0x14c   : > { %v1351_v54 = vpop.f32.mrb[26].mxu1 }
 0x14d   : > { %v1281_v47 = vpop.f32.mrb[24].mxu0  ;;  %v3490_v56 = vpop.f32.mrb[27].mxu1 }
 0x14e   : > { %v1349_v49 = vadd.f32 %v1348_v48, %v1281_v47  ;;  %v3477_v51 = vpop.f32.mrb[25].mxu0 }
 0x14f   : > { %v1284_v53 = vpop.f32.mrb[26].mxu0 }
 0x150   : > { %v3478_v55 = vpop.f32.mrb[27].mxu0 }
 0x15a   : > { %v1515_v58 = vpop.f32.mrb[28].mxu1 }
 0x15b   : > { %v3513_v61 = vpop.f32.mrb[29].mxu1 }
 0x15c   : > { %v1518_v63 = vpop.f32.mrb[30].mxu1 }
 0x15d   : > { %v1425_v57 = vpop.f32.mrb[28].mxu0  ;;  %v3514_v3 = vpop.f32.mrb[31].mxu1 }
 0x15e   : > { %v1431_v59 = vadd.f32 %v1425_v57, %v1349_v49  ;;  %v3501_v60 = vpop.f32.mrb[29].mxu0 }
 0x15f   : > { %v1428_v62 = vpop.f32.mrb[30].mxu0 }
 0x160   : > { %v1521_v0 = vadd.f32 %v1515_v58, %v1431_v59  ;;  %v3502_v2 = vpop.f32.mrb[31].mxu0 }
 0x162   : > { %v1522_v4 = vadd.f32 %v4532_v50, %v1521_v0 }
 0x164   : > { %v1523_v5 = vmax.f32 %v1522_v4, 0.0 }
 0x166   : > { %v1524_v6 = vpack.c.bf16 %v1523_v5, %v1523_v5 }
 0x168   : > { %3047 = vst [vmem:[%s4555_s11 + $0xc] sm:$0xf] %v1524_v6 }
 0x16a   : > { %v1685_v7 = vpop.f32.mrb[32].mxu1 }
 0x16b   : > { %v3537_v10 = vpop.f32.mrb[33].mxu1 }
 0x16c   : > { %v1688_v12 = vpop.f32.mrb[34].mxu1 }
 0x16d   : > { %v1618_v1 = vpop.f32.mrb[32].mxu0  ;;  %v3538_v14 = vpop.f32.mrb[35].mxu1 }
 0x16e   : > { %v1686_v8 = vadd.f32 %v1685_v7, %v1618_v1  ;;  %v3525_v9 = vpop.f32.mrb[33].mxu0 }
 0x16f   : > { %v1621_v11 = vpop.f32.mrb[34].mxu0 }
 0x170   : > { %v3526_v13 = vpop.f32.mrb[35].mxu0 }
 0x17a   : > { %v1852_v16 = vpop.f32.mrb[36].mxu1 }
 0x17b   : > { %v3561_v19 = vpop.f32.mrb[37].mxu1 }
 0x17c   : > { %v1855_v21 = vpop.f32.mrb[38].mxu1 }
 0x17d   : > { %v1762_v15 = vpop.f32.mrb[36].mxu0  ;;  %v3562_v24 = vpop.f32.mrb[39].mxu1 }
 0x17e   : > { %v1768_v17 = vadd.f32 %v1762_v15, %v1686_v8  ;;  %v3549_v18 = vpop.f32.mrb[37].mxu0 }
 0x17f   : > { %v1765_v20 = vpop.f32.mrb[38].mxu0 }
 0x180   : > { %v1858_v22 = vadd.f32 %v1852_v16, %v1768_v17  ;;  %v3550_v23 = vpop.f32.mrb[39].mxu0 }
 0x182   : > { %v1859_v25 = vadd.f32 %v4532_v50, %v1858_v22 }
 0x184   : > { %v1860_v26 = vmax.f32 %v1859_v25, 0.0 }
 0x186   : > { %v1861_v27 = vpack.c.bf16 %v1860_v26, %v1860_v26 }
 0x188   : > { %3075 = vst [vmem:[%s4555_s11 + $0x10] sm:$0xf] %v1861_v27 }
 0x18a   : > { %v2022_v29 = vpop.f32.mrb[40].mxu1 }
 0x18b   : > { %v3585_v32 = vpop.f32.mrb[41].mxu1 }
 0x18c   : > { %v2025_v34 = vpop.f32.mrb[42].mxu1 }
 0x18d   : > { %v1955_v28 = vpop.f32.mrb[40].mxu0  ;;  %v3586_v36 = vpop.f32.mrb[43].mxu1 }
 0x18e   : > { %v2023_v30 = vadd.f32 %v2022_v29, %v1955_v28  ;;  %v3573_v31 = vpop.f32.mrb[41].mxu0 }
 0x18f   : > { %v1958_v33 = vpop.f32.mrb[42].mxu0 }
 0x190   : > { %v3574_v35 = vpop.f32.mrb[43].mxu0 }
 0x19a   : > { %v2189_v38 = vpop.f32.mrb[44].mxu1 }
 0x19b   : > { %v3609_v41 = vpop.f32.mrb[45].mxu1 }
 0x19c   : > { %v2192_v43 = vpop.f32.mrb[46].mxu1 }
 0x19d   : > { %v2099_v37 = vpop.f32.mrb[44].mxu0  ;;  %v3610_v46 = vpop.f32.mrb[47].mxu1 }
 0x19e   : > { %v2105_v39 = vadd.f32 %v2099_v37, %v2023_v30  ;;  %v3597_v40 = vpop.f32.mrb[45].mxu0 }
 0x19f   : > { %v2102_v42 = vpop.f32.mrb[46].mxu0 }
 0x1a0   : > { %v2195_v44 = vadd.f32 %v2189_v38, %v2105_v39  ;;  %v3598_v45 = vpop.f32.mrb[47].mxu0 }
 0x1a2   : > { %v2196_v47 = vadd.f32 %v4532_v50, %v2195_v44 }
 0x1a4   : > { %v2197_v48 = vmax.f32 %v2196_v47, 0.0 }
 0x1a6   : > { %v2198_v49 = vpack.c.bf16 %v2197_v48, %v2197_v48 }
 0x1a8   : > { %3103 = vst [vmem:[%s4555_s11 + $0x14] sm:$0xf] %v2198_v49 }
 0x1aa   : > { %v2359_v52 = vpop.f32.mrb[48].mxu1 }
 0x1ab   : > { %v3633_v55 = vpop.f32.mrb[49].mxu1 }
 0x1ac   : > { %v2362_v57 = vpop.f32.mrb[50].mxu1 }
 0x1ad   : > { %v2292_v51 = vpop.f32.mrb[48].mxu0  ;;  %v3634_v59 = vpop.f32.mrb[51].mxu1 }
 0x1ae   : > { %v2360_v53 = vadd.f32 %v2359_v52, %v2292_v51  ;;  %v3621_v54 = vpop.f32.mrb[49].mxu0 }
 0x1af   : > { %v2295_v56 = vpop.f32.mrb[50].mxu0 }
 0x1b0   : > { %v3622_v58 = vpop.f32.mrb[51].mxu0 }
 0x1ba   : > { %v2526_v61 = vpop.f32.mrb[52].mxu1 }
 0x1bb   : > { %v3657_v0 = vpop.f32.mrb[53].mxu1 }
 0x1bc   : > { %v2529_v3 = vpop.f32.mrb[54].mxu1 }
 0x1bd   : > { %v2436_v60 = vpop.f32.mrb[52].mxu0  ;;  %v3658_v6 = vpop.f32.mrb[55].mxu1 }
 0x1be   : > { %v2442_v62 = vadd.f32 %v2436_v60, %v2360_v53  ;;  %v3645_v63 = vpop.f32.mrb[53].mxu0 }
 0x1bf   : > { %v2439_v2 = vpop.f32.mrb[54].mxu0 }
 0x1c0   : > { %v2532_v4 = vadd.f32 %v2526_v61, %v2442_v62  ;;  %v3646_v5 = vpop.f32.mrb[55].mxu0 }
 0x1c2   : > { %v2533_v1 = vadd.f32 %v4532_v50, %v2532_v4 }
 0x1c4   : > { %v2534_v7 = vmax.f32 %v2533_v1, 0.0 }
 0x1c6   : > { %v2535_v8 = vpack.c.bf16 %v2534_v7, %v2534_v7 }
 0x1c8   : > { %3131 = vst [vmem:[%s4555_s11 + $0x18] sm:$0xf] %v2535_v8 }
 0x1ca   : > { %v2696_v10 = vpop.f32.mrb[56].mxu1 }
 0x1cb   : > { %v3681_v13 = vpop.f32.mrb[57].mxu1 }
 0x1cc   : > { %v2699_v15 = vpop.f32.mrb[58].mxu1 }
 0x1cd   : > { %v2629_v9 = vpop.f32.mrb[56].mxu0  ;;  %v3682_v17 = vpop.f32.mrb[59].mxu1 }
 0x1ce   : > { %v2697_v11 = vadd.f32 %v2696_v10, %v2629_v9  ;;  %v3669_v12 = vpop.f32.mrb[57].mxu0 }
 0x1cf   : > { %v2632_v14 = vpop.f32.mrb[58].mxu0 }
 0x1d0   : > { %v3670_v16 = vpop.f32.mrb[59].mxu0 }
 0x1da   : > { %v2863_v19 = vpop.f32.mrb[60].mxu1 }
 0x1db   : > { %v3705_v22 = vpop.f32.mrb[61].mxu1 }
 0x1dc   : > { %v2866_v24 = vpop.f32.mrb[62].mxu1 }
 0x1dd   : > { %v2773_v18 = vpop.f32.mrb[60].mxu0  ;;  %v3706_v27 = vpop.f32.mrb[63].mxu1 }
 0x1de   : > { %v2779_v20 = vadd.f32 %v2773_v18, %v2697_v11  ;;  %v3693_v21 = vpop.f32.mrb[61].mxu0 }
 0x1df   : > { %v2776_v23 = vpop.f32.mrb[62].mxu0 }
 0x1e0   : > { %v2869_v25 = vadd.f32 %v2863_v19, %v2779_v20  ;;  %v3694_v26 = vpop.f32.mrb[63].mxu0 }
 0x1e2   : > { %v2870_v28 = vadd.f32 %v4532_v50, %v2869_v25 }
 0x1e4   : > { %v2871_v29 = vmax.f32 %v2870_v28, 0.0 }
 0x1e6   : > { %v2872_v30 = vpack.c.bf16 %v2871_v29, %v2871_v29 }
 0x1e8   : > { %3159 = vst [vmem:[%s4555_s11 + $0x1c] sm:$0xf] %v2872_v30 }
 0x1e9 PF: > { %s13_s12 = sadd.s32 1, %s3868_s12  }
 0x1ea   : > { %p10_p4 = scmp.ge.s32.totalorder %s13_s12, 4  }
 0x1ec   :  { %12 = sbr.rel (!%p10_p4) target bundleno = 1 (0x1), region = 77 }

// kernel: _lambda_.6
= control target key start
LH: loop header
LB: loop body
LE: loop exit
PB: predicated region body
PF: predicated region fallthrough
CT: control target
= control target key end

     0   :  { %s1705_s12 = smov 0   ;;  %s2059_s0 = inlined_call_operand.vmem [shape: bf16[2,3,3,128], index: 0, kind: input, shape index: {}]   ;;  %s2060_s1 = inlined_call_operand.vmem [shape: bf16[1152,128], index: 1, kind: input, shape index: {}]   ;;  %s2061_s2 = inlined_call_operand.vmem [shape: f32[1,128], index: 2, kind: input, shape index: {}]   ;;  %s2062_s3 = inlined_call_operand.vmem [shape: bf16[2,1,1,128], index: 3, kind: output, shape index: {}]  }
   0x1 LB: > { %s1242_s13 = sadd.s32 4294967295, %s1680_s12   ;;  %p1246_p0 = scmp.ge.s32.totalorder %s1680_s12, 1  ;;  %s1680_s12 = sphi %s1705_s12, %s13_s12  }
   0x2   : > { %p137_p1 = scmp.lt.s32.totalorder %s1680_s12, 3 }
   0x4   : > { %p138_p2 = pnand %p1246_p0, %p137_p1 }
   0x5   : > { %v1602_v0 = vld [vmem:[%s2060_s1 + $0x40] sm:$0xff] (!%p138_p2)   ;;  %v1682_v1 = vmov (!%p138_p2), 0.0   ;;  %v1604_v3 = vld [vmem:[%s2060_s1 + $0x48] sm:$0xff] (!%p138_p2)   ;;  %vm1683_vm0 = vmmov (!%p138_p2), 0   ;;  %v1606_v5 = vld [vmem:[%s2060_s1 + $0x50] sm:$0xff] (!%p138_p2)   ;;  %p159_p3 = scmp.lt.s32.totalorder (!%p138_p2), %s1242_s13, 1  ;;  %v206_v9 = vlaneseq (!%p138_p2) }
   0x6   : > { %141 = sbr.rel (%p138_p2) target bundleno = 388 (0x184), region = 32  ;;  %1410 = vmatprep.subr.bf16.mxu0 (!%p138_p2), %v1682_v1  ;;  %1430 = vmatprep.subr.bf16.mxu1 (!%p138_p2), %v1682_v1  ;;  %v1603_v2 = vld [vmem:[%s2060_s1] sm:$0xff] (!%p138_p2)   ;;  %v1605_v4 = vld [vmem:[%s2060_s1 + $0x8] sm:$0xff] (!%p138_p2)   ;;  %v1607_v6 = vld [vmem:[%s2060_s1 + $0x10] sm:$0xff] (!%p138_p2)   ;;  %v1684_v12 = vmov (!%p138_p2), 1983009808  }
   0x7   : > { %1411 = vmatpush3.bf16.msra.mxu0 (!%p138_p2), %v1602_v0  ;;  %1426 = vmatprep.mubr.msk.bf16.mxu0 (!%p138_p2), %vm1683_vm0, %v1682_v1  ;;  %v1608_v7 = vld [vmem:[%s2060_s1 + $0x58] sm:$0xff] (!%p138_p2)   ;;  %v1610_v10 = vld [vmem:[%s2060_s1 + $0x60] sm:$0xff] (!%p138_p2)   ;;  %v204_v13 = vunpack.c.l.s4 (!%p138_p2), %v1684_v12  ;;  %v207_v14 = vshrl.u32 (!%p138_p2), %v206_v9, 7  ;;  %v1612_v15 = vld [vmem:[%s2060_s1 + $0x68] sm:$0xff] (!%p138_p2)   ;;  %vm1189_vm1 = vcmask (!%p138_p2), 1040384  }
   0x8   : > { %1431 = vmatpush3.bf16.msra.mxu1 (!%p138_p2), %v1603_v2  ;;  %1412 = vmatprep.subr.bf16.mxu0 (!%p138_p2), %v1682_v1  ;;  %v1609_v8 = vld [vmem:[%s2060_s1 + $0x18] sm:$0xff] (!%p138_p2)   ;;  %v1611_v11 = vld [vmem:[%s2060_s1 + $0x20] sm:$0xff] (!%p138_p2)   ;;  %v1613_v16 = vld [vmem:[%s2060_s1 + $0x28] sm:$0xff] (!%p138_p2)   ;;  %vm1190_vm2 = vsmask.f32 (!%p138_p2), 256 }
   0x9   : > { %1432 = vmatprep.subr.bf16.mxu1 (!%p138_p2), %v1682_v1  ;;  %1446 = vmatprep.mubr.msk.bf16.mxu1 (!%p138_p2), %vm1683_vm0, %v1682_v1  ;;  %v205_v17 = vunpack.c.0.s8 (!%p138_p2), %v204_v13  ;;  %v1614_v18 = vld [vmem:[%s2060_s1 + $0x70] sm:$0xff] (!%p138_p2)   ;;  %v1616_v23 = vld [vmem:[%s2060_s1 + $0x78] sm:$0xff] (!%p138_p2)   ;;  %v1618_v26 = vld [vmem:[%s2060_s1 + $0x80] sm:$0xff] (!%p138_p2)  }
   0xa   : > { %v1615_v21 = vld [vmem:[%s2060_s1 + $0x30] sm:$0xff] (!%p138_p2)   ;;  %v1617_v24 = vld [vmem:[%s2060_s1 + $0x38] sm:$0xff] (!%p138_p2)   ;;  %v1619_v27 = vld [vmem:[%s2060_s1 + $0xc0] sm:$0xff] (!%p138_p2)  }
   0xb   : > { %1413 = vmatpush3.bf16.msra.mxu0 (!%p138_p2), %v1604_v3  ;;  %v1780_v19 = vsub.s32 (!%p138_p2), %v205_v17, %v207_v14  ;;  %v1620_v28 = vld [vmem:[%s2060_s1 + $0x88] sm:$0xff] (!%p138_p2)   ;;  %v1622_v30 = vld [vmem:[%s2060_s1 + $0x90] sm:$0xff] (!%p138_p2)   ;;  %v1624_v32 = vld [vmem:[%s2060_s1 + $0x98] sm:$0xff] (!%p138_p2)  }
   0xc   : > { %1433 = vmatpush3.bf16.msra.mxu1 (!%p138_p2), %v1605_v4  ;;  %1414 = vmatprep.subr.bf16.mxu0 (!%p138_p2), %v1682_v1  ;;  %v1621_v29 = vld [vmem:[%s2060_s1 + $0xc8] sm:$0xff] (!%p138_p2)   ;;  %v1623_v31 = vld [vmem:[%s2060_s1 + $0xd0] sm:$0xff] (!%p138_p2)   ;;  %v1625_v33 = vld [vmem:[%s2060_s1 + $0xd8] sm:$0xff] (!%p138_p2)  }
   0xd   : > { %1434 = vmatprep.subr.bf16.mxu1 %v1682_v1  ;;  %s2064_s13 = smov (!%p159_p3, %s1242_s13), 1  ;;  %v1626_v34 = vld [vmem:[%s2060_s1 + $0xa0] sm:$0xff]   ;;  %v1628_v36 = vld [vmem:[%s2060_s1 + $0xa8] sm:$0xff]   ;;  %v1630_v38 = vld [vmem:[%s2060_s1 + $0xb0] sm:$0xff]  }
   0xe   : > { %s1590_s7 = smul.u32 6, %s2064_s13  ;;  %v1627_v35 = vld [vmem:[%s2060_s1 + $0xe0] sm:$0xff]   ;;  %v1629_v37 = vld [vmem:[%s2060_s1 + $0xe8] sm:$0xff]   ;;  %v1631_v39 = vld [vmem:[%s2060_s1 + $0xf0] sm:$0xff]   ;;  %s166_s20 = scalar_lea.vmem %s2062_s3, %s2064_s13 }
   0xf   : > { %1415 = vmatpush3.bf16.msra.mxu0 %v1606_v5  ;;  %v1632_v41 = vld [vmem:[%s2060_s1 + $0xb8] sm:$0xff]   ;;  %v1634_v44 = vld [vmem:[%s2060_s1 + $0x100] sm:$0xff]   ;;  %v1636_v47 = vld [vmem:[%s2060_s1 + $0x108] sm:$0xff]  }
  0x10   : > { %1435 = vmatpush3.bf16.msra.mxu1 %v1607_v6  ;;  %1416 = vmatprep.subr.bf16.mxu0 %v1682_v1  ;;  %s1774_s16 = scalar_lea.vmem %s2059_s0, %s1590_s7  ;;  %v1633_v42 = vld [vmem:[%s2060_s1 + $0xf8] sm:$0xff]   ;;  %v1635_v46 = vld [vmem:[%s2060_s1 + $0x140] sm:$0xff]   ;;  %v1637_v49 = vld [vmem:[%s2060_s1 + $0x148] sm:$0xff]  }
  0x11   : > { %1436 = vmatprep.subr.bf16.mxu1 %v1682_v1  ;;  %v169_v20 = vld [vmem:[%s1774_s16] sm:$0x1]  ;;  %v1264_v40 = vld.sshfl [vmem:[%s1774_s16] sm:$0x2 pattern:$0x76325410]  ;;  %vm1191_vm3 = vmand %vm1189_vm1, %vm1190_vm2 }
  0x12   : > { %v209_v22 = vrot.slane %v169_v20, %v1780_v19  ;;  %v415_v43 = vrot.slane %v1264_v40, 1  ;;  %v1273_v45 = vld [vmem:[%s1774_s16 + $0x2] sm:$0x1]  ;;  %v1879_v48 = vld [vmem:[%s1774_s16 + $0x4] sm:$0x1]  ;;  %v1638_v51 = vld [vmem:[%s2060_s1 + $0x110] sm:$0xff]  }
  0x13   : > { %1417 = vmatpush3.bf16.msra.mxu0 %v1608_v7  ;;  %v976_v50 = vrot.slane %v1879_v48, %v1780_v19  ;;  %v1639_v52 = vld [vmem:[%s2060_s1 + $0x150] sm:$0xff]   ;;  %v1640_v53 = vld [vmem:[%s2060_s1 + $0x118] sm:$0xff]   ;;  %v1642_v55 = vld [vmem:[%s2060_s1 + $0x120] sm:$0xff]   ;;  %v636_v61 = vrot.slane %v1273_v45, %v1780_v19 }
  0x14   : > { %1437 = vmatpush3.bf16.msra.mxu1 %v1609_v8  ;;  %1418 = vmatprep.subr.bf16.mxu0 %v1682_v1  ;;  %v211_v25 = vshrl.u32 %v209_v22, 16  ;;  %v1641_v54 = vld [vmem:[%s2060_s1 + $0x158] sm:$0xff]   ;;  %v1643_v56 = vld [vmem:[%s2060_s1 + $0x160] sm:$0xff]   ;;  %v1644_v57 = vld [vmem:[%s2060_s1 + $0x128] sm:$0xff]  }
  0x15   : > { %1438 = vmatprep.subr.bf16.mxu1 %v1682_v1  ;;  %v1645_v58 = vld [vmem:[%s2060_s1 + $0x168] sm:$0xff]   ;;  %v1646_v59 = vld [vmem:[%s2060_s1 + $0x130] sm:$0xff]   ;;  %v1648_v62 = vld [vmem:[%s2060_s1 + $0x138] sm:$0xff]   ;;  %v638_v2 = vshrl.u32 %v636_v61, 16 }
  0x16   : > { %v1647_v60 = vld [vmem:[%s2060_s1 + $0x170] sm:$0xff]   ;;  %v1649_v63 = vld [vmem:[%s2060_s1 + $0x178] sm:$0xff]   ;;  %v1291_v0 = vld.sshfl [vmem:[%s1774_s16 + $0x2] sm:$0x2 pattern:$0x76325410] }
  0x17   : > { %1419 = vmatpush3.bf16.msra.mxu0 %v1610_v10  ;;  %v1650_v3 = vld [vmem:[%s2060_s1 + $0x180] sm:$0xff]   ;;  %v755_v4 = vrot.slane %v1291_v0, 1  ;;  %v1652_v6 = vld [vmem:[%s2060_s1 + $0x188] sm:$0xff]   ;;  %v1654_v8 = vld [vmem:[%s2060_s1 + $0x190] sm:$0xff]  }
  0x18   : > { %1439 = vmatpush3.bf16.msra.mxu1 %v1611_v11  ;;  %1420 = vmatprep.subr.bf16.mxu0 %v1682_v1  ;;  %v1651_v5 = vld [vmem:[%s2060_s1 + $0x1c0] sm:$0xff]   ;;  %v1653_v7 = vld [vmem:[%s2060_s1 + $0x1c8] sm:$0xff]   ;;  %v1655_v9 = vld [vmem:[%s2060_s1 + $0x1d0] sm:$0xff]  }
  0x19   : > { %1440 = vmatprep.subr.bf16.mxu1 %v1682_v1  ;;  %v1656_v10 = vld [vmem:[%s2060_s1 + $0x198] sm:$0xff]   ;;  %v1658_v12 = vld [vmem:[%s2060_s1 + $0x1a0] sm:$0xff]   ;;  %v1660_v14 = vld [vmem:[%s2060_s1 + $0x1a8] sm:$0xff]  }
  0x1a   : > { %v1657_v11 = vld [vmem:[%s2060_s1 + $0x1d8] sm:$0xff]   ;;  %v1659_v13 = vld [vmem:[%s2060_s1 + $0x1e0] sm:$0xff]   ;;  %v1663_v17 = vld [vmem:[%s2060_s1 + $0x1f0] sm:$0xff]  }
  0x1b   : > { %1421 = vmatpush3.bf16.msra.mxu0 %v1612_v15  ;;  %v1661_v15 = vld [vmem:[%s2060_s1 + $0x1e8] sm:$0xff]   ;;  %v1666_v22 = vld [vmem:[%s2060_s1 + $0x200] sm:$0xff]   ;;  %v1668_v19 = vld [vmem:[%s2060_s1 + $0x210] sm:$0xff]  }
  0x1c   : > { %1441 = vmatpush3.bf16.msra.mxu1 %v1613_v16  ;;  %1422 = vmatprep.subr.bf16.mxu0 %v1682_v1  ;;  %v1662_v16 = vld [vmem:[%s2060_s1 + $0x1b0] sm:$0xff]  }
  0x1d   : > { %1442 = vmatprep.subr.bf16.mxu1 %v1682_v1 }
  0x1f   : > { %1423 = vmatpush3.bf16.msra.mxu0 %v1614_v18  ;;  %v1664_v18 = vld [vmem:[%s2060_s1 + $0x1b8] sm:$0xff]  }
  0x20   : > { %1443 = vmatpush3.bf16.msra.mxu1 %v1615_v21  ;;  %1424 = vmatprep.subr.bf16.mxu0 %v1682_v1  ;;  %v978_v21 = vshrl.u32 %v976_v50, 16 }
  0x21   : > { %1444 = vmatprep.subr.bf16.mxu1 %v1682_v1 }
  0x23   : > { %1425 = vmatpush3.bf16.msra.mxu0 %v1616_v23  ;;  %v1667_v23 = vld [vmem:[%s2060_s1 + $0x208] sm:$0xff]  }
  0x24   : > { %1445 = vmatpush3.bf16.msra.mxu1 %v1617_v24  ;;  %1450 = vmatprep.subr.bf16.mxu0 %v1682_v1  ;;  %v1669_v24 = vld [vmem:[%s2060_s1 + $0x218] sm:$0xff]  }
  0x25   : > { %1470 = vmatprep.subr.bf16.mxu1 %v1682_v1 }
  0x26   : > { %1427 = vmatmul.mubr.bf16.vlgmr.msra.gmra.mrb[0].mxu0 %v211_v25  ;;  %v1670_v25 = vld [vmem:[%s2060_s1 + $0x220] sm:$0xff]  }
  0x27   : > { %1447 = vmatmul.mubr.bf16.vlgmr.msra.gmra.mrb[0].mxu1 %v169_v20  ;;  %1451 = vmatpush3.bf16.msra.mxu0 %v1618_v26  ;;  %v1665_v20 = vld [vmem:[%s2060_s1 + $0x1f8] sm:$0xff]   ;;  %v1671_v26 = vld [vmem:[%s2060_s1 + $0x228] sm:$0xff]  }
  0x28   : > { %1471 = vmatpush3.bf16.msra.mxu1 %v1619_v27  ;;  %1452 = vmatprep.subr.bf16.mxu0 %v1682_v1  ;;  %v1672_v27 = vld [vmem:[%s2060_s1 + $0x230] sm:$0xff]  }
  0x29   : > { %1472 = vmatprep.subr.bf16.mxu1 %v1682_v1  ;;  %1466 = vmatprep.mubr.msk.bf16.mxu0 %vm1683_vm0, %v1682_v1 }
  0x2a   : > { %1486 = vmatprep.mubr.msk.bf16.mxu1 %vm1683_vm0, %v1682_v1 }
  0x2b   : > { %1453 = vmatpush3.bf16.msra.mxu0 %v1620_v28  ;;  %v1673_v28 = vld [vmem:[%s2060_s1 + $0x238] sm:$0xff]  }
  0x2c   : > { %1473 = vmatpush3.bf16.msra.mxu1 %v1621_v29  ;;  %1454 = vmatprep.subr.bf16.mxu0 %v1682_v1  ;;  %v1318_v29 = vld.sshfl [vmem:[%s1774_s16 + $0x4] sm:$0x2 pattern:$0x76325410] }
  0x2d   : > { %1474 = vmatprep.subr.bf16.mxu1 %v1682_v1 }
  0x2f   : > { %1455 = vmatpush3.bf16.msra.mxu0 %v1622_v30  ;;  %v1095_v30 = vrot.slane %v1318_v29, 1 }
  0x30   : > { %1475 = vmatpush3.bf16.msra.mxu1 %v1623_v31  ;;  %1456 = vmatprep.subr.bf16.mxu0 %v1682_v1 }
  0x31   : > { %1476 = vmatprep.subr.bf16.mxu1 %v1682_v1 }
  0x33   : > { %1457 = vmatpush3.bf16.msra.mxu0 %v1624_v32 }
  0x34   : > { %1477 = vmatpush3.bf16.msra.mxu1 %v1625_v33  ;;  %1458 = vmatprep.subr.bf16.mxu0 %v1682_v1 }
  0x35   : > { %1478 = vmatprep.subr.bf16.mxu1 %v1682_v1 }
  0x37   : > { %1459 = vmatpush3.bf16.msra.mxu0 %v1626_v34 }
  0x38   : > { %1479 = vmatpush3.bf16.msra.mxu1 %v1627_v35  ;;  %1460 = vmatprep.subr.bf16.mxu0 %v1682_v1 }
  0x39   : > { %1480 = vmatprep.subr.bf16.mxu1 %v1682_v1 }
  0x3b   : > { %1461 = vmatpush3.bf16.msra.mxu0 %v1628_v36 }
  0x3c   : > { %1481 = vmatpush3.bf16.msra.mxu1 %v1629_v37  ;;  %1462 = vmatprep.subr.bf16.mxu0 %v1682_v1 }
  0x3d   : > { %1482 = vmatprep.subr.bf16.mxu1 %v1682_v1 }
  0x3f   : > { %1463 = vmatpush3.bf16.msra.mxu0 %v1630_v38 }
  0x40   : > { %1483 = vmatpush3.bf16.msra.mxu1 %v1631_v39  ;;  %1464 = vmatprep.subr.bf16.mxu0 %v1682_v1 }
  0x41   : > { %1484 = vmatprep.subr.bf16.mxu1 %v1682_v1 }
  0x43   : > { %1465 = vmatpush3.bf16.msra.mxu0 %v1632_v41 }
  0x44   : > { %1485 = vmatpush3.bf16.msra.mxu1 %v1633_v42  ;;  %1490 = vmatprep.subr.bf16.mxu0 %v1682_v1 }
  0x45   : > { %1510 = vmatprep.subr.bf16.mxu1 %v1682_v1 }
  0x46   : > { %1467 = vmatmul.mubr.bf16.vlgmr.msra.gmra.mrb[4].mxu0 %v415_v43 }
  0x47   : > { %1491 = vmatpush3.bf16.msra.mxu0 %v1634_v44  ;;  %1487 = vmatmul.mubr.bf16.vlgmr.msra.gmra.mrb[4].mxu1 %v1273_v45 }
  0x48   : > { %1511 = vmatpush3.bf16.msra.mxu1 %v1635_v46  ;;  %1492 = vmatprep.subr.bf16.mxu0 %v1682_v1 }
  0x49   : > { %1512 = vmatprep.subr.bf16.mxu1 %v1682_v1  ;;  %1506 = vmatprep.mubr.msk.bf16.mxu0 %vm1683_vm0, %v1682_v1 }
  0x4a   : > { %1526 = vmatprep.mubr.msk.bf16.mxu1 %vm1683_vm0, %v1682_v1 }
  0x4b   : > { %1493 = vmatpush3.bf16.msra.mxu0 %v1636_v47 }
  0x4c   : > { %1513 = vmatpush3.bf16.msra.mxu1 %v1637_v49  ;;  %1494 = vmatprep.subr.bf16.mxu0 %v1682_v1 }
  0x4d   : > { %1514 = vmatprep.subr.bf16.mxu1 %v1682_v1 }
  0x4f   : > { %1495 = vmatpush3.bf16.msra.mxu0 %v1638_v51 }
  0x50   : > { %1515 = vmatpush3.bf16.msra.mxu1 %v1639_v52  ;;  %1496 = vmatprep.subr.bf16.mxu0 %v1682_v1 }
  0x51   : > { %1516 = vmatprep.subr.bf16.mxu1 %v1682_v1 }
  0x53   : > { %1497 = vmatpush3.bf16.msra.mxu0 %v1640_v53 }
  0x54   : > { %1517 = vmatpush3.bf16.msra.mxu1 %v1641_v54  ;;  %1498 = vmatprep.subr.bf16.mxu0 %v1682_v1 }
  0x55   : > { %1518 = vmatprep.subr.bf16.mxu1 %v1682_v1 }
  0x57   : > { %1499 = vmatpush3.bf16.msra.mxu0 %v1642_v55 }
  0x58   : > { %1519 = vmatpush3.bf16.msra.mxu1 %v1643_v56  ;;  %1500 = vmatprep.subr.bf16.mxu0 %v1682_v1 }
  0x59   : > { %1520 = vmatprep.subr.bf16.mxu1 %v1682_v1 }
  0x5b   : > { %1501 = vmatpush3.bf16.msra.mxu0 %v1644_v57 }
  0x5c   : > { %1521 = vmatpush3.bf16.msra.mxu1 %v1645_v58  ;;  %1502 = vmatprep.subr.bf16.mxu0 %v1682_v1 }
  0x5d   : > { %1522 = vmatprep.subr.bf16.mxu1 %v1682_v1 }
  0x5f   : > { %1503 = vmatpush3.bf16.msra.mxu0 %v1646_v59 }
  0x60   : > { %1523 = vmatpush3.bf16.msra.mxu1 %v1647_v60  ;;  %1504 = vmatprep.subr.bf16.mxu0 %v1682_v1 }
  0x61   : > { %1524 = vmatprep.subr.bf16.mxu1 %v1682_v1 }
  0x63   : > { %1505 = vmatpush3.bf16.msra.mxu0 %v1648_v62 }
  0x64   : > { %1525 = vmatpush3.bf16.msra.mxu1 %v1649_v63  ;;  %1530 = vmatprep.subr.bf16.mxu0 %v1682_v1 }
  0x65   : > { %1550 = vmatprep.subr.bf16.mxu1 %v1682_v1 }
  0x66   : > { %1507 = vmatmul.mubr.bf16.vlgmr.msra.gmra.mrb[8].mxu0 %v638_v2 }
  0x67   : > { %1531 = vmatpush3.bf16.msra.mxu0 %v1650_v3  ;;  %1527 = vmatmul.mubr.bf16.vlgmr.msra.gmra.mrb[8].mxu1 %v755_v4 }
  0x68   : > { %1551 = vmatpush3.bf16.msra.mxu1 %v1651_v5  ;;  %1532 = vmatprep.subr.bf16.mxu0 %v1682_v1 }
  0x69   : > { %1552 = vmatprep.subr.bf16.mxu1 %v1682_v1  ;;  %1546 = vmatprep.mubr.msk.bf16.mxu0 %vm1683_vm0, %v1682_v1 }
  0x6a   : > { %1566 = vmatprep.mubr.msk.bf16.mxu1 %vm1683_vm0, %v1682_v1 }
  0x6b   : > { %1533 = vmatpush3.bf16.msra.mxu0 %v1652_v6  ;;  %v168_v6 = vld [vmem:[%s2061_s2] sm:$0x1] }
  0x6c   : > { %1553 = vmatpush3.bf16.msra.mxu1 %v1653_v7  ;;  %1534 = vmatprep.subr.bf16.mxu0 %v1682_v1 }
  0x6d   : > { %1554 = vmatprep.subr.bf16.mxu1 %v1682_v1 }
  0x6f   : > { %1535 = vmatpush3.bf16.msra.mxu0 %v1654_v8 }
  0x70   : > { %1555 = vmatpush3.bf16.msra.mxu1 %v1655_v9  ;;  %1536 = vmatprep.subr.bf16.mxu0 %v1682_v1 }
  0x71   : > { %1556 = vmatprep.subr.bf16.mxu1 %v1682_v1 }
  0x73   : > { %1537 = vmatpush3.bf16.msra.mxu0 %v1656_v10 }
  0x74   : > { %1557 = vmatpush3.bf16.msra.mxu1 %v1657_v11  ;;  %1538 = vmatprep.subr.bf16.mxu0 %v1682_v1 }
  0x75   : > { %1558 = vmatprep.subr.bf16.mxu1 %v1682_v1 }
  0x77   : > { %1539 = vmatpush3.bf16.msra.mxu0 %v1658_v12 }
  0x78   : > { %1559 = vmatpush3.bf16.msra.mxu1 %v1659_v13  ;;  %1540 = vmatprep.subr.bf16.mxu0 %v1682_v1 }
  0x79   : > { %1560 = vmatprep.subr.bf16.mxu1 %v1682_v1 }
  0x7b   : > { %1541 = vmatpush3.bf16.msra.mxu0 %v1660_v14  ;;  %v1192_v14 = vld [vmem:[%s166_s20] sm:$0x1] }
  0x7c   : > { %1561 = vmatpush3.bf16.msra.mxu1 %v1661_v15  ;;  %1542 = vmatprep.subr.bf16.mxu0 %v1682_v1 }
  0x7d   : > { %1562 = vmatprep.subr.bf16.mxu1 %v1682_v1 }
  0x7f   : > { %1543 = vmatpush3.bf16.msra.mxu0 %v1662_v16 }
  0x80   : > { %1563 = vmatpush3.bf16.msra.mxu1 %v1663_v17  ;;  %1544 = vmatprep.subr.bf16.mxu0 %v1682_v1 }
  0x81   : > { %1564 = vmatprep.subr.bf16.mxu1 %v1682_v1 }
  0x83   : > { %1545 = vmatpush3.bf16.msra.mxu0 %v1664_v18 }
  0x84   : > { %1565 = vmatpush3.bf16.msra.mxu1 %v1665_v20  ;;  %1570 = vmatprep.subr.bf16.mxu0 %v1682_v1 }
  0x86   : > { %1547 = vmatmul.mubr.bf16.vlgmr.msra.gmra.mrb[12].mxu0 %v1879_v48 }
  0x87   : > { %1571 = vmatpush3.bf16.msra.mxu0 %v1666_v22  ;;  %1567 = vmatmul.mubr.bf16.vlgmr.msra.gmra.mrb[12].mxu1 %v978_v21 }
  0x88   : > { %1572 = vmatprep.subr.bf16.mxu0 %v1682_v1  ;;  %1586 = vmatprep.mubr.msk.bf16.mxu0 %vm1683_vm0, %v1682_v1 }
  0x8b   : > { %1573 = vmatpush3.bf16.msra.mxu0 %v1667_v23 }
  0x8c   : > { %1574 = vmatprep.subr.bf16.mxu0 %v1682_v1 }
  0x8f   : > { %1575 = vmatpush3.bf16.msra.mxu0 %v1668_v19 }
  0x90   : > { %1576 = vmatprep.subr.bf16.mxu0 %v1682_v1 }
  0x93   : > { %1577 = vmatpush3.bf16.msra.mxu0 %v1669_v24 }
  0x94   : > { %1578 = vmatprep.subr.bf16.mxu0 %v1682_v1 }
  0x97   : > { %1579 = vmatpush3.bf16.msra.mxu0 %v1670_v25 }
  0x98   : > { %1580 = vmatprep.subr.bf16.mxu0 %v1682_v1 }
  0x9b   : > { %1581 = vmatpush3.bf16.msra.mxu0 %v1671_v26 }
  0x9c   : > { %1582 = vmatprep.subr.bf16.mxu0 %v1682_v1 }
  0x9f   : > { %1583 = vmatpush3.bf16.msra.mxu0 %v1672_v27 }
  0xa0   : > { %1584 = vmatprep.subr.bf16.mxu0 %v1682_v1 }
  0xa3   : > { %1585 = vmatpush3.bf16.msra.mxu0 %v1673_v28 }
  0xa6   : > { %1587 = vmatmul.mubr.bf16.vlgmr.msra.gmra.mrb[16].mxu0 %v1095_v30 }
  0xf9   : > { %v296_v31 = vpop.f32.mrb[0].mxu0 }
  0xfa   : > { %v1428_v32 = vpop.f32.mrb[1].mxu0  ;;  %v384_v33 = vpop.f32.mrb[0].mxu1 }
  0xfb   : > { %v385_v34 = vadd.f32 %v384_v33, %v296_v31  ;;  %v299_v35 = vpop.f32.mrb[2].mxu0  ;;  %v1448_v36 = vpop.f32.mrb[1].mxu1 }
  0xfc   : > { %v1429_v37 = vpop.f32.mrb[3].mxu0  ;;  %v387_v38 = vpop.f32.mrb[2].mxu1 }
  0xfd   : > { %v1449_v39 = vpop.f32.mrb[3].mxu1 }
 0x119   : > { %v499_v40 = vpop.f32.mrb[4].mxu0 }
 0x11a   : > { %v505_v41 = vadd.f32 %v499_v40, %v385_v34  ;;  %v1468_v42 = vpop.f32.mrb[5].mxu0  ;;  %v606_v43 = vpop.f32.mrb[4].mxu1 }
 0x11b   : > { %v502_v44 = vpop.f32.mrb[6].mxu0  ;;  %v1488_v45 = vpop.f32.mrb[5].mxu1 }
 0x11c   : > { %v612_v46 = vadd.f32 %v606_v43, %v505_v41  ;;  %v1469_v1 = vpop.f32.mrb[7].mxu0  ;;  %v609_v47 = vpop.f32.mrb[6].mxu1 }
 0x11d   : > { %v1489_v48 = vpop.f32.mrb[7].mxu1 }
 0x139   : > { %v723_v49 = vpop.f32.mrb[8].mxu0 }
 0x13a   : > { %v729_v50 = vadd.f32 %v723_v49, %v612_v46  ;;  %v1508_v51 = vpop.f32.mrb[9].mxu0  ;;  %v839_v52 = vpop.f32.mrb[8].mxu1 }
 0x13b   : > { %v726_v53 = vpop.f32.mrb[10].mxu0  ;;  %v1528_v54 = vpop.f32.mrb[9].mxu1 }
 0x13c   : > { %v845_v55 = vadd.f32 %v839_v52, %v729_v50  ;;  %v1509_v56 = vpop.f32.mrb[11].mxu0  ;;  %v842_v57 = vpop.f32.mrb[10].mxu1 }
 0x13d   : > { %v1529_v58 = vpop.f32.mrb[11].mxu1 }
 0x159   : > { %v946_v59 = vpop.f32.mrb[12].mxu0 }
 0x15a   : > { %v952_v60 = vadd.f32 %v946_v59, %v845_v55  ;;  %v1548_v61 = vpop.f32.mrb[13].mxu0  ;;  %v1063_v62 = vpop.f32.mrb[12].mxu1 }
 0x15b   : > { %v949_v63 = vpop.f32.mrb[14].mxu0  ;;  %v1568_v0 = vpop.f32.mrb[13].mxu1 }
 0x15c   : > { %v1069_v2 = vadd.f32 %v1063_v62, %v952_v60  ;;  %v1549_v3 = vpop.f32.mrb[15].mxu0  ;;  %v1066_v4 = vpop.f32.mrb[14].mxu1 }
 0x15d   : > { %v1569_v5 = vpop.f32.mrb[15].mxu1 }
 0x179   : > { %v1179_v7 = vpop.f32.mrb[16].mxu0 }
 0x17a   : > { %v1185_v8 = vadd.f32 %v1179_v7, %v1069_v2  ;;  %v1588_v9 = vpop.f32.mrb[17].mxu0 }
 0x17b   : > { %v1182_v10 = vpop.f32.mrb[18].mxu0 }
 0x17c   : > { %v1186_v11 = vadd.f32 %v1185_v8, %v168_v6  ;;  %v1589_v12 = vpop.f32.mrb[19].mxu0 }
 0x17e   : > { %v1187_v13 = vmax.f32 %v1186_v11, 0.0 }
 0x180   : > { %v1188_v15 = vpack.c.bf16 %v1187_v13, %v1187_v13 }
 0x182   : > { %v1193_v16 = vsel %vm1191_vm3, %v1188_v15, %v1192_v14 }
 0x183   : > { %1194 = vst [vmem:[%s166_s20] sm:$0x1] %v1193_v16 }
 0x184 PF: > { %s13_s12 = sadd.s32 1, %s1680_s12  }
 0x185   : > { %p10_p4 = scmp.ge.s32.totalorder %s13_s12, 4  }
 0x187   :  { %12 = sbr.rel (!%p10_p4) target bundleno = 1 (0x1), region = 64 }

// kernel: _lambda_.7
= control target key start
LH: loop header
LB: loop body
LE: loop exit
PB: predicated region body
PF: predicated region fallthrough
CT: control target
= control target key end

     0   :  { %v1407_v3 = vmov 0   ;;  %vm262_vm0 = vcmask 523264   ;;  %s1765_s1 = inlined_call_operand.vmem [shape: bf16[64,1024], index: 1, kind: input, shape index: {}]   ;;  %s1766_s0 = inlined_call_operand.vmem [shape: bf16[16,64], index: 0, kind: input, shape index: {}]   ;;  %s1767_s3 = inlined_call_operand.vmem [shape: bf16[1024,128], index: 3, kind: input, shape index: {}]   ;;  %s1768_s2 = inlined_call_operand.vmem [shape: f32[1,1024], index: 2, kind: input, shape index: {}]   ;;  %s1769_s4 = inlined_call_operand.vmem [shape: f32[1,128], index: 4, kind: input, shape index: {}]   ;;  %s1770_s5 = inlined_call_operand.vmem [shape: f32[16,128], index: 5, kind: output, shape index: {}]  }
   0x1   :  { %v23_v0 = vld [vmem:[%s1765_s1] sm:$0xff]  ;;  %v24_v2 = vld [vmem:[%s1765_s1 + $0x8] sm:$0xff]  ;;  %298 = vmatprep.mubr.bf16.mxu0 %v1407_v3  ;;  %341 = vmatprep.mubr.bf16.mxu1 %v1407_v3  ;;  %v25_v31 = vld [vmem:[%s1765_s1 + $0x10] sm:$0xff] }
   0x2   :  { %v27_v1 = vld [vmem:[%s1765_s1 + $0x20] sm:$0xff]  ;;  %v28_v5 = vld [vmem:[%s1765_s1 + $0x28] sm:$0xff]  ;;  %v29_v32 = vld [vmem:[%s1765_s1 + $0x30] sm:$0xff] }
   0x3   :  { %v1153_v4 = vcombine.high %v23_v0, %v27_v1  ;;  %v1152_v6 = vcombine.low %v23_v0, %v27_v1  ;;  %v31_v7 = vld [vmem:[%s1765_s1 + $0x40] sm:$0xff]  ;;  %v1155_v9 = vcombine.high %v24_v2, %v28_v5  ;;  %v1154_v10 = vcombine.low %v24_v2, %v28_v5  ;;  %v32_v12 = vld [vmem:[%s1765_s1 + $0x48] sm:$0xff]  ;;  %v26_v33 = vld [vmem:[%s1765_s1 + $0x18] sm:$0xff] }
   0x4   :  { %v35_v8 = vld [vmem:[%s1765_s1 + $0x60] sm:$0xff]  ;;  %v36_v13 = vld [vmem:[%s1765_s1 + $0x68] sm:$0xff]  ;;  %v30_v34 = vld [vmem:[%s1765_s1 + $0x38] sm:$0xff]  ;;  %v1157_v39 = vcombine.high %v25_v31, %v29_v32  ;;  %v1156_v44 = vcombine.low %v25_v31, %v29_v32 }
   0x5   :  { %v1161_v11 = vcombine.high %v31_v7, %v35_v8  ;;  %v39_v14 = vld [vmem:[%s1765_s1 + $0x80] sm:$0xff]  ;;  %266 = vmatprep.subr.bf16.mxu0 %v1153_v4  ;;  %v1163_v15 = vcombine.high %v32_v12, %v36_v13  ;;  %v40_v17 = vld [vmem:[%s1765_s1 + $0x88] sm:$0xff]  ;;  %309 = vmatprep.subr.bf16.mxu1 %v1155_v9  ;;  %v1160_v19 = vcombine.low %v31_v7, %v35_v8  ;;  %v33_v36 = vld [vmem:[%s1765_s1 + $0x50] sm:$0xff] }
   0x6   :  { %v43_v16 = vld [vmem:[%s1765_s1 + $0xa0] sm:$0xff]  ;;  %v44_v18 = vld [vmem:[%s1765_s1 + $0xa8] sm:$0xff]  ;;  %267 = vmatpush1.bf16.msra.mxu0 %v1152_v6  ;;  %310 = vmatpush1.bf16.msra.mxu1 %v1154_v10  ;;  %v1162_v20 = vcombine.low %v32_v12, %v36_v13  ;;  %v37_v40 = vld [vmem:[%s1765_s1 + $0x70] sm:$0xff]  ;;  %v1159_v41 = vcombine.high %v26_v33, %v30_v34  ;;  %v1158_v46 = vcombine.low %v26_v33, %v30_v34 }
   0x7   :  { %268 = vmatprep.subr.bf16.mxu0 %v1161_v11  ;;  %v1169_v21 = vcombine.high %v39_v14, %v43_v16  ;;  %311 = vmatprep.subr.bf16.mxu1 %v1163_v15  ;;  %v1171_v22 = vcombine.high %v40_v17, %v44_v18  ;;  %v47_v23 = vld [vmem:[%s1765_s1 + $0xc0] sm:$0xff]  ;;  %v48_v25 = vld [vmem:[%s1765_s1 + $0xc8] sm:$0xff]  ;;  %v1168_v27 = vcombine.low %v39_v14, %v43_v16  ;;  %v34_v42 = vld [vmem:[%s1765_s1 + $0x58] sm:$0xff] }
   0x8   :  { %v51_v24 = vld [vmem:[%s1765_s1 + $0xe0] sm:$0xff]  ;;  %v52_v26 = vld [vmem:[%s1765_s1 + $0xe8] sm:$0xff]  ;;  %v1170_v28 = vcombine.low %v40_v17, %v44_v18  ;;  %v38_v43 = vld [vmem:[%s1765_s1 + $0x78] sm:$0xff]  ;;  %v1165_v47 = vcombine.high %v33_v36, %v37_v40  ;;  %v1164_v52 = vcombine.low %v33_v36, %v37_v40  ;;  %v57_v36 = vlaneseq }
   0x9   :  { %v1177_v29 = vcombine.high %v47_v23, %v51_v24  ;;  %v1179_v30 = vcombine.high %v48_v25, %v52_v26  ;;  %v1176_v35 = vcombine.low %v47_v23, %v51_v24  ;;  %v1178_v37 = vcombine.low %v48_v25, %v52_v26  ;;  %v1506_v38 = vld [vmem:[%s1766_s0] sm:$0xff]   ;;  %v41_v45 = vld [vmem:[%s1765_s1 + $0x90] sm:$0xff]  ;;  %v42_v50 = vld [vmem:[%s1765_s1 + $0x98] sm:$0xff] }
   0xa   :  { %269 = vmatpush1.bf16.msra.mxu0 %v1160_v19  ;;  %312 = vmatpush1.bf16.msra.mxu1 %v1162_v20  ;;  %v45_v48 = vld [vmem:[%s1765_s1 + $0xb0] sm:$0xff]  ;;  %v1167_v49 = vcombine.high %v34_v42, %v38_v43  ;;  %v46_v51 = vld [vmem:[%s1765_s1 + $0xb8] sm:$0xff]  ;;  %v1166_v54 = vcombine.low %v34_v42, %v38_v43  ;;  %v1343_v1 = vld [vmem:[%s1767_s3 + $0x40] sm:$0xff]  }
   0xb   :  { %270 = vmatprep.subr.bf16.mxu0 %v1169_v21  ;;  %313 = vmatprep.subr.bf16.mxu1 %v1171_v22  ;;  %v49_v53 = vld [vmem:[%s1765_s1 + $0xd0] sm:$0xff]  ;;  %v1173_v55 = vcombine.high %v41_v45, %v45_v48  ;;  %v1175_v57 = vcombine.high %v42_v50, %v46_v51  ;;  %v50_v58 = vld [vmem:[%s1765_s1 + $0xd8] sm:$0xff]  ;;  %v1172_v60 = vcombine.low %v41_v45, %v45_v48  ;;  %v1345_v4 = vld [vmem:[%s1767_s3] sm:$0xff]  }
   0xc   :  { %v53_v56 = vld [vmem:[%s1765_s1 + $0xf0] sm:$0xff]  ;;  %v54_v59 = vld [vmem:[%s1765_s1 + $0xf8] sm:$0xff]  ;;  %v1174_v61 = vcombine.low %v42_v50, %v46_v51  ;;  %v1346_v5 = vld [vmem:[%s1767_s3 + $0x80] sm:$0xff]  }
   0xd   :  { %v1181_v62 = vcombine.high %v49_v53, %v53_v56  ;;  %v1183_v63 = vcombine.high %v50_v58, %v54_v59  ;;  %v1180_v0 = vcombine.low %v49_v53, %v53_v56  ;;  %v1182_v2 = vcombine.low %v50_v58, %v54_v59  ;;  %v1347_v6 = vld [vmem:[%s1767_s3 + $0x48] sm:$0xff]   ;;  %v1351_v10 = vld [vmem:[%s1767_s3 + $0x50] sm:$0xff]   ;;  %v1355_v14 = vld [vmem:[%s1767_s3 + $0x58] sm:$0xff]  }
   0xe   :  { %271 = vmatpush1.bf16.msra.mxu0 %v1168_v27  ;;  %314 = vmatpush1.bf16.msra.mxu1 %v1170_v28  ;;  %v1348_v7 = vld [vmem:[%s1767_s3 + $0xc8] sm:$0xff]   ;;  %v1352_v11 = vld [vmem:[%s1767_s3 + $0xd0] sm:$0xff]   ;;  %v1356_v15 = vld [vmem:[%s1767_s3 + $0xd8] sm:$0xff]  }
   0xf   :  { %272 = vmatprep.subr.bf16.mxu0 %v1177_v29  ;;  %315 = vmatprep.subr.bf16.mxu1 %v1179_v30  ;;  %v1349_v8 = vld [vmem:[%s1767_s3 + $0x8] sm:$0xff]   ;;  %v1353_v12 = vld [vmem:[%s1767_s3 + $0x10] sm:$0xff]   ;;  %v1357_v16 = vld [vmem:[%s1767_s3 + $0x18] sm:$0xff]  }
  0x10   :  { %v1350_v9 = vld [vmem:[%s1767_s3 + $0x88] sm:$0xff]   ;;  %v1354_v13 = vld [vmem:[%s1767_s3 + $0x90] sm:$0xff]   ;;  %v1358_v17 = vld [vmem:[%s1767_s3 + $0x98] sm:$0xff]  }
  0x11   :  { %v1359_v18 = vld [vmem:[%s1767_s3 + $0x60] sm:$0xff]   ;;  %v1363_v22 = vld [vmem:[%s1767_s3 + $0x68] sm:$0xff]   ;;  %v1367_v26 = vld [vmem:[%s1767_s3 + $0x70] sm:$0xff]  }
  0x12   :  { %273 = vmatpush1.bf16.msra.mxu0 %v1176_v35  ;;  %316 = vmatpush1.bf16.msra.mxu1 %v1178_v37  ;;  %v1360_v19 = vld [vmem:[%s1767_s3 + $0xe0] sm:$0xff]   ;;  %v1364_v23 = vld [vmem:[%s1767_s3 + $0xe8] sm:$0xff]   ;;  %v1368_v27 = vld [vmem:[%s1767_s3 + $0xf0] sm:$0xff]   ;;  %v1653_v37 = vshrl.u32 %v57_v36, 7 }
  0x13   :  { %352 = vmatprep.subr.bf16.mxu0 %v1157_v39  ;;  %395 = vmatprep.subr.bf16.mxu1 %v1159_v41  ;;  %v1361_v20 = vld [vmem:[%s1767_s3 + $0x20] sm:$0xff]   ;;  %v1365_v24 = vld [vmem:[%s1767_s3 + $0x28] sm:$0xff]   ;;  %v1369_v28 = vld [vmem:[%s1767_s3 + $0x30] sm:$0xff]  }
  0x14   :  { %v1362_v21 = vld [vmem:[%s1767_s3 + $0xa0] sm:$0xff]   ;;  %v1366_v25 = vld [vmem:[%s1767_s3 + $0xa8] sm:$0xff]   ;;  %v1370_v29 = vld [vmem:[%s1767_s3 + $0xb0] sm:$0xff]   ;;  %v67_v40 = vsub.s32 2, %v1653_v37  ;;  %v63_v41 = vsub.s32 1, %v1653_v37  ;;  %v71_v42 = vsub.s32 3, %v1653_v37 }
  0x15   :  { %1184 = vmatmul.mubr.msk.bf16.vlgmr.msra.gmra.mrb[0].mxu0 %vm262_vm0, %v1506_v38  ;;  %1185 = vmatmul.mubr.msk.bf16.vlgmr.msra.gmra.mrb[0].mxu1 %vm262_vm0, %v1506_v38  ;;  %v1371_v30 = vld [vmem:[%s1767_s3 + $0x78] sm:$0xff]   ;;  %v1375_v34 = vld [vmem:[%s1767_s3 + $0x140] sm:$0xff]  }
  0x16   :  { %353 = vmatpush1.bf16.msra.mxu0 %v1156_v44  ;;  %396 = vmatpush1.bf16.msra.mxu1 %v1158_v46  ;;  %v1372_v31 = vld [vmem:[%s1767_s3 + $0xf8] sm:$0xff]   ;;  %v1376_v35 = vld [vmem:[%s1767_s3 + $0x1c0] sm:$0xff]  }
  0x17   :  { %354 = vmatprep.subr.bf16.mxu0 %v1165_v47  ;;  %397 = vmatprep.subr.bf16.mxu1 %v1167_v49  ;;  %v1373_v32 = vld [vmem:[%s1767_s3 + $0x38] sm:$0xff]   ;;  %v55_v39 = vld [vmem:[%s1768_s2] sm:$0xff] }
  0x18   :  { %384 = vmatprep.mubr.bf16.mxu0 %v1407_v3  ;;  %427 = vmatprep.mubr.bf16.mxu1 %v1407_v3  ;;  %v1344_v3 = vld [vmem:[%s1767_s3 + $0xc0] sm:$0xff]   ;;  %v1374_v33 = vld [vmem:[%s1767_s3 + $0xb8] sm:$0xff]   ;;  %v68_v44 = vrot.slane %v55_v39, %v67_v40  ;;  %v64_v45 = vrot.slane %v55_v39, %v63_v41  ;;  %v72_v46 = vrot.slane %v55_v39, %v71_v42 }
  0x1a   :  { %355 = vmatpush1.bf16.msra.mxu0 %v1164_v52  ;;  %398 = vmatpush1.bf16.msra.mxu1 %v1166_v54 }
  0x1b   :  { %356 = vmatprep.subr.bf16.mxu0 %v1173_v55  ;;  %399 = vmatprep.subr.bf16.mxu1 %v1175_v57 }
  0x1e   :  { %357 = vmatpush1.bf16.msra.mxu0 %v1172_v60  ;;  %400 = vmatpush1.bf16.msra.mxu1 %v1174_v61 }
  0x1f   :  { %358 = vmatprep.subr.bf16.mxu0 %v1181_v62  ;;  %401 = vmatprep.subr.bf16.mxu1 %v1183_v63 }
  0x22   :  { %359 = vmatpush1.bf16.msra.mxu0 %v1180_v0  ;;  %402 = vmatpush1.bf16.msra.mxu1 %v1182_v2 }
  0x23   :  { %1253 = vmatprep.subr.bf16.mxu0 %v1343_v1  ;;  %1275 = vmatprep.subr.bf16.mxu1 %v1344_v3 }
  0x25   :  { %1186 = vmatmul.mubr.msk.bf16.vlgmr.msra.gmra.mrb[4].mxu0 %vm262_vm0, %v1506_v38  ;;  %1187 = vmatmul.mubr.msk.bf16.vlgmr.msra.gmra.mrb[4].mxu1 %vm262_vm0, %v1506_v38  ;;  %v59_v38 = vsub.s32 0, %v1653_v37 }
  0x26   :  { %1254 = vmatpush3.bf16.msra.mxu0 %v1345_v4  ;;  %1276 = vmatpush3.bf16.msra.mxu1 %v1346_v5 }
  0x27   :  { %1255 = vmatprep.subr.bf16.mxu0 %v1347_v6  ;;  %1277 = vmatprep.subr.bf16.mxu1 %v1348_v7  ;;  %v60_v43 = vrot.slane %v55_v39, %v59_v38 }
  0x2a   :  { %1256 = vmatpush3.bf16.msra.mxu0 %v1349_v8  ;;  %1278 = vmatpush3.bf16.msra.mxu1 %v1350_v9 }
  0x2b   :  { %1257 = vmatprep.subr.bf16.mxu0 %v1351_v10  ;;  %1279 = vmatprep.subr.bf16.mxu1 %v1352_v11  ;;  %v1377_v10 = vld [vmem:[%s1767_s3 + $0x100] sm:$0xff]  }
  0x2e   :  { %1258 = vmatpush3.bf16.msra.mxu0 %v1353_v12  ;;  %1280 = vmatpush3.bf16.msra.mxu1 %v1354_v13  ;;  %v1378_v12 = vld [vmem:[%s1767_s3 + $0x180] sm:$0xff]   ;;  %v1379_v13 = vld [vmem:[%s1767_s3 + $0x148] sm:$0xff]  }
  0x2f   :  { %1259 = vmatprep.subr.bf16.mxu0 %v1355_v14  ;;  %1281 = vmatprep.subr.bf16.mxu1 %v1356_v15  ;;  %v75_v14 = vsub.s32 4, %v1653_v37  ;;  %v1380_v15 = vld [vmem:[%s1767_s3 + $0x1c8] sm:$0xff]  }
  0x32   :  { %1260 = vmatpush3.bf16.msra.mxu0 %v1357_v16  ;;  %1282 = vmatpush3.bf16.msra.mxu1 %v1358_v17  ;;  %v79_v16 = vsub.s32 5, %v1653_v37  ;;  %v83_v17 = vsub.s32 6, %v1653_v37 }
  0x33   :  { %1261 = vmatprep.subr.bf16.mxu0 %v1359_v18  ;;  %1283 = vmatprep.subr.bf16.mxu1 %v1360_v19  ;;  %v87_v18 = vsub.s32 7, %v1653_v37  ;;  %v1381_v19 = vld [vmem:[%s1767_s3 + $0x108] sm:$0xff]  }
  0x36   :  { %1262 = vmatpush3.bf16.msra.mxu0 %v1361_v20  ;;  %1284 = vmatpush3.bf16.msra.mxu1 %v1362_v21  ;;  %v1382_v20 = vld [vmem:[%s1767_s3 + $0x188] sm:$0xff]   ;;  %v1383_v21 = vld [vmem:[%s1767_s3 + $0x150] sm:$0xff]  }
  0x37   :  { %1263 = vmatprep.subr.bf16.mxu0 %v1363_v22  ;;  %1285 = vmatprep.subr.bf16.mxu1 %v1364_v23  ;;  %v76_v22 = vrot.slane %v55_v39, %v75_v14  ;;  %v1384_v23 = vld [vmem:[%s1767_s3 + $0x1d0] sm:$0xff]  }
  0x3a   :  { %1264 = vmatpush3.bf16.msra.mxu0 %v1365_v24  ;;  %1286 = vmatpush3.bf16.msra.mxu1 %v1366_v25  ;;  %v80_v24 = vrot.slane %v55_v39, %v79_v16  ;;  %v84_v25 = vrot.slane %v55_v39, %v83_v17 }
  0x3b   :  { %1265 = vmatprep.subr.bf16.mxu0 %v1367_v26  ;;  %1287 = vmatprep.subr.bf16.mxu1 %v1368_v27  ;;  %v88_v26 = vrot.slane %v55_v39, %v87_v18  ;;  %v1385_v27 = vld [vmem:[%s1767_s3 + $0x110] sm:$0xff]  }
  0x3e   :  { %1266 = vmatpush3.bf16.msra.mxu0 %v1369_v28  ;;  %1288 = vmatpush3.bf16.msra.mxu1 %v1370_v29  ;;  %v1386_v29 = vld [vmem:[%s1767_s3 + $0x190] sm:$0xff]  }
  0x3f   :  { %1267 = vmatprep.subr.bf16.mxu0 %v1371_v30  ;;  %1289 = vmatprep.subr.bf16.mxu1 %v1372_v31  ;;  %v1387_v30 = vld [vmem:[%s1767_s3 + $0x158] sm:$0xff]  }
  0x42   :  { %1268 = vmatpush3.bf16.msra.mxu0 %v1373_v32  ;;  %1290 = vmatpush3.bf16.msra.mxu1 %v1374_v33 }
  0x43   :  { %1297 = vmatprep.subr.bf16.mxu0 %v1375_v34  ;;  %1319 = vmatprep.subr.bf16.mxu1 %v1376_v35  ;;  %v1388_v34 = vld [vmem:[%s1767_s3 + $0x1d8] sm:$0xff]  }
  0xe8   :  { %v300_v47 = vpop.f32.mrb[0].mxu0  ;;  %v343_v49 = vpop.f32.mrb[0].mxu1 }
  0xe9   :  { %v301_v48 = vadd.f32 %v300_v47, %v60_v43  ;;  %v302_v50 = vpop.f32.mrb[1].mxu0  ;;  %v344_v51 = vadd.f32 %v343_v49, %v68_v44  ;;  %v345_v53 = vpop.f32.mrb[1].mxu1 }
  0xea   :  { %v303_v52 = vadd.f32 %v302_v50, %v64_v45  ;;  %v304_v54 = vpop.f32.mrb[2].mxu0  ;;  %v346_v55 = vadd.f32 %v345_v53, %v72_v46  ;;  %v347_v57 = vpop.f32.mrb[2].mxu1  ;;  %v1390_v50 = vld [vmem:[%s1767_s3 + $0x198] sm:$0xff]  }
  0xeb   :  { %v305_v56 = vadd.f32 %v304_v54, %v60_v43  ;;  %v306_v58 = vpop.f32.mrb[3].mxu0  ;;  %v440_v59 = vmax.f32 %v344_v51, 0.0  ;;  %v348_v60 = vadd.f32 %v347_v57, %v68_v44  ;;  %v349_v62 = vpop.f32.mrb[3].mxu1  ;;  %v438_v63 = vmax.f32 %v301_v48, 0.0  ;;  %v1389_v44 = vld [vmem:[%s1767_s3 + $0x118] sm:$0xff]   ;;  %v1391_v51 = vld [vmem:[%s1767_s3 + $0x160] sm:$0xff]  }
  0xec   :  { %v307_v61 = vadd.f32 %v306_v58, %v64_v45  ;;  %v441_v0 = vmax.f32 %v346_v55, 0.0  ;;  %v350_v2 = vadd.f32 %v349_v62, %v72_v46  ;;  %v439_v3 = vmax.f32 %v303_v52, 0.0  ;;  %v1392_v55 = vld [vmem:[%s1767_s3 + $0x1e0] sm:$0xff]  }
  0xed   :  { %v446_v1 = vmax.f32 %v305_v56, 0.0  ;;  %v448_v4 = vmax.f32 %v348_v60, 0.0  ;;  %v1393_v60 = vld [vmem:[%s1767_s3 + $0x120] sm:$0xff]  }
  0xee   :  { %v447_v5 = vmax.f32 %v307_v61, 0.0  ;;  %v449_v7 = vmax.f32 %v350_v2, 0.0  ;;  %v1396_v2 = vld [vmem:[%s1767_s3 + $0x1e8] sm:$0xff]  }
  0xef   :  { %v454_v6 = vpack.c.bf16 %v446_v1, %v438_v63  ;;  %v456_v8 = vpack.c.bf16 %v448_v4, %v440_v59  ;;  %v1394_v63 = vld [vmem:[%s1767_s3 + $0x1a0] sm:$0xff]   ;;  %v1398_v4 = vld [vmem:[%s1767_s3 + $0x1a8] sm:$0xff]  }
  0xf0   :  { %v455_v9 = vpack.c.bf16 %v447_v5, %v439_v3  ;;  %v457_v11 = vpack.c.bf16 %v449_v7, %v441_v0  ;;  %v1395_v0 = vld [vmem:[%s1767_s3 + $0x168] sm:$0xff]   ;;  %v1399_v5 = vld [vmem:[%s1767_s3 + $0x170] sm:$0xff]  }
  0xf1   :  { %v1397_v3 = vld [vmem:[%s1767_s3 + $0x128] sm:$0xff]   ;;  %v1401_v7 = vld [vmem:[%s1767_s3 + $0x130] sm:$0xff]  }
  0xf2   :  { %1013 = vmatprep.mubr.bf16.mxu0 %v455_v9  ;;  %1054 = vmatprep.mubr.bf16.mxu1 %v457_v11  ;;  %v1403_v9 = vld [vmem:[%s1767_s3 + $0x178] sm:$0xff]  }
  0xf3   :  { %1014 = vmatmul.mubr.bf16.vlgmr.msra.gmra.mrb[8].mxu0 %v454_v6  ;;  %1055 = vmatmul.mubr.bf16.vlgmr.msra.gmra.mrb[8].mxu1 %v456_v8  ;;  %v1400_v6 = vld [vmem:[%s1767_s3 + $0x1f0] sm:$0xff]   ;;  %v1405_v11 = vld [vmem:[%s1767_s3 + $0x138] sm:$0xff]  }
  0xf4   :  { %1298 = vmatpush3.bf16.msra.mxu0 %v1377_v10  ;;  %1320 = vmatpush3.bf16.msra.mxu1 %v1378_v12  ;;  %v1402_v8 = vld [vmem:[%s1767_s3 + $0x1b0] sm:$0xff]   ;;  %v1404_v10 = vld [vmem:[%s1767_s3 + $0x1f8] sm:$0xff]  }
  0xf5   :  { %1299 = vmatprep.subr.bf16.mxu0 %v1379_v13  ;;  %1321 = vmatprep.subr.bf16.mxu1 %v1380_v15  ;;  %v1406_v12 = vld [vmem:[%s1767_s3 + $0x1b8] sm:$0xff]   ;;  %v1188_v15 = vld [vmem:[%s1769_s4] ss:$0 sm:$0xff] }
  0xf8   :  { %1300 = vmatpush3.bf16.msra.mxu0 %v1381_v19  ;;  %v386_v28 = vpop.f32.mrb[4].mxu0  ;;  %1322 = vmatpush3.bf16.msra.mxu1 %v1382_v20  ;;  %v429_v33 = vpop.f32.mrb[4].mxu1 }
  0xf9   :  { %1301 = vmatprep.subr.bf16.mxu0 %v1383_v21  ;;  %v387_v31 = vadd.f32 %v386_v28, %v76_v22  ;;  %v388_v32 = vpop.f32.mrb[5].mxu0  ;;  %1323 = vmatprep.subr.bf16.mxu1 %v1384_v23  ;;  %v430_v37 = vadd.f32 %v429_v33, %v84_v25  ;;  %v431_v38 = vpop.f32.mrb[5].mxu1 }
  0xfa   :  { %v389_v35 = vadd.f32 %v388_v32, %v80_v24  ;;  %v390_v36 = vpop.f32.mrb[6].mxu0  ;;  %v432_v42 = vadd.f32 %v431_v38, %v88_v26  ;;  %v433_v43 = vpop.f32.mrb[6].mxu1 }
  0xfb   :  { %v442_v39 = vmax.f32 %v387_v31, 0.0  ;;  %v391_v40 = vadd.f32 %v390_v36, %v76_v22  ;;  %v392_v41 = vpop.f32.mrb[7].mxu0  ;;  %v444_v46 = vmax.f32 %v430_v37, 0.0  ;;  %v434_v48 = vadd.f32 %v433_v43, %v84_v25  ;;  %v435_v49 = vpop.f32.mrb[7].mxu1 }
  0xfc   :  { %1302 = vmatpush3.bf16.msra.mxu0 %v1385_v27  ;;  %v443_v45 = vmax.f32 %v389_v35, 0.0  ;;  %v393_v47 = vadd.f32 %v392_v41, %v80_v24  ;;  %1324 = vmatpush3.bf16.msra.mxu1 %v1386_v29  ;;  %v445_v53 = vmax.f32 %v432_v42, 0.0  ;;  %v436_v54 = vadd.f32 %v435_v49, %v88_v26 }
  0xfd   :  { %1303 = vmatprep.subr.bf16.mxu0 %v1387_v30  ;;  %v450_v52 = vmax.f32 %v391_v40, 0.0  ;;  %1325 = vmatprep.subr.bf16.mxu1 %v1388_v34  ;;  %v452_v57 = vmax.f32 %v434_v48, 0.0 }
  0xfe   :  { %v451_v56 = vmax.f32 %v393_v47, 0.0  ;;  %v453_v59 = vmax.f32 %v436_v54, 0.0 }
  0xff   :  { %v458_v58 = vpack.c.bf16 %v450_v52, %v442_v39  ;;  %v460_v62 = vpack.c.bf16 %v452_v57, %v444_v46 }
 0x100   :  { %1304 = vmatpush3.bf16.msra.mxu0 %v1389_v44  ;;  %v459_v61 = vpack.c.bf16 %v451_v56, %v443_v45  ;;  %1326 = vmatpush3.bf16.msra.mxu1 %v1390_v50  ;;  %v461_v1 = vpack.c.bf16 %v453_v59, %v445_v53 }
 0x101   :  { %1305 = vmatprep.subr.bf16.mxu0 %v1391_v51  ;;  %1327 = vmatprep.subr.bf16.mxu1 %v1392_v55 }
 0x102   :  { %1095 = vmatprep.mubr.bf16.mxu0 %v459_v61  ;;  %1136 = vmatprep.mubr.bf16.mxu1 %v461_v1 }
 0x104   :  { %1306 = vmatpush3.bf16.msra.mxu0 %v1393_v60  ;;  %1328 = vmatpush3.bf16.msra.mxu1 %v1394_v63 }
 0x105   :  { %1307 = vmatprep.subr.bf16.mxu0 %v1395_v0  ;;  %1329 = vmatprep.subr.bf16.mxu1 %v1396_v2 }
 0x108   :  { %1308 = vmatpush3.bf16.msra.mxu0 %v1397_v3  ;;  %1330 = vmatpush3.bf16.msra.mxu1 %v1398_v4 }
 0x109   :  { %1309 = vmatprep.subr.bf16.mxu0 %v1399_v5  ;;  %1331 = vmatprep.subr.bf16.mxu1 %v1400_v6 }
 0x10c   :  { %1310 = vmatpush3.bf16.msra.mxu0 %v1401_v7  ;;  %1332 = vmatpush3.bf16.msra.mxu1 %v1402_v8 }
 0x10d   :  { %1311 = vmatprep.subr.bf16.mxu0 %v1403_v9  ;;  %1333 = vmatprep.subr.bf16.mxu1 %v1404_v10 }
 0x110   :  { %1312 = vmatpush3.bf16.msra.mxu0 %v1405_v11  ;;  %1334 = vmatpush3.bf16.msra.mxu1 %v1406_v12 }
 0x113   :  { %1096 = vmatmul.mubr.bf16.vlgmr.msra.gmra.mrb[12].mxu0 %v458_v58  ;;  %1137 = vmatmul.mubr.bf16.vlgmr.msra.gmra.mrb[12].mxu1 %v460_v62 }
 0x1c6   :  { %v1269_v13 = vpop.f32.mrb[8].mxu0  ;;  %v1291_v14 = vpop.f32.mrb[8].mxu1 }
 0x1c7   :  { %v1270_v16 = vpop.f32.mrb[9].mxu0  ;;  %v1292_v18 = vpop.f32.mrb[9].mxu1 }
 0x1c8   :  { %v1271_v17 = vadd.f32 %v1270_v16, %v1269_v13  ;;  %v1272_v19 = vpop.f32.mrb[10].mxu0  ;;  %v1293_v20 = vadd.f32 %v1292_v18, %v1291_v14  ;;  %v1294_v21 = vpop.f32.mrb[10].mxu1 }
 0x1c9   :  { %v1273_v22 = vpop.f32.mrb[11].mxu0  ;;  %v1295_v25 = vpop.f32.mrb[11].mxu1 }
 0x1ca   :  { %v1016_v23 = vadd.f32 %v1271_v17, %v1188_v15  ;;  %v1274_v24 = vadd.f32 %v1273_v22, %v1272_v19  ;;  %v1296_v26 = vadd.f32 %v1295_v25, %v1294_v21 }
 0x1cc   :  { %v1057_v27 = vadd.f32 %v1293_v20, %v1016_v23  ;;  %v1019_v28 = vadd.f32 %v1274_v24, %v1188_v15 }
 0x1ce   :  { %v1060_v29 = vadd.f32 %v1296_v26, %v1019_v28 }
 0x1e6   :  { %v1313_v30 = vpop.f32.mrb[12].mxu0  ;;  %v1335_v31 = vpop.f32.mrb[12].mxu1 }
 0x1e7   :  { %v1314_v32 = vpop.f32.mrb[13].mxu0  ;;  %v1336_v34 = vpop.f32.mrb[13].mxu1 }
 0x1e8   :  { %v1315_v33 = vadd.f32 %v1314_v32, %v1313_v30  ;;  %v1316_v35 = vpop.f32.mrb[14].mxu0  ;;  %v1337_v36 = vadd.f32 %v1336_v34, %v1335_v31  ;;  %v1338_v37 = vpop.f32.mrb[14].mxu1 }
 0x1e9   :  { %v1317_v38 = vpop.f32.mrb[15].mxu0  ;;  %v1339_v41 = vpop.f32.mrb[15].mxu1 }
 0x1ea   :  { %v1098_v39 = vadd.f32 %v1315_v33, %v1057_v27  ;;  %v1318_v40 = vadd.f32 %v1317_v38, %v1316_v35  ;;  %v1340_v42 = vadd.f32 %v1339_v41, %v1338_v37 }
 0x1ec   :  { %v1139_v43 = vadd.f32 %v1337_v36, %v1098_v39  ;;  %v1101_v44 = vadd.f32 %v1318_v40, %v1060_v29 }
 0x1ee   :  { %1145 = vst [vmem:[%s1770_s5] sm:$0xff] %v1139_v43  ;;  %v1142_v45 = vadd.f32 %v1340_v42, %v1101_v44 }
 0x1f0   :  { %1146 = vst [vmem:[%s1770_s5 + $0x8] sm:$0xff] %v1142_v45 }

// kernel: _lambda_.5
= control target key start
LH: loop header
LB: loop body
LE: loop exit
PB: predicated region body
PF: predicated region fallthrough
CT: control target
= control target key end

     0   :  { %s6048_s12 = smov 0   ;;  %s7396_s0 = inlined_call_operand.vmem [shape: bf16[2,4,4,512], index: 0, kind: input, shape index: {}]   ;;  %s7397_s1 = inlined_call_operand.vmem [shape: bf16[2048,128], index: 1, kind: input, shape index: {}]   ;;  %s7398_s2 = inlined_call_operand.vmem [shape: f32[1,128], index: 2, kind: input, shape index: {}]   ;;  %s7399_s3 = inlined_call_operand.vmem [shape: bf16[2,3,3,128], index: 3, kind: output, shape index: {}]  }
   0x1 LB: > { %s4685_s13 = sadd.s32 4294967295, %s6025_s12   ;;  %p4689_p0 = scmp.ge.s32.totalorder %s6025_s12, 1  ;;  %s6025_s12 = sphi %s6048_s12, %s13_s12  }
   0x2   : > { %p137_p1 = scmp.lt.s32.totalorder %s6025_s12, 3 }
   0x4   : > { %p138_p2 = pnand %p4689_p0, %p137_p1 }
   0x5   : > { %v5631_v0 = vld [vmem:[%s7397_s1 + $0x140] sm:$0xff] (!%p138_p2)   ;;  %v5635_v4 = vld [vmem:[%s7397_s1 + $0x148] sm:$0xff] (!%p138_p2)   ;;  %v5639_v8 = vld [vmem:[%s7397_s1 + $0x150] sm:$0xff] (!%p138_p2)   ;;  %p161_p3 = scmp.lt.s32.totalorder (!%p138_p2), %s4685_s13, 1  ;;  %v307_v28 = vlaneseq (!%p138_p2)  ;;  %v6027_v36 = vmov (!%p138_p2), 1983009808  }
   0x6   : > { %141 = sbr.rel (%p138_p2) target bundleno = 619 (0x26b), region = 32  ;;  %v5632_v1 = vld [vmem:[%s7397_s1 + $0x1c0] sm:$0xff] (!%p138_p2)   ;;  %5093 = vmatprep.subr.bf16.mxu0 (!%p138_p2), %v5631_v0  ;;  %v5636_v5 = vld [vmem:[%s7397_s1 + $0x1c8] sm:$0xff] (!%p138_p2)   ;;  %v5640_v9 = vld [vmem:[%s7397_s1 + $0x1d0] sm:$0xff] (!%p138_p2)   ;;  %v305_v37 = vunpack.c.l.s4 (!%p138_p2), %v6027_v36  ;;  %vm1659_vm0 = vsmask.f32 (!%p138_p2), 1280 }
   0x7   : > { %v5633_v2 = vld [vmem:[%s7397_s1 + $0x100] sm:$0xff] (!%p138_p2)   ;;  %5115 = vmatprep.subr.bf16.mxu1 (!%p138_p2), %v5632_v1  ;;  %v5637_v6 = vld [vmem:[%s7397_s1 + $0x108] sm:$0xff] (!%p138_p2)   ;;  %v5641_v10 = vld [vmem:[%s7397_s1 + $0x110] sm:$0xff] (!%p138_p2)   ;;  %v308_v33 = vshrl.u32 (!%p138_p2), %v307_v28, 7  ;;  %vm1658_vm1 = vcmask (!%p138_p2), 1041408  }
   0x8   : > { %v5634_v3 = vld [vmem:[%s7397_s1 + $0x180] sm:$0xff] (!%p138_p2)   ;;  %5094 = vmatpush3.bf16.msra.mxu0 (!%p138_p2), %v5633_v2  ;;  %v5638_v7 = vld [vmem:[%s7397_s1 + $0x188] sm:$0xff] (!%p138_p2)   ;;  %v5642_v11 = vld [vmem:[%s7397_s1 + $0x190] sm:$0xff] (!%p138_p2)   ;;  %v306_v39 = vunpack.c.0.s8 (!%p138_p2), %v305_v37 }
   0x9   : > { %5116 = vmatpush3.bf16.msra.mxu1 (!%p138_p2), %v5634_v3  ;;  %5095 = vmatprep.subr.bf16.mxu0 (!%p138_p2), %v5635_v4  ;;  %v5643_v12 = vld [vmem:[%s7397_s1 + $0x158] sm:$0xff] (!%p138_p2)   ;;  %v5647_v16 = vld [vmem:[%s7397_s1 + $0x160] sm:$0xff] (!%p138_p2)   ;;  %v5651_v20 = vld [vmem:[%s7397_s1 + $0x168] sm:$0xff] (!%p138_p2)  }
   0xa   : > { %5117 = vmatprep.subr.bf16.mxu1 (!%p138_p2), %v5636_v5  ;;  %v5644_v13 = vld [vmem:[%s7397_s1 + $0x1d8] sm:$0xff] (!%p138_p2)   ;;  %v5648_v17 = vld [vmem:[%s7397_s1 + $0x1e0] sm:$0xff] (!%p138_p2)   ;;  %v5652_v21 = vld [vmem:[%s7397_s1 + $0x1e8] sm:$0xff] (!%p138_p2)   ;;  %v6171_v41 = vsub.s32 (!%p138_p2), %v306_v39, %v308_v33 }
   0xb   : > { %v5645_v14 = vld [vmem:[%s7397_s1 + $0x118] sm:$0xff] (!%p138_p2)   ;;  %v5649_v18 = vld [vmem:[%s7397_s1 + $0x120] sm:$0xff] (!%p138_p2)   ;;  %v5653_v22 = vld [vmem:[%s7397_s1 + $0x128] sm:$0xff] (!%p138_p2)  }
   0xc   : > { %5096 = vmatpush3.bf16.msra.mxu0 (!%p138_p2), %v5637_v6  ;;  %v5646_v15 = vld [vmem:[%s7397_s1 + $0x198] sm:$0xff] (!%p138_p2)   ;;  %v5650_v19 = vld [vmem:[%s7397_s1 + $0x1a0] sm:$0xff] (!%p138_p2)   ;;  %v5654_v23 = vld [vmem:[%s7397_s1 + $0x1a8] sm:$0xff] (!%p138_p2)  }
   0xd   : > { %5118 = vmatpush3.bf16.msra.mxu1 %v5638_v7  ;;  %5097 = vmatprep.subr.bf16.mxu0 %v5639_v8  ;;  %s7403_s13 = smov (!%p161_p3, %s4685_s13), 1  ;;  %v5655_v24 = vld [vmem:[%s7397_s1 + $0x170] sm:$0xff]   ;;  %v5659_v29 = vld [vmem:[%s7397_s1 + $0x178] sm:$0xff]   ;;  %v5664_v35 = vld [vmem:[%s7397_s1 + $0x40] sm:$0xff]  }
   0xe   : > { %5119 = vmatprep.subr.bf16.mxu1 %v5640_v9  ;;  %v5656_v25 = vld [vmem:[%s7397_s1 + $0x1f0] sm:$0xff]   ;;  %s5092_s18 = sshll.u32 %s7403_s13, 5  ;;  %v5660_v30 = vld [vmem:[%s7397_s1 + $0x1f8] sm:$0xff]   ;;  %v5665_v38 = vld [vmem:[%s7397_s1 + $0xc0] sm:$0xff]   ;;  %s5621_s7 = smul.u32 6, %s7403_s13 }
   0xf   : > { %v5657_v26 = vld [vmem:[%s7397_s1 + $0x130] sm:$0xff]   ;;  %s6156_s27 = scalar_lea.vmem %s7396_s0, %s5092_s18  ;;  %v5661_v31 = vld [vmem:[%s7397_s1 + $0x138] sm:$0xff]   ;;  %v5666_v58 = vld [vmem:[%s7397_s1] sm:$0xff]  }
  0x10   : > { %5098 = vmatpush3.bf16.msra.mxu0 %v5641_v10  ;;  %v5658_v27 = vld [vmem:[%s7397_s1 + $0x1b0] sm:$0xff]   ;;  %v5662_v32 = vld [vmem:[%s7397_s1 + $0x1b8] sm:$0xff]   ;;  %v173_v34 = vld [vmem:[%s6156_s27] sm:$0xff]  ;;  %s7267_s28 = scalar_lea.vmem %s7399_s3, %s5621_s7 }
  0x11   : > { %5120 = vmatpush3.bf16.msra.mxu1 %v5642_v11  ;;  %5099 = vmatprep.subr.bf16.mxu0 %v5643_v12  ;;  %v303_v40 = vcombine.high %v173_v34, %v173_v34  ;;  %v6174_v42 = vrot.slane %v173_v34, %v6171_v41  ;;  %v5667_v61 = vld [vmem:[%s7397_s1 + $0x80] sm:$0xff]   ;;  %v5668_v0 = vld [vmem:[%s7397_s1 + $0x48] sm:$0xff]   ;;  %v5672_v4 = vld [vmem:[%s7397_s1 + $0x50] sm:$0xff]  }
  0x12   : > { %5121 = vmatprep.subr.bf16.mxu1 %v5644_v13  ;;  %v5669_v1 = vld [vmem:[%s7397_s1 + $0xc8] sm:$0xff]   ;;  %v5673_v5 = vld [vmem:[%s7397_s1 + $0xd0] sm:$0xff]   ;;  %v5676_v8 = vld [vmem:[%s7397_s1 + $0x58] sm:$0xff]  }
  0x13   : > { %v6177_v43 = vrot.slane %v303_v40, %v6171_v41  ;;  %v318_v44 = vcombine.high %v6174_v42, %v6174_v42  ;;  %v321_v46 = vshrl.u32 %v6174_v42, 16  ;;  %v323_v47 = vshll.u32 %v6174_v42, 16  ;;  %v5670_v2 = vld [vmem:[%s7397_s1 + $0x8] sm:$0xff]   ;;  %v5674_v6 = vld [vmem:[%s7397_s1 + $0x10] sm:$0xff]   ;;  %v5677_v9 = vld [vmem:[%s7397_s1 + $0xd8] sm:$0xff]  }
  0x14   : > { %5100 = vmatpush3.bf16.msra.mxu0 %v5645_v14  ;;  %v5671_v3 = vld [vmem:[%s7397_s1 + $0x88] sm:$0xff]   ;;  %v5675_v7 = vld [vmem:[%s7397_s1 + $0x90] sm:$0xff]   ;;  %v5678_v10 = vld [vmem:[%s7397_s1 + $0x18] sm:$0xff]  }
  0x15   : > { %5122 = vmatpush3.bf16.msra.mxu1 %v5646_v15  ;;  %5101 = vmatprep.subr.bf16.mxu0 %v5647_v16  ;;  %v319_v45 = vcombine.high %v6177_v43, %v6177_v43  ;;  %v335_v48 = vshrl.u32 %v6177_v43, 16  ;;  %v337_v49 = vshll.u32 %v6177_v43, 16  ;;  %v328_v50 = vshrl.u32 %v318_v44, 16  ;;  %v5679_v11 = vld [vmem:[%s7397_s1 + $0x98] sm:$0xff]   ;;  %v5680_v12 = vld [vmem:[%s7397_s1 + $0x60] sm:$0xff]   ;;  %v5684_v16 = vld [vmem:[%s7397_s1 + $0x68] sm:$0xff]  }
  0x16   : > { %5123 = vmatprep.subr.bf16.mxu1 %v5648_v17  ;;  %v330_v51 = vshll.u32 %v318_v44, 16  ;;  %v325_v54 = vrot.slane %v323_v47, 1  ;;  %v5681_v13 = vld [vmem:[%s7397_s1 + $0xe0] sm:$0xff]   ;;  %v5685_v17 = vld [vmem:[%s7397_s1 + $0xe8] sm:$0xff]   ;;  %v5704_v36 = vld [vmem:[%s7397_s1 + $0x250] sm:$0xff]  }
  0x17   : > { %v342_v52 = vshrl.u32 %v319_v45, 16  ;;  %v344_v53 = vshll.u32 %v319_v45, 16  ;;  %v339_v55 = vrot.slane %v337_v49, 1  ;;  %v5682_v14 = vld [vmem:[%s7397_s1 + $0x20] sm:$0xff]   ;;  %v5701_v33 = vld [vmem:[%s7397_s1 + $0x2c8] sm:$0xff]   ;;  %v5705_v37 = vld [vmem:[%s7397_s1 + $0x2d0] sm:$0xff]  }
  0x18   : > { %5102 = vmatpush3.bf16.msra.mxu0 %v5649_v18  ;;  %v332_v56 = vrot.slane %v330_v51, 1  ;;  %v326_v59 = vor.u32 %v325_v54, %v321_v46  ;;  %v5683_v15 = vld [vmem:[%s7397_s1 + $0xa0] sm:$0xff]   ;;  %v5686_v18 = vld [vmem:[%s7397_s1 + $0x28] sm:$0xff]   ;;  %v5707_v39 = vld [vmem:[%s7397_s1 + $0x290] sm:$0xff]  }
  0x19   : > { %5124 = vmatpush3.bf16.msra.mxu1 %v5650_v19  ;;  %5103 = vmatprep.subr.bf16.mxu0 %v5651_v20  ;;  %v346_v57 = vrot.slane %v344_v53, 1  ;;  %v340_v60 = vor.u32 %v339_v55, %v335_v48  ;;  %v5687_v19 = vld [vmem:[%s7397_s1 + $0xa8] sm:$0xff]   ;;  %v5688_v20 = vld [vmem:[%s7397_s1 + $0x70] sm:$0xff]   ;;  %v5696_v28 = vld [vmem:[%s7397_s1 + $0x240] sm:$0xff]  }
  0x1a   : > { %5125 = vmatprep.subr.bf16.mxu1 %v5652_v21  ;;  %v333_v62 = vor.u32 %v332_v56, %v328_v50  ;;  %v5689_v21 = vld [vmem:[%s7397_s1 + $0xf0] sm:$0xff]   ;;  %v5702_v34 = vld [vmem:[%s7397_s1 + $0x208] sm:$0xff]   ;;  %v5708_v40 = vld [vmem:[%s7397_s1 + $0x258] sm:$0xff]  }
  0x1b   : > { %v347_v63 = vor.u32 %v346_v57, %v342_v52  ;;  %v5713_v46 = vld [vmem:[%s7397_s1 + $0x2e0] sm:$0xff]   ;;  %v5716_v49 = vld [vmem:[%s7397_s1 + $0x268] sm:$0xff]   ;;  %v5720_v56 = vld [vmem:[%s7397_s1 + $0x270] sm:$0xff]  }
  0x1c   : > { %5104 = vmatpush3.bf16.msra.mxu0 %v5653_v22  ;;  %576 = vmatprep.mubr.bf16.mxu0 %v333_v62  ;;  %v5690_v22 = vld [vmem:[%s7397_s1 + $0x30] sm:$0xff]   ;;  %v5714_v47 = vld [vmem:[%s7397_s1 + $0x220] sm:$0xff]   ;;  %v5717_v50 = vld [vmem:[%s7397_s1 + $0x2e8] sm:$0xff]  }
  0x1d   : > { %5126 = vmatpush3.bf16.msra.mxu1 %v5654_v23  ;;  %5105 = vmatprep.subr.bf16.mxu0 %v5655_v24  ;;  %v5691_v23 = vld [vmem:[%s7397_s1 + $0xb0] sm:$0xff]   ;;  %v5692_v24 = vld [vmem:[%s7397_s1 + $0x78] sm:$0xff]   ;;  %v5715_v48 = vld [vmem:[%s7397_s1 + $0x2a0] sm:$0xff]  }
  0x1e   : > { %5127 = vmatprep.subr.bf16.mxu1 %v5656_v25  ;;  %616 = vmatprep.mubr.bf16.mxu1 %v347_v63  ;;  %v5693_v25 = vld [vmem:[%s7397_s1 + $0xf8] sm:$0xff]   ;;  %v5718_v51 = vld [vmem:[%s7397_s1 + $0x228] sm:$0xff]   ;;  %v5721_v57 = vld [vmem:[%s7397_s1 + $0x2f0] sm:$0xff]  }
  0x1f   : > { %v4757_v52 = vld [vmem:[%s6156_s27 + $0x8] sm:$0xff]  ;;  %v5724_v63 = vld [vmem:[%s7397_s1 + $0x278] sm:$0xff]   ;;  %vm7285_vm2 = vmand %vm1658_vm1, %vm1659_vm0 }
  0x20   : > { %5106 = vmatpush3.bf16.msra.mxu0 %v5657_v26  ;;  %v5694_v26 = vld [vmem:[%s7397_s1 + $0x38] sm:$0xff]   ;;  %v5719_v53 = vld [vmem:[%s7397_s1 + $0x2a8] sm:$0xff]   ;;  %v6353_v54 = vrot.slane %v4757_v52, %v6171_v41  ;;  %v967_v55 = vcombine.high %v4757_v52, %v4757_v52  ;;  %v5763_v52 = vld [vmem:[%s7397_s1 + $0x100] sm:$0xff]  }
  0x21   : > { %5128 = vmatpush3.bf16.msra.mxu1 %v5658_v27  ;;  %5107 = vmatprep.subr.bf16.mxu0 %v5659_v29  ;;  %v5695_v27 = vld [vmem:[%s7397_s1 + $0xb8] sm:$0xff]   ;;  %v5697_v29 = vld [vmem:[%s7397_s1 + $0x2c0] sm:$0xff]  }
  0x22   : > { %5129 = vmatprep.subr.bf16.mxu1 %v5660_v30  ;;  %v5698_v30 = vld [vmem:[%s7397_s1 + $0x200] sm:$0xff]  }
  0x24   : > { %5108 = vmatpush3.bf16.msra.mxu0 %v5661_v31  ;;  %v5699_v31 = vld [vmem:[%s7397_s1 + $0x280] sm:$0xff]  }
  0x25   : > { %5130 = vmatpush3.bf16.msra.mxu1 %v5662_v32  ;;  %5137 = vmatprep.subr.bf16.mxu0 %v5664_v35  ;;  %v5700_v32 = vld [vmem:[%s7397_s1 + $0x248] sm:$0xff]  }
  0x26   : > { %5159 = vmatprep.subr.bf16.mxu1 %v5665_v38  ;;  %v5703_v35 = vld [vmem:[%s7397_s1 + $0x288] sm:$0xff]   ;;  %v5706_v38 = vld [vmem:[%s7397_s1 + $0x210] sm:$0xff]  }
  0x27   : > { %577 = vmatmul.mubr.bf16.vlgmr.msra.gmra.mrb[0].mxu0 %v326_v59  ;;  %v6366_v59 = vrot.slane %v967_v55, %v6171_v41 }
  0x28   : > { %617 = vmatmul.mubr.bf16.vlgmr.msra.gmra.mrb[0].mxu1 %v340_v60  ;;  %5138 = vmatpush3.bf16.msra.mxu0 %v5666_v58  ;;  %v6363_v58 = vcombine.high %v6353_v54, %v6353_v54  ;;  %v5722_v60 = vld [vmem:[%s7397_s1 + $0x230] sm:$0xff]  }
  0x29   : > { %5160 = vmatpush3.bf16.msra.mxu1 %v5667_v61  ;;  %5139 = vmatprep.subr.bf16.mxu0 %v5668_v0  ;;  %v5723_v61 = vld [vmem:[%s7397_s1 + $0x2b0] sm:$0xff]   ;;  %v6377_v62 = vcombine.high %v6366_v59, %v6366_v59  ;;  %v5725_v0 = vld [vmem:[%s7397_s1 + $0x2f8] sm:$0xff]  }
  0x2a   : > { %5161 = vmatprep.subr.bf16.mxu1 %v5669_v1  ;;  %852 = vmatprep.mubr.bf16.mxu0 %v318_v44  ;;  %v5711_v44 = vld [vmem:[%s7397_s1 + $0x298] sm:$0xff]  }
  0x2b   : > { %892 = vmatprep.mubr.bf16.mxu1 %v319_v45  ;;  %v5712_v45 = vld [vmem:[%s7397_s1 + $0x260] sm:$0xff]   ;;  %v5726_v1 = vld [vmem:[%s7397_s1 + $0x238] sm:$0xff]  }
  0x2c   : > { %5140 = vmatpush3.bf16.msra.mxu0 %v5670_v2  ;;  %v5727_v2 = vld [vmem:[%s7397_s1 + $0x2b8] sm:$0xff]  }
  0x2d   : > { %5162 = vmatpush3.bf16.msra.mxu1 %v5671_v3  ;;  %5141 = vmatprep.subr.bf16.mxu0 %v5672_v4  ;;  %v1354_v3 = vshll.u32 %v6363_v58, 16  ;;  %v5729_v4 = vld [vmem:[%s7397_s1 + $0x340] sm:$0xff]  }
  0x2e   : > { %5163 = vmatprep.subr.bf16.mxu1 %v5673_v5  ;;  %v1368_v5 = vshll.u32 %v6377_v62, 16 }
  0x30   : > { %5142 = vmatpush3.bf16.msra.mxu0 %v5674_v6  ;;  %v5730_v6 = vld [vmem:[%s7397_s1 + $0x3c0] sm:$0xff]  }
  0x31   : > { %5164 = vmatpush3.bf16.msra.mxu1 %v5675_v7  ;;  %5143 = vmatprep.subr.bf16.mxu0 %v5676_v8  ;;  %v1352_v7 = vshrl.u32 %v6363_v58, 16  ;;  %v1366_v8 = vshrl.u32 %v6377_v62, 16 }
  0x32   : > { %5165 = vmatprep.subr.bf16.mxu1 %v5677_v9  ;;  %v5731_v9 = vld [vmem:[%s7397_s1 + $0x300] sm:$0xff]  }
  0x34   : > { %5144 = vmatpush3.bf16.msra.mxu0 %v5678_v10  ;;  %v1356_v10 = vrot.slane %v1354_v3, 1  ;;  %v5772_v3 = vld [vmem:[%s7397_s1 + $0x190] sm:$0xff]  }
  0x35   : > { %5166 = vmatpush3.bf16.msra.mxu1 %v5679_v11  ;;  %5145 = vmatprep.subr.bf16.mxu0 %v5680_v12  ;;  %v1370_v11 = vrot.slane %v1368_v5, 1  ;;  %v5732_v12 = vld [vmem:[%s7397_s1 + $0x380] sm:$0xff]   ;;  %v5774_v5 = vld [vmem:[%s7397_s1 + $0x1d8] sm:$0xff]  }
  0x36   : > { %5167 = vmatprep.subr.bf16.mxu1 %v5681_v13  ;;  %v5733_v13 = vld [vmem:[%s7397_s1 + $0x348] sm:$0xff]  }
  0x38   : > { %5146 = vmatpush3.bf16.msra.mxu0 %v5682_v14  ;;  %v5734_v14 = vld [vmem:[%s7397_s1 + $0x3c8] sm:$0xff]  }
  0x39   : > { %5168 = vmatpush3.bf16.msra.mxu1 %v5683_v15  ;;  %5147 = vmatprep.subr.bf16.mxu0 %v5684_v16  ;;  %v5735_v15 = vld [vmem:[%s7397_s1 + $0x308] sm:$0xff]   ;;  %v6417_v16 = vor.u32 %v1356_v10, %v1352_v7  ;;  %v5776_v7 = vld [vmem:[%s7397_s1 + $0x198] sm:$0xff]   ;;  %v5779_v10 = vld [vmem:[%s7397_s1 + $0x120] sm:$0xff]  }
  0x3a   : > { %5169 = vmatprep.subr.bf16.mxu1 %v5685_v17  ;;  %v6419_v17 = vor.u32 %v1370_v11, %v1366_v8  ;;  %v5777_v8 = vld [vmem:[%s7397_s1 + $0x160] sm:$0xff]  }
  0x3b   : > { %v5780_v11 = vld [vmem:[%s7397_s1 + $0x1a0] sm:$0xff]  }
  0x3c   : > { %5148 = vmatpush3.bf16.msra.mxu0 %v5686_v18  ;;  %v5736_v18 = vld [vmem:[%s7397_s1 + $0x388] sm:$0xff]  }
  0x3d   : > { %5170 = vmatpush3.bf16.msra.mxu1 %v5687_v19  ;;  %5149 = vmatprep.subr.bf16.mxu0 %v5688_v20  ;;  %v5737_v19 = vld [vmem:[%s7397_s1 + $0x350] sm:$0xff]  }
  0x3e   : > { %5171 = vmatprep.subr.bf16.mxu1 %v5689_v21  ;;  %v5738_v20 = vld [vmem:[%s7397_s1 + $0x3d0] sm:$0xff]  }
  0x3f   : > { %v5739_v21 = vld [vmem:[%s7397_s1 + $0x310] sm:$0xff]  }
  0x40   : > { %5150 = vmatpush3.bf16.msra.mxu0 %v5690_v22  ;;  %v5740_v22 = vld [vmem:[%s7397_s1 + $0x390] sm:$0xff]  }
  0x41   : > { %5172 = vmatpush3.bf16.msra.mxu1 %v5691_v23  ;;  %5151 = vmatprep.subr.bf16.mxu0 %v5692_v24  ;;  %v5741_v23 = vld [vmem:[%s7397_s1 + $0x358] sm:$0xff]  }
  0x42   : > { %5173 = vmatprep.subr.bf16.mxu1 %v5693_v25  ;;  %v5742_v24 = vld [vmem:[%s7397_s1 + $0x3d8] sm:$0xff]  }
  0x43   : > { %v5743_v25 = vld [vmem:[%s7397_s1 + $0x318] sm:$0xff]  }
  0x44   : > { %5152 = vmatpush3.bf16.msra.mxu0 %v5694_v26  ;;  %v5744_v26 = vld [vmem:[%s7397_s1 + $0x398] sm:$0xff]  }
  0x45   : > { %5174 = vmatpush3.bf16.msra.mxu1 %v5695_v27  ;;  %5181 = vmatprep.subr.bf16.mxu0 %v5696_v28  ;;  %v5745_v27 = vld [vmem:[%s7397_s1 + $0x360] sm:$0xff]  }
  0x46   : > { %5203 = vmatprep.subr.bf16.mxu1 %v5697_v29  ;;  %v5746_v28 = vld [vmem:[%s7397_s1 + $0x3e0] sm:$0xff]  }
  0x47   : > { %853 = vmatmul.mubr.bf16.vlgmr.msra.gmra.mrb[4].mxu0 %v6174_v42  ;;  %v5709_v42 = vld [vmem:[%s7397_s1 + $0x2d8] sm:$0xff]   ;;  %v5747_v29 = vld [vmem:[%s7397_s1 + $0x320] sm:$0xff]  }
  0x48   : > { %893 = vmatmul.mubr.bf16.vlgmr.msra.gmra.mrb[4].mxu1 %v6177_v43  ;;  %5182 = vmatpush3.bf16.msra.mxu0 %v5698_v30  ;;  %v5710_v43 = vld [vmem:[%s7397_s1 + $0x218] sm:$0xff]   ;;  %v5748_v30 = vld [vmem:[%s7397_s1 + $0x3a0] sm:$0xff]  }
  0x49   : > { %5204 = vmatpush3.bf16.msra.mxu1 %v5699_v31  ;;  %5183 = vmatprep.subr.bf16.mxu0 %v5700_v32  ;;  %v5749_v31 = vld [vmem:[%s7397_s1 + $0x368] sm:$0xff]  }
  0x4a   : > { %5205 = vmatprep.subr.bf16.mxu1 %v5701_v33  ;;  %1212 = vmatprep.mubr.bf16.mxu0 %v6363_v58  ;;  %v5750_v32 = vld [vmem:[%s7397_s1 + $0x3e8] sm:$0xff]   ;;  %v1347_v33 = vshll.u32 %v6353_v54, 16 }
  0x4b   : > { %1252 = vmatprep.mubr.bf16.mxu1 %v6377_v62 }
  0x4c   : > { %5184 = vmatpush3.bf16.msra.mxu0 %v5702_v34  ;;  %v5751_v34 = vld [vmem:[%s7397_s1 + $0x328] sm:$0xff]  }
  0x4d   : > { %5206 = vmatpush3.bf16.msra.mxu1 %v5703_v35  ;;  %5185 = vmatprep.subr.bf16.mxu0 %v5704_v36  ;;  %v5752_v35 = vld [vmem:[%s7397_s1 + $0x3a8] sm:$0xff]   ;;  %v5753_v36 = vld [vmem:[%s7397_s1 + $0x370] sm:$0xff]  }
  0x4e   : > { %5207 = vmatprep.subr.bf16.mxu1 %v5705_v37  ;;  %v1345_v37 = vshrl.u32 %v6353_v54, 16 }
  0x50   : > { %5186 = vmatpush3.bf16.msra.mxu0 %v5706_v38  ;;  %v5754_v38 = vld [vmem:[%s7397_s1 + $0x3f0] sm:$0xff]  }
  0x51   : > { %5208 = vmatpush3.bf16.msra.mxu1 %v5707_v39  ;;  %5187 = vmatprep.subr.bf16.mxu0 %v5708_v40  ;;  %v1349_v39 = vrot.slane %v1347_v33, 1  ;;  %v5755_v40 = vld [vmem:[%s7397_s1 + $0x330] sm:$0xff]  }
  0x52   : > { %5209 = vmatprep.subr.bf16.mxu1 %v5709_v42  ;;  %v1359_v42 = vshrl.u32 %v6366_v59, 16  ;;  %v5802_v33 = vld [vmem:[%s7397_s1 + $0xd0] sm:$0xff]  }
  0x54   : > { %5188 = vmatpush3.bf16.msra.mxu0 %v5710_v43  ;;  %v5756_v43 = vld [vmem:[%s7397_s1 + $0x3b0] sm:$0xff]  }
  0x55   : > { %5210 = vmatpush3.bf16.msra.mxu1 %v5711_v44  ;;  %5189 = vmatprep.subr.bf16.mxu0 %v5712_v45  ;;  %v1361_v44 = vshll.u32 %v6366_v59, 16  ;;  %v5757_v45 = vld [vmem:[%s7397_s1 + $0x378] sm:$0xff]  }
  0x56   : > { %5211 = vmatprep.subr.bf16.mxu1 %v5713_v46  ;;  %v5758_v46 = vld [vmem:[%s7397_s1 + $0x3f8] sm:$0xff]  }
  0x58   : > { %5190 = vmatpush3.bf16.msra.mxu0 %v5714_v47  ;;  %v5759_v47 = vld [vmem:[%s7397_s1 + $0x338] sm:$0xff]  }
  0x59   : > { %5212 = vmatpush3.bf16.msra.mxu1 %v5715_v48  ;;  %5191 = vmatprep.subr.bf16.mxu0 %v5716_v49  ;;  %v5760_v48 = vld [vmem:[%s7397_s1 + $0x3b8] sm:$0xff]   ;;  %v1363_v49 = vrot.slane %v1361_v44, 1  ;;  %v5814_v44 = vld [vmem:[%s7397_s1 + $0xe8] sm:$0xff]  }
  0x5a   : > { %5213 = vmatprep.subr.bf16.mxu1 %v5717_v50  ;;  %v5761_v50 = vld [vmem:[%s7397_s1 + $0x140] sm:$0xff]  }
  0x5b   : > { %v6515_v55 = vor.u32 %v1363_v49, %v1359_v42  ;;  %v5812_v42 = vld [vmem:[%s7397_s1 + $0xa0] sm:$0xff]   ;;  %v5819_v49 = vld [vmem:[%s7397_s1 + $0x30] sm:$0xff]  }
  0x5c   : > { %5192 = vmatpush3.bf16.msra.mxu0 %v5718_v51  ;;  %v5762_v51 = vld [vmem:[%s7397_s1 + $0x1c0] sm:$0xff]  }
  0x5d   : > { %5214 = vmatpush3.bf16.msra.mxu1 %v5719_v53  ;;  %5193 = vmatprep.subr.bf16.mxu0 %v5720_v56  ;;  %v6513_v53 = vor.u32 %v1349_v39, %v1345_v37  ;;  %v5764_v56 = vld [vmem:[%s7397_s1 + $0x180] sm:$0xff]   ;;  %v5806_v37 = vld [vmem:[%s7397_s1 + $0xd8] sm:$0xff]  }
  0x5e   : > { %5215 = vmatprep.subr.bf16.mxu1 %v5721_v57  ;;  %v5765_v57 = vld [vmem:[%s7397_s1 + $0x148] sm:$0xff]   ;;  %v5810_v39 = vld [vmem:[%s7397_s1 + $0xe0] sm:$0xff]  }
  0x60   : > { %5194 = vmatpush3.bf16.msra.mxu0 %v5722_v60  ;;  %v5766_v60 = vld [vmem:[%s7397_s1 + $0x1c8] sm:$0xff]  }
  0x61   : > { %5216 = vmatpush3.bf16.msra.mxu1 %v5723_v61  ;;  %5195 = vmatprep.subr.bf16.mxu0 %v5724_v63  ;;  %v5767_v61 = vld [vmem:[%s7397_s1 + $0x108] sm:$0xff]  }
  0x62   : > { %5217 = vmatprep.subr.bf16.mxu1 %v5725_v0  ;;  %v5768_v63 = vld [vmem:[%s7397_s1 + $0x188] sm:$0xff]   ;;  %v5769_v0 = vld [vmem:[%s7397_s1 + $0x150] sm:$0xff]  }
  0x64   : > { %5196 = vmatpush3.bf16.msra.mxu0 %v5726_v1  ;;  %v5770_v1 = vld [vmem:[%s7397_s1 + $0x1d0] sm:$0xff]  }
  0x65   : > { %5218 = vmatpush3.bf16.msra.mxu1 %v5727_v2  ;;  %5225 = vmatprep.subr.bf16.mxu0 %v5729_v4  ;;  %v5771_v2 = vld [vmem:[%s7397_s1 + $0x110] sm:$0xff]   ;;  %v5773_v4 = vld [vmem:[%s7397_s1 + $0x158] sm:$0xff]  }
  0x66   : > { %5247 = vmatprep.subr.bf16.mxu1 %v5730_v6  ;;  %v5775_v6 = vld [vmem:[%s7397_s1 + $0x118] sm:$0xff]  }
  0x67   : > { %1213 = vmatmul.mubr.bf16.vlgmr.msra.gmra.mrb[8].mxu0 %v6353_v54 }
  0x68   : > { %1253 = vmatmul.mubr.bf16.vlgmr.msra.gmra.mrb[8].mxu1 %v6366_v59  ;;  %5226 = vmatpush3.bf16.msra.mxu0 %v5731_v9  ;;  %v5778_v9 = vld [vmem:[%s7397_s1 + $0x1e0] sm:$0xff]  }
  0x69   : > { %5248 = vmatpush3.bf16.msra.mxu1 %v5732_v12  ;;  %5227 = vmatprep.subr.bf16.mxu0 %v5733_v13  ;;  %v5781_v12 = vld [vmem:[%s7397_s1 + $0x168] sm:$0xff]  }
  0x6a   : > { %5249 = vmatprep.subr.bf16.mxu1 %v5734_v14  ;;  %1600 = vmatprep.mubr.bf16.mxu0 %v6417_v16  ;;  %v5782_v13 = vld [vmem:[%s7397_s1 + $0x1e8] sm:$0xff]  }
  0x6b   : > { %1640 = vmatprep.mubr.bf16.mxu1 %v6419_v17  ;;  %v5783_v14 = vld [vmem:[%s7397_s1 + $0x128] sm:$0xff]  }
  0x6c   : > { %5228 = vmatpush3.bf16.msra.mxu0 %v5735_v15  ;;  %v5784_v15 = vld [vmem:[%s7397_s1 + $0x1a8] sm:$0xff]  }
  0x6d   : > { %5250 = vmatpush3.bf16.msra.mxu1 %v5736_v18  ;;  %5229 = vmatprep.subr.bf16.mxu0 %v5737_v19  ;;  %v5787_v18 = vld [vmem:[%s7397_s1 + $0x130] sm:$0xff]  }
  0x6e   : > { %5251 = vmatprep.subr.bf16.mxu1 %v5738_v20  ;;  %v5788_v19 = vld [vmem:[%s7397_s1 + $0x1b0] sm:$0xff]   ;;  %v5789_v20 = vld [vmem:[%s7397_s1 + $0x178] sm:$0xff]  }
  0x70   : > { %5230 = vmatpush3.bf16.msra.mxu0 %v5739_v21  ;;  %v5790_v21 = vld [vmem:[%s7397_s1 + $0x1f8] sm:$0xff]  }
  0x71   : > { %5252 = vmatpush3.bf16.msra.mxu1 %v5740_v22  ;;  %5231 = vmatprep.subr.bf16.mxu0 %v5741_v23  ;;  %v5791_v22 = vld [vmem:[%s7397_s1 + $0x138] sm:$0xff]  }
  0x72   : > { %5253 = vmatprep.subr.bf16.mxu1 %v5742_v24  ;;  %v5792_v23 = vld [vmem:[%s7397_s1 + $0x1b8] sm:$0xff]   ;;  %v5793_v24 = vld [vmem:[%s7397_s1 + $0x40] sm:$0xff]  }
  0x74   : > { %5232 = vmatpush3.bf16.msra.mxu0 %v5743_v25  ;;  %v5794_v25 = vld [vmem:[%s7397_s1 + $0xc0] sm:$0xff]  }
  0x75   : > { %5254 = vmatpush3.bf16.msra.mxu1 %v5744_v26  ;;  %5233 = vmatprep.subr.bf16.mxu0 %v5745_v27  ;;  %v5795_v26 = vld [vmem:[%s7397_s1] sm:$0xff]  }
  0x76   : > { %5255 = vmatprep.subr.bf16.mxu1 %v5746_v28  ;;  %v5796_v27 = vld [vmem:[%s7397_s1 + $0x80] sm:$0xff]   ;;  %v5797_v28 = vld [vmem:[%s7397_s1 + $0x48] sm:$0xff]  }
  0x78   : > { %5234 = vmatpush3.bf16.msra.mxu0 %v5747_v29  ;;  %v5798_v29 = vld [vmem:[%s7397_s1 + $0xc8] sm:$0xff]  }
  0x79   : > { %5256 = vmatpush3.bf16.msra.mxu1 %v5748_v30  ;;  %5235 = vmatprep.subr.bf16.mxu0 %v5749_v31  ;;  %v5799_v30 = vld [vmem:[%s7397_s1 + $0x8] sm:$0xff]  }
  0x7a   : > { %5257 = vmatprep.subr.bf16.mxu1 %v5750_v32  ;;  %v5800_v31 = vld [vmem:[%s7397_s1 + $0x88] sm:$0xff]   ;;  %v5801_v32 = vld [vmem:[%s7397_s1 + $0x50] sm:$0xff]  }
  0x7c   : > { %5236 = vmatpush3.bf16.msra.mxu0 %v5751_v34  ;;  %v5803_v34 = vld [vmem:[%s7397_s1 + $0x10] sm:$0xff]  }
  0x7d   : > { %5258 = vmatpush3.bf16.msra.mxu1 %v5752_v35  ;;  %5237 = vmatprep.subr.bf16.mxu0 %v5753_v36  ;;  %v5804_v35 = vld [vmem:[%s7397_s1 + $0x90] sm:$0xff]   ;;  %v5805_v36 = vld [vmem:[%s7397_s1 + $0x58] sm:$0xff]  }
  0x7e   : > { %5259 = vmatprep.subr.bf16.mxu1 %v5754_v38  ;;  %v5809_v38 = vld [vmem:[%s7397_s1 + $0x60] sm:$0xff]  }
  0x80   : > { %5238 = vmatpush3.bf16.msra.mxu0 %v5755_v40  ;;  %v5811_v40 = vld [vmem:[%s7397_s1 + $0x20] sm:$0xff]  }
  0x81   : > { %5260 = vmatpush3.bf16.msra.mxu1 %v5756_v43  ;;  %5239 = vmatprep.subr.bf16.mxu0 %v5757_v45  ;;  %v5813_v43 = vld [vmem:[%s7397_s1 + $0x68] sm:$0xff]  }
  0x82   : > { %5261 = vmatprep.subr.bf16.mxu1 %v5758_v46  ;;  %v5815_v45 = vld [vmem:[%s7397_s1 + $0x28] sm:$0xff]  }
  0x83   : > { %v5816_v46 = vld [vmem:[%s7397_s1 + $0xa8] sm:$0xff]  }
  0x84   : > { %5240 = vmatpush3.bf16.msra.mxu0 %v5759_v47  ;;  %v5817_v47 = vld [vmem:[%s7397_s1 + $0x70] sm:$0xff]  }
  0x85   : > { %5262 = vmatpush3.bf16.msra.mxu1 %v5760_v48  ;;  %5269 = vmatprep.subr.bf16.mxu0 %v5761_v50  ;;  %v5818_v48 = vld [vmem:[%s7397_s1 + $0xf0] sm:$0xff]  }
  0x86   : > { %5291 = vmatprep.subr.bf16.mxu1 %v5762_v51  ;;  %v5820_v50 = vld [vmem:[%s7397_s1 + $0xb0] sm:$0xff]   ;;  %v5821_v51 = vld [vmem:[%s7397_s1 + $0x78] sm:$0xff]  }
  0x87   : > { %1601 = vmatmul.mubr.bf16.vlgmr.msra.gmra.mrb[12].mxu0 %v6513_v53 }
  0x88   : > { %1641 = vmatmul.mubr.bf16.vlgmr.msra.gmra.mrb[12].mxu1 %v6515_v55  ;;  %5270 = vmatpush3.bf16.msra.mxu0 %v5763_v52  ;;  %v5822_v52 = vld [vmem:[%s7397_s1 + $0xf8] sm:$0xff]  }
  0x89   : > { %5292 = vmatpush3.bf16.msra.mxu1 %v5764_v56  ;;  %5271 = vmatprep.subr.bf16.mxu0 %v5765_v57  ;;  %v5825_v56 = vld [vmem:[%s7397_s1 + $0x240] sm:$0xff]  }
  0x8a   : > { %5293 = vmatprep.subr.bf16.mxu1 %v5766_v60  ;;  %2067 = vmatprep.mubr.bf16.mxu0 %v6417_v16  ;;  %v5785_v16 = vld [vmem:[%s7397_s1 + $0x170] sm:$0xff]   ;;  %v5826_v57 = vld [vmem:[%s7397_s1 + $0x2c0] sm:$0xff]  }
  0x8b   : > { %2107 = vmatprep.mubr.bf16.mxu1 %v6419_v17  ;;  %v5786_v17 = vld [vmem:[%s7397_s1 + $0x1f0] sm:$0xff]   ;;  %v5827_v60 = vld [vmem:[%s7397_s1 + $0x200] sm:$0xff]  }
  0x8c   : > { %5272 = vmatpush3.bf16.msra.mxu0 %v5767_v61  ;;  %v5828_v61 = vld [vmem:[%s7397_s1 + $0x280] sm:$0xff]  }
  0x8d   : > { %5294 = vmatpush3.bf16.msra.mxu1 %v5768_v63  ;;  %5273 = vmatprep.subr.bf16.mxu0 %v5769_v0  ;;  %v5829_v63 = vld [vmem:[%s7397_s1 + $0x248] sm:$0xff]  }
  0x8e   : > { %5295 = vmatprep.subr.bf16.mxu1 %v5770_v1  ;;  %v5830_v0 = vld [vmem:[%s7397_s1 + $0x2c8] sm:$0xff]  }
  0x8f   : > { %v5831_v1 = vld [vmem:[%s7397_s1 + $0x208] sm:$0xff]  }
  0x90   : > { %5274 = vmatpush3.bf16.msra.mxu0 %v5771_v2  ;;  %v5832_v2 = vld [vmem:[%s7397_s1 + $0x288] sm:$0xff]  }
  0x91   : > { %5296 = vmatpush3.bf16.msra.mxu1 %v5772_v3  ;;  %5275 = vmatprep.subr.bf16.mxu0 %v5773_v4  ;;  %v5833_v3 = vld [vmem:[%s7397_s1 + $0x250] sm:$0xff]  }
  0x92   : > { %5297 = vmatprep.subr.bf16.mxu1 %v5774_v5  ;;  %v5834_v4 = vld [vmem:[%s7397_s1 + $0x2d0] sm:$0xff]   ;;  %v5837_v5 = vld [vmem:[%s7397_s1 + $0x258] sm:$0xff]  }
  0x94   : > { %5276 = vmatpush3.bf16.msra.mxu0 %v5775_v6  ;;  %v5838_v6 = vld [vmem:[%s7397_s1 + $0x2d8] sm:$0xff]  }
  0x95   : > { %5298 = vmatpush3.bf16.msra.mxu1 %v5776_v7  ;;  %5277 = vmatprep.subr.bf16.mxu0 %v5777_v8  ;;  %v5839_v7 = vld [vmem:[%s7397_s1 + $0x218] sm:$0xff]  }
  0x96   : > { %5299 = vmatprep.subr.bf16.mxu1 %v5778_v9  ;;  %v5840_v8 = vld [vmem:[%s7397_s1 + $0x298] sm:$0xff]   ;;  %v5841_v9 = vld [vmem:[%s7397_s1 + $0x260] sm:$0xff]  }
  0x98   : > { %5278 = vmatpush3.bf16.msra.mxu0 %v5779_v10  ;;  %v5842_v10 = vld [vmem:[%s7397_s1 + $0x2e0] sm:$0xff]  }
  0x99   : > { %5300 = vmatpush3.bf16.msra.mxu1 %v5780_v11  ;;  %5279 = vmatprep.subr.bf16.mxu0 %v5781_v12  ;;  %v5843_v11 = vld [vmem:[%s7397_s1 + $0x220] sm:$0xff]  }
  0x9a   : > { %5301 = vmatprep.subr.bf16.mxu1 %v5782_v13  ;;  %v5844_v12 = vld [vmem:[%s7397_s1 + $0x2a0] sm:$0xff]   ;;  %v5845_v13 = vld [vmem:[%s7397_s1 + $0x268] sm:$0xff]  }
  0x9c   : > { %5280 = vmatpush3.bf16.msra.mxu0 %v5783_v14  ;;  %v5846_v14 = vld [vmem:[%s7397_s1 + $0x2e8] sm:$0xff]  }
  0x9d   : > { %5302 = vmatpush3.bf16.msra.mxu1 %v5784_v15  ;;  %5281 = vmatprep.subr.bf16.mxu0 %v5785_v16  ;;  %v5847_v15 = vld [vmem:[%s7397_s1 + $0x228] sm:$0xff]  }
  0x9e   : > { %5303 = vmatprep.subr.bf16.mxu1 %v5786_v17  ;;  %v5848_v16 = vld [vmem:[%s7397_s1 + $0x2a8] sm:$0xff]   ;;  %v4889_v17 = vld [vmem:[%s6156_s27 + $0x10] sm:$0xff] }
  0xa0   : > { %5282 = vmatpush3.bf16.msra.mxu0 %v5787_v18  ;;  %v5849_v18 = vld [vmem:[%s7397_s1 + $0x270] sm:$0xff]  }
  0xa1   : > { %5304 = vmatpush3.bf16.msra.mxu1 %v5788_v19  ;;  %5283 = vmatprep.subr.bf16.mxu0 %v5789_v20  ;;  %v6787_v19 = vrot.slane %v4889_v17, %v6171_v41  ;;  %v2458_v20 = vcombine.high %v4889_v17, %v4889_v17  ;;  %v5886_v17 = vld [vmem:[%s7397_s1 + $0x378] sm:$0xff]  }
  0xa2   : > { %5305 = vmatprep.subr.bf16.mxu1 %v5790_v21  ;;  %v5850_v21 = vld [vmem:[%s7397_s1 + $0x2f0] sm:$0xff]  }
  0xa4   : > { %5284 = vmatpush3.bf16.msra.mxu0 %v5791_v22  ;;  %v5851_v22 = vld [vmem:[%s7397_s1 + $0x230] sm:$0xff]  }
  0xa5   : > { %5306 = vmatpush3.bf16.msra.mxu1 %v5792_v23  ;;  %5313 = vmatprep.subr.bf16.mxu0 %v5793_v24  ;;  %v6797_v23 = vcombine.high %v6787_v19, %v6787_v19  ;;  %v6800_v24 = vrot.slane %v2458_v20, %v6171_v41 }
  0xa6   : > { %5335 = vmatprep.subr.bf16.mxu1 %v5794_v25  ;;  %v5852_v25 = vld [vmem:[%s7397_s1 + $0x2b0] sm:$0xff]  }
  0xa7   : > { %2068 = vmatmul.mubr.bf16.vlgmr.msra.gmra.mrb[16].mxu0 %v6513_v53  ;;  %v5823_v53 = vld [vmem:[%s7397_s1 + $0x38] sm:$0xff]  }
  0xa8   : > { %2108 = vmatmul.mubr.bf16.vlgmr.msra.gmra.mrb[16].mxu1 %v6515_v55  ;;  %5314 = vmatpush3.bf16.msra.mxu0 %v5795_v26  ;;  %v5824_v55 = vld [vmem:[%s7397_s1 + $0xb8] sm:$0xff]  }
  0xa9   : > { %5336 = vmatpush3.bf16.msra.mxu1 %v5796_v27  ;;  %5315 = vmatprep.subr.bf16.mxu0 %v5797_v28  ;;  %v5853_v26 = vld [vmem:[%s7397_s1 + $0x278] sm:$0xff]   ;;  %v6810_v27 = vcombine.high %v6800_v24, %v6800_v24 }
  0xaa   : > { %5337 = vmatprep.subr.bf16.mxu1 %v5798_v29  ;;  %2343 = vmatprep.mubr.bf16.mxu0 %v6363_v58  ;;  %v5807_v58 = vld [vmem:[%s7397_s1 + $0x18] sm:$0xff]  }
  0xab   : > { %2383 = vmatprep.mubr.bf16.mxu1 %v6377_v62  ;;  %v5808_v62 = vld [vmem:[%s7397_s1 + $0x98] sm:$0xff]  }
  0xac   : > { %5316 = vmatpush3.bf16.msra.mxu0 %v5799_v30  ;;  %v5854_v28 = vld [vmem:[%s7397_s1 + $0x2f8] sm:$0xff]  }
  0xad   : > { %5338 = vmatpush3.bf16.msra.mxu1 %v5800_v31  ;;  %5317 = vmatprep.subr.bf16.mxu0 %v5801_v32  ;;  %v5855_v29 = vld [vmem:[%s7397_s1 + $0x238] sm:$0xff]   ;;  %v2845_v31 = vshll.u32 %v6797_v23, 16  ;;  %v5858_v32 = vld [vmem:[%s7397_s1 + $0x340] sm:$0xff]  }
  0xae   : > { %5339 = vmatprep.subr.bf16.mxu1 %v5802_v33  ;;  %v5856_v30 = vld [vmem:[%s7397_s1 + $0x2b8] sm:$0xff]   ;;  %v5859_v33 = vld [vmem:[%s7397_s1 + $0x3c0] sm:$0xff]  }
  0xb0   : > { %5318 = vmatpush3.bf16.msra.mxu0 %v5803_v34  ;;  %v2859_v34 = vshll.u32 %v6810_v27, 16 }
  0xb1   : > { %5340 = vmatpush3.bf16.msra.mxu1 %v5804_v35  ;;  %5319 = vmatprep.subr.bf16.mxu0 %v5805_v36  ;;  %v2843_v35 = vshrl.u32 %v6797_v23, 16  ;;  %v2857_v36 = vshrl.u32 %v6810_v27, 16 }
  0xb2   : > { %5341 = vmatprep.subr.bf16.mxu1 %v5806_v37  ;;  %v5860_v37 = vld [vmem:[%s7397_s1 + $0x300] sm:$0xff]  }
  0xb4   : > { %5320 = vmatpush3.bf16.msra.mxu0 %v5807_v58  ;;  %v2847_v58 = vrot.slane %v2845_v31, 1  ;;  %v5892_v31 = vld [vmem:[%s7397_s1 + $0x100] sm:$0xff]  }
  0xb5   : > { %5342 = vmatpush3.bf16.msra.mxu1 %v5808_v62  ;;  %5321 = vmatprep.subr.bf16.mxu0 %v5809_v38  ;;  %v2861_v62 = vrot.slane %v2859_v34, 1  ;;  %v5861_v38 = vld [vmem:[%s7397_s1 + $0x380] sm:$0xff]  }
  0xb6   : > { %5343 = vmatprep.subr.bf16.mxu1 %v5810_v39  ;;  %v5862_v39 = vld [vmem:[%s7397_s1 + $0x348] sm:$0xff]   ;;  %v5893_v34 = vld [vmem:[%s7397_s1 + $0x180] sm:$0xff]  }
  0xb8   : > { %5322 = vmatpush3.bf16.msra.mxu0 %v5811_v40  ;;  %v5863_v40 = vld [vmem:[%s7397_s1 + $0x3c8] sm:$0xff]  }
  0xb9   : > { %5344 = vmatpush3.bf16.msra.mxu1 %v5812_v42  ;;  %5323 = vmatprep.subr.bf16.mxu0 %v5813_v43  ;;  %v5864_v42 = vld [vmem:[%s7397_s1 + $0x308] sm:$0xff]   ;;  %v6848_v43 = vor.u32 %v2847_v58, %v2843_v35 }
  0xba   : > { %5345 = vmatprep.subr.bf16.mxu1 %v5814_v44  ;;  %v6850_v44 = vor.u32 %v2861_v62, %v2857_v36  ;;  %v5894_v35 = vld [vmem:[%s7397_s1 + $0x148] sm:$0xff]   ;;  %v5898_v62 = vld [vmem:[%s7397_s1 + $0x150] sm:$0xff]  }
  0xbb   : > { %v5895_v36 = vld [vmem:[%s7397_s1 + $0x1c8] sm:$0xff]  }
  0xbc   : > { %5324 = vmatpush3.bf16.msra.mxu0 %v5815_v45  ;;  %v5865_v45 = vld [vmem:[%s7397_s1 + $0x388] sm:$0xff]  }
  0xbd   : > { %5346 = vmatpush3.bf16.msra.mxu1 %v5816_v46  ;;  %5325 = vmatprep.subr.bf16.mxu0 %v5817_v47  ;;  %v5866_v46 = vld [vmem:[%s7397_s1 + $0x350] sm:$0xff]   ;;  %v5897_v58 = vld [vmem:[%s7397_s1 + $0x188] sm:$0xff]  }
  0xbe   : > { %5347 = vmatprep.subr.bf16.mxu1 %v5818_v48  ;;  %v5867_v47 = vld [vmem:[%s7397_s1 + $0x3d0] sm:$0xff]  }
  0xbf   : > { %v5868_v48 = vld [vmem:[%s7397_s1 + $0x310] sm:$0xff]  }
  0xc0   : > { %5326 = vmatpush3.bf16.msra.mxu0 %v5819_v49  ;;  %v5869_v49 = vld [vmem:[%s7397_s1 + $0x390] sm:$0xff]  }
  0xc1   : > { %5348 = vmatpush3.bf16.msra.mxu1 %v5820_v50  ;;  %5327 = vmatprep.subr.bf16.mxu0 %v5821_v51  ;;  %v5870_v50 = vld [vmem:[%s7397_s1 + $0x358] sm:$0xff]  }
  0xc2   : > { %5349 = vmatprep.subr.bf16.mxu1 %v5822_v52  ;;  %v5871_v51 = vld [vmem:[%s7397_s1 + $0x3d8] sm:$0xff]  }
  0xc3   : > { %v5872_v52 = vld [vmem:[%s7397_s1 + $0x318] sm:$0xff]  }
  0xc4   : > { %5328 = vmatpush3.bf16.msra.mxu0 %v5823_v53  ;;  %v5873_v53 = vld [vmem:[%s7397_s1 + $0x398] sm:$0xff]  }
  0xc5   : > { %5350 = vmatpush3.bf16.msra.mxu1 %v5824_v55  ;;  %5357 = vmatprep.subr.bf16.mxu0 %v5825_v56  ;;  %v5874_v55 = vld [vmem:[%s7397_s1 + $0x360] sm:$0xff]  }
  0xc6   : > { %5379 = vmatprep.subr.bf16.mxu1 %v5826_v57  ;;  %v5875_v56 = vld [vmem:[%s7397_s1 + $0x3e0] sm:$0xff]   ;;  %v2838_v57 = vshll.u32 %v6787_v19, 16 }
  0xc7   : > { %2344 = vmatmul.mubr.bf16.vlgmr.msra.gmra.mrb[20].mxu0 %v6353_v54  ;;  %v5835_v54 = vld [vmem:[%s7397_s1 + $0x210] sm:$0xff]  }
  0xc8   : > { %2384 = vmatmul.mubr.bf16.vlgmr.msra.gmra.mrb[20].mxu1 %v6366_v59  ;;  %5358 = vmatpush3.bf16.msra.mxu0 %v5827_v60  ;;  %v5836_v59 = vld [vmem:[%s7397_s1 + $0x290] sm:$0xff]   ;;  %v5876_v60 = vld [vmem:[%s7397_s1 + $0x320] sm:$0xff]  }
  0xc9   : > { %5380 = vmatpush3.bf16.msra.mxu1 %v5828_v61  ;;  %5359 = vmatprep.subr.bf16.mxu0 %v5829_v63  ;;  %v5877_v61 = vld [vmem:[%s7397_s1 + $0x3a0] sm:$0xff]   ;;  %v5878_v63 = vld [vmem:[%s7397_s1 + $0x368] sm:$0xff]  }
  0xca   : > { %5381 = vmatprep.subr.bf16.mxu1 %v5830_v0  ;;  %2703 = vmatprep.mubr.bf16.mxu0 %v6797_v23  ;;  %v2836_v0 = vshrl.u32 %v6787_v19, 16 }
  0xcb   : > { %2743 = vmatprep.mubr.bf16.mxu1 %v6810_v27 }
  0xcc   : > { %5360 = vmatpush3.bf16.msra.mxu0 %v5831_v1  ;;  %v5879_v1 = vld [vmem:[%s7397_s1 + $0x3e8] sm:$0xff]  }
  0xcd   : > { %5382 = vmatpush3.bf16.msra.mxu1 %v5832_v2  ;;  %5361 = vmatprep.subr.bf16.mxu0 %v5833_v3  ;;  %v2840_v2 = vrot.slane %v2838_v57, 1  ;;  %v5880_v3 = vld [vmem:[%s7397_s1 + $0x328] sm:$0xff]  }
  0xce   : > { %5383 = vmatprep.subr.bf16.mxu1 %v5834_v4  ;;  %v2850_v4 = vshrl.u32 %v6800_v24, 16 }
  0xd0   : > { %5362 = vmatpush3.bf16.msra.mxu0 %v5835_v54  ;;  %v5881_v54 = vld [vmem:[%s7397_s1 + $0x3a8] sm:$0xff]  }
  0xd1   : > { %5384 = vmatpush3.bf16.msra.mxu1 %v5836_v59  ;;  %5363 = vmatprep.subr.bf16.mxu0 %v5837_v5  ;;  %v2852_v59 = vshll.u32 %v6800_v24, 16  ;;  %v5882_v5 = vld [vmem:[%s7397_s1 + $0x370] sm:$0xff]  }
  0xd2   : > { %5385 = vmatprep.subr.bf16.mxu1 %v5838_v6  ;;  %v5883_v6 = vld [vmem:[%s7397_s1 + $0x3f0] sm:$0xff]  }
  0xd4   : > { %5364 = vmatpush3.bf16.msra.mxu0 %v5839_v7 }
  0xd5   : > { %5386 = vmatpush3.bf16.msra.mxu1 %v5840_v8  ;;  %5365 = vmatprep.subr.bf16.mxu0 %v5841_v9  ;;  %v5884_v9 = vld [vmem:[%s7397_s1 + $0x330] sm:$0xff]  }
  0xd6   : > { %5387 = vmatprep.subr.bf16.mxu1 %v5842_v10  ;;  %v5885_v10 = vld [vmem:[%s7397_s1 + $0x3b0] sm:$0xff]  }
  0xd8   : > { %5366 = vmatpush3.bf16.msra.mxu0 %v5843_v11 }
  0xd9   : > { %5388 = vmatpush3.bf16.msra.mxu1 %v5844_v12  ;;  %5367 = vmatprep.subr.bf16.mxu0 %v5845_v13 }
  0xda   : > { %5389 = vmatprep.subr.bf16.mxu1 %v5846_v14 }
  0xdc   : > { %5368 = vmatpush3.bf16.msra.mxu0 %v5847_v15 }
  0xdd   : > { %5390 = vmatpush3.bf16.msra.mxu1 %v5848_v16  ;;  %5369 = vmatprep.subr.bf16.mxu0 %v5849_v18  ;;  %v5887_v18 = vld [vmem:[%s7397_s1 + $0x3f8] sm:$0xff]  }
  0xde   : > { %5391 = vmatprep.subr.bf16.mxu1 %v5850_v21 }
  0xe0   : > { %5370 = vmatpush3.bf16.msra.mxu0 %v5851_v22 }
  0xe1   : > { %5392 = vmatpush3.bf16.msra.mxu1 %v5852_v25  ;;  %5371 = vmatprep.subr.bf16.mxu0 %v5853_v26  ;;  %v5888_v25 = vld [vmem:[%s7397_s1 + $0x338] sm:$0xff]  }
  0xe2   : > { %5393 = vmatprep.subr.bf16.mxu1 %v5854_v28  ;;  %v5889_v26 = vld [vmem:[%s7397_s1 + $0x3b8] sm:$0xff]   ;;  %v2854_v28 = vrot.slane %v2852_v59, 1 }
  0xe4   : > { %5372 = vmatpush3.bf16.msra.mxu0 %v5855_v29  ;;  %v5890_v29 = vld [vmem:[%s7397_s1 + $0x140] sm:$0xff]  }
  0xe5   : > { %5394 = vmatpush3.bf16.msra.mxu1 %v5856_v30  ;;  %5401 = vmatprep.subr.bf16.mxu0 %v5858_v32  ;;  %v5891_v30 = vld [vmem:[%s7397_s1 + $0x1c0] sm:$0xff]   ;;  %v6946_v32 = vor.u32 %v2840_v2, %v2836_v0  ;;  %v5916_v0 = vld [vmem:[%s7397_s1 + $0x130] sm:$0xff]  }
  0xe6   : > { %5423 = vmatprep.subr.bf16.mxu1 %v5859_v33  ;;  %v6948_v33 = vor.u32 %v2854_v28, %v2850_v4  ;;  %v5934_v28 = vld [vmem:[%s7397_s1 + $0x58] sm:$0xff]  }
  0xe7   : > { %2704 = vmatmul.mubr.bf16.vlgmr.msra.gmra.mrb[24].mxu0 %v6787_v19 }
  0xe8   : > { %2744 = vmatmul.mubr.bf16.vlgmr.msra.gmra.mrb[24].mxu1 %v6800_v24  ;;  %5402 = vmatpush3.bf16.msra.mxu0 %v5860_v37  ;;  %v5896_v37 = vld [vmem:[%s7397_s1 + $0x108] sm:$0xff]  }
  0xe9   : > { %5424 = vmatpush3.bf16.msra.mxu1 %v5861_v38  ;;  %5403 = vmatprep.subr.bf16.mxu0 %v5862_v39  ;;  %v5899_v38 = vld [vmem:[%s7397_s1 + $0x1d0] sm:$0xff]  }
  0xea   : > { %5425 = vmatprep.subr.bf16.mxu1 %v5863_v40  ;;  %3091 = vmatprep.mubr.bf16.mxu0 %v6848_v43  ;;  %v5900_v39 = vld [vmem:[%s7397_s1 + $0x110] sm:$0xff]  }
  0xeb   : > { %3131 = vmatprep.mubr.bf16.mxu1 %v6850_v44  ;;  %v5901_v40 = vld [vmem:[%s7397_s1 + $0x190] sm:$0xff]  }
  0xec   : > { %5404 = vmatpush3.bf16.msra.mxu0 %v5864_v42  ;;  %v5902_v42 = vld [vmem:[%s7397_s1 + $0x158] sm:$0xff]  }
  0xed   : > { %5426 = vmatpush3.bf16.msra.mxu1 %v5865_v45  ;;  %5405 = vmatprep.subr.bf16.mxu0 %v5866_v46  ;;  %v5903_v45 = vld [vmem:[%s7397_s1 + $0x1d8] sm:$0xff]   ;;  %v5906_v46 = vld [vmem:[%s7397_s1 + $0x160] sm:$0xff]  }
  0xee   : > { %5427 = vmatprep.subr.bf16.mxu1 %v5867_v47  ;;  %v5907_v47 = vld [vmem:[%s7397_s1 + $0x1e0] sm:$0xff]  }
  0xf0   : > { %5406 = vmatpush3.bf16.msra.mxu0 %v5868_v48  ;;  %v5908_v48 = vld [vmem:[%s7397_s1 + $0x120] sm:$0xff]  }
  0xf1   : > { %5428 = vmatpush3.bf16.msra.mxu1 %v5869_v49  ;;  %5407 = vmatprep.subr.bf16.mxu0 %v5870_v50  ;;  %v5909_v49 = vld [vmem:[%s7397_s1 + $0x1a0] sm:$0xff]   ;;  %v5910_v50 = vld [vmem:[%s7397_s1 + $0x168] sm:$0xff]  }
  0xf2   : > { %5429 = vmatprep.subr.bf16.mxu1 %v5871_v51  ;;  %v5911_v51 = vld [vmem:[%s7397_s1 + $0x1e8] sm:$0xff]  }
  0xf4   : > { %5408 = vmatpush3.bf16.msra.mxu0 %v5872_v52  ;;  %v5912_v52 = vld [vmem:[%s7397_s1 + $0x128] sm:$0xff]  }
  0xf5   : > { %5430 = vmatpush3.bf16.msra.mxu1 %v5873_v53  ;;  %5409 = vmatprep.subr.bf16.mxu0 %v5874_v55  ;;  %v5913_v53 = vld [vmem:[%s7397_s1 + $0x1a8] sm:$0xff]   ;;  %v5914_v55 = vld [vmem:[%s7397_s1 + $0x170] sm:$0xff]  }
  0xf6   : > { %5431 = vmatprep.subr.bf16.mxu1 %v5875_v56  ;;  %v5915_v56 = vld [vmem:[%s7397_s1 + $0x1f0] sm:$0xff]  }
  0xf8   : > { %5410 = vmatpush3.bf16.msra.mxu0 %v5876_v60 }
  0xf9   : > { %5432 = vmatpush3.bf16.msra.mxu1 %v5877_v61  ;;  %5411 = vmatprep.subr.bf16.mxu0 %v5878_v63 }
  0xfa   : > { %5433 = vmatprep.subr.bf16.mxu1 %v5879_v1  ;;  %v5109_v7 = vpop.f32.mrb[0].mxu0  ;;  %v5917_v1 = vld [vmem:[%s7397_s1 + $0x1b0] sm:$0xff]  }
  0xfb   : > { %v5131_v8 = vpop.f32.mrb[0].mxu1  ;;  %v5110_v11 = vpop.f32.mrb[1].mxu0 }
  0xfc   : > { %v5132_v12 = vpop.f32.mrb[1].mxu1  ;;  %v5111_v13 = vadd.f32 %v5110_v11, %v5109_v7  ;;  %v5112_v15 = vpop.f32.mrb[2].mxu0  ;;  %5412 = vmatpush3.bf16.msra.mxu0 %v5880_v3  ;;  %v5919_v7 = vld [vmem:[%s7397_s1 + $0x1f8] sm:$0xff]  }
  0xfd   : > { %v5133_v14 = vadd.f32 %v5132_v12, %v5131_v8  ;;  %v5134_v16 = vpop.f32.mrb[2].mxu1  ;;  %5434 = vmatpush3.bf16.msra.mxu1 %v5881_v54  ;;  %v5113_v20 = vpop.f32.mrb[3].mxu0  ;;  %5413 = vmatprep.subr.bf16.mxu0 %v5882_v5  ;;  %v5922_v12 = vld [vmem:[%s7397_s1 + $0x40] sm:$0xff]  }
  0xfe   : > { %v5135_v21 = vpop.f32.mrb[3].mxu1  ;;  %5435 = vmatprep.subr.bf16.mxu1 %v5883_v6  ;;  %v5918_v6 = vld [vmem:[%s7397_s1 + $0x178] sm:$0xff]   ;;  %v5925_v15 = vld [vmem:[%s7397_s1 + $0x80] sm:$0xff]   ;;  %v5926_v16 = vld [vmem:[%s7397_s1 + $0x48] sm:$0xff]  }
  0xff   : > { %v6929_v22 = vadd.f32 %v5133_v14, %v5111_v13  ;;  %v5923_v13 = vld [vmem:[%s7397_s1 + $0xc0] sm:$0xff]   ;;  %v5929_v20 = vld [vmem:[%s7397_s1 + $0x88] sm:$0xff]   ;;  %v5930_v21 = vld [vmem:[%s7397_s1 + $0x50] sm:$0xff]  }
 0x100   : > { %5414 = vmatpush3.bf16.msra.mxu0 %v5884_v9  ;;  %v5920_v9 = vld [vmem:[%s7397_s1 + $0x138] sm:$0xff]   ;;  %v5924_v14 = vld [vmem:[%s7397_s1] sm:$0xff]  }
 0x101   : > { %5436 = vmatpush3.bf16.msra.mxu1 %v5885_v10  ;;  %5415 = vmatprep.subr.bf16.mxu0 %v5886_v17  ;;  %v5921_v10 = vld [vmem:[%s7397_s1 + $0x1b8] sm:$0xff]   ;;  %v5927_v17 = vld [vmem:[%s7397_s1 + $0xc8] sm:$0xff]  }
 0x102   : > { %5437 = vmatprep.subr.bf16.mxu1 %v5887_v18  ;;  %v5928_v18 = vld [vmem:[%s7397_s1 + $0x8] sm:$0xff]  }
 0x104   : > { %5416 = vmatpush3.bf16.msra.mxu0 %v5888_v25  ;;  %v5932_v25 = vld [vmem:[%s7397_s1 + $0x10] sm:$0xff]  }
 0x105   : > { %5438 = vmatpush3.bf16.msra.mxu1 %v5889_v26  ;;  %5445 = vmatprep.subr.bf16.mxu0 %v5890_v29  ;;  %v5933_v26 = vld [vmem:[%s7397_s1 + $0x90] sm:$0xff]   ;;  %v5935_v29 = vld [vmem:[%s7397_s1 + $0xd8] sm:$0xff]  }
 0x106   : > { %5467 = vmatprep.subr.bf16.mxu1 %v5891_v30  ;;  %v5938_v30 = vld [vmem:[%s7397_s1 + $0x60] sm:$0xff]  }
 0x107   : > { %3092 = vmatmul.mubr.bf16.vlgmr.msra.gmra.mrb[28].mxu0 %v6946_v32 }
 0x108   : > { %3132 = vmatmul.mubr.bf16.vlgmr.msra.gmra.mrb[28].mxu1 %v6948_v33  ;;  %5446 = vmatpush3.bf16.msra.mxu0 %v5892_v31  ;;  %v5939_v31 = vld [vmem:[%s7397_s1 + $0xe0] sm:$0xff]  }
 0x109   : > { %5468 = vmatpush3.bf16.msra.mxu1 %v5893_v34  ;;  %5447 = vmatprep.subr.bf16.mxu0 %v5894_v35  ;;  %v5942_v34 = vld [vmem:[%s7397_s1 + $0x68] sm:$0xff]  }
 0x10a   : > { %5469 = vmatprep.subr.bf16.mxu1 %v5895_v36  ;;  %3550 = vmatprep.mubr.bf16.mxu0 %v6848_v43  ;;  %v5904_v43 = vld [vmem:[%s7397_s1 + $0x118] sm:$0xff]   ;;  %v5943_v35 = vld [vmem:[%s7397_s1 + $0xe8] sm:$0xff]  }
 0x10b   : > { %3590 = vmatprep.mubr.bf16.mxu1 %v6850_v44  ;;  %v5905_v44 = vld [vmem:[%s7397_s1 + $0x198] sm:$0xff]   ;;  %v5944_v36 = vld [vmem:[%s7397_s1 + $0x28] sm:$0xff]  }
 0x10c   : > { %5448 = vmatpush3.bf16.msra.mxu0 %v5896_v37  ;;  %v5945_v37 = vld [vmem:[%s7397_s1 + $0xa8] sm:$0xff]  }
 0x10d   : > { %5470 = vmatpush3.bf16.msra.mxu1 %v5897_v58  ;;  %5449 = vmatprep.subr.bf16.mxu0 %v5898_v62  ;;  %v5946_v58 = vld [vmem:[%s7397_s1 + $0x70] sm:$0xff]  }
 0x10e   : > { %5471 = vmatprep.subr.bf16.mxu1 %v5899_v38  ;;  %v5947_v62 = vld [vmem:[%s7397_s1 + $0xf0] sm:$0xff]  }
 0x110   : > { %5450 = vmatpush3.bf16.msra.mxu0 %v5900_v39 }
 0x111   : > { %5472 = vmatpush3.bf16.msra.mxu1 %v5901_v40  ;;  %5451 = vmatprep.subr.bf16.mxu0 %v5902_v42  ;;  %v5948_v40 = vld [vmem:[%s7397_s1 + $0x30] sm:$0xff]  }
 0x112   : > { %5473 = vmatprep.subr.bf16.mxu1 %v5903_v45  ;;  %v5949_v42 = vld [vmem:[%s7397_s1 + $0xb0] sm:$0xff]  }
 0x114   : > { %5452 = vmatpush3.bf16.msra.mxu0 %v5904_v43 }
 0x115   : > { %5474 = vmatpush3.bf16.msra.mxu1 %v5905_v44  ;;  %5453 = vmatprep.subr.bf16.mxu0 %v5906_v46 }
 0x116   : > { %5475 = vmatprep.subr.bf16.mxu1 %v5907_v47 }
 0x118   : > { %5454 = vmatpush3.bf16.msra.mxu0 %v5908_v48 }
 0x119   : > { %5476 = vmatpush3.bf16.msra.mxu1 %v5909_v49  ;;  %5455 = vmatprep.subr.bf16.mxu0 %v5910_v50 }
 0x11a   : > { %5477 = vmatprep.subr.bf16.mxu1 %v5911_v51  ;;  %v5153_v57 = vpop.f32.mrb[4].mxu0  ;;  %v5950_v51 = vld [vmem:[%s7397_s1 + $0x78] sm:$0xff]  }
 0x11b   : > { %v5175_v60 = vpop.f32.mrb[4].mxu1  ;;  %v5154_v61 = vpop.f32.mrb[5].mxu0 }
 0x11c   : > { %v5176_v63 = vpop.f32.mrb[5].mxu1  ;;  %v5155_v2 = vadd.f32 %v5154_v61, %v5153_v57  ;;  %v5156_v4 = vpop.f32.mrb[6].mxu0  ;;  %5456 = vmatpush3.bf16.msra.mxu0 %v5912_v52  ;;  %v5951_v52 = vld [vmem:[%s7397_s1 + $0xf8] sm:$0xff]   ;;  %v5955_v61 = vld [vmem:[%s7397_s1 + $0x2c0] sm:$0xff]  }
 0x11d   : > { %v5177_v3 = vadd.f32 %v5176_v63, %v5175_v60  ;;  %v5178_v54 = vpop.f32.mrb[6].mxu1  ;;  %5478 = vmatpush3.bf16.msra.mxu1 %v5913_v53  ;;  %v5157_v59 = vpop.f32.mrb[7].mxu0  ;;  %5457 = vmatprep.subr.bf16.mxu0 %v5914_v55  ;;  %v5952_v55 = vld [vmem:[%s7397_s1 + $0x38] sm:$0xff]   ;;  %v5954_v60 = vld [vmem:[%s7397_s1 + $0x240] sm:$0xff]   ;;  %v5961_v4 = vld [vmem:[%s7397_s1 + $0x288] sm:$0xff]  }
 0x11e   : > { %v5179_v5 = vpop.f32.mrb[7].mxu1  ;;  %5479 = vmatprep.subr.bf16.mxu1 %v5915_v56  ;;  %v855_v8 = vadd.f32 %v5155_v2, %v6929_v22  ;;  %v5931_v22 = vld [vmem:[%s7397_s1 + $0xd0] sm:$0xff]   ;;  %v5953_v56 = vld [vmem:[%s7397_s1 + $0xb8] sm:$0xff]   ;;  %v5956_v63 = vld [vmem:[%s7397_s1 + $0x200] sm:$0xff]  }
 0x11f   : > { %v5959_v2 = vld [vmem:[%s7397_s1 + $0x2c8] sm:$0xff]   ;;  %v5962_v54 = vld [vmem:[%s7397_s1 + $0x250] sm:$0xff]   ;;  %v5966_v5 = vld [vmem:[%s7397_s1 + $0x258] sm:$0xff]  }
 0x120   : > { %v7042_v11 = vadd.f32 %v5177_v3, %v855_v8  ;;  %5458 = vmatpush3.bf16.msra.mxu0 %v5916_v0  ;;  %v5957_v0 = vld [vmem:[%s7397_s1 + $0x280] sm:$0xff]   ;;  %v5960_v3 = vld [vmem:[%s7397_s1 + $0x208] sm:$0xff]   ;;  %v5963_v59 = vld [vmem:[%s7397_s1 + $0x2d0] sm:$0xff]  }
 0x121   : > { %5480 = vmatpush3.bf16.msra.mxu1 %v5917_v1  ;;  %5459 = vmatprep.subr.bf16.mxu0 %v5918_v6  ;;  %v5958_v1 = vld [vmem:[%s7397_s1 + $0x248] sm:$0xff]   ;;  %v5967_v6 = vld [vmem:[%s7397_s1 + $0x2d8] sm:$0xff]  }
 0x122   : > { %5481 = vmatprep.subr.bf16.mxu1 %v5919_v7  ;;  %v5968_v7 = vld [vmem:[%s7397_s1 + $0x218] sm:$0xff]  }
 0x123   : > { %v5969_v8 = vld [vmem:[%s7397_s1 + $0x298] sm:$0xff]  }
 0x124   : > { %5460 = vmatpush3.bf16.msra.mxu0 %v5920_v9  ;;  %v5970_v9 = vld [vmem:[%s7397_s1 + $0x260] sm:$0xff]  }
 0x125   : > { %5482 = vmatpush3.bf16.msra.mxu1 %v5921_v10  ;;  %5489 = vmatprep.subr.bf16.mxu0 %v5922_v12  ;;  %v5971_v10 = vld [vmem:[%s7397_s1 + $0x2e0] sm:$0xff]  }
 0x126   : > { %5511 = vmatprep.subr.bf16.mxu1 %v5923_v13  ;;  %v5973_v12 = vld [vmem:[%s7397_s1 + $0x2a0] sm:$0xff]   ;;  %v5974_v13 = vld [vmem:[%s7397_s1 + $0x268] sm:$0xff]  }
 0x127   : > { %3551 = vmatmul.mubr.bf16.vlgmr.msra.gmra.mrb[32].mxu0 %v6946_v32  ;;  %v5940_v32 = vld [vmem:[%s7397_s1 + $0x20] sm:$0xff]  }
 0x128   : > { %3591 = vmatmul.mubr.bf16.vlgmr.msra.gmra.mrb[32].mxu1 %v6948_v33  ;;  %5490 = vmatpush3.bf16.msra.mxu0 %v5924_v14  ;;  %v5941_v33 = vld [vmem:[%s7397_s1 + $0xa0] sm:$0xff]   ;;  %v5975_v14 = vld [vmem:[%s7397_s1 + $0x2e8] sm:$0xff]  }
 0x129   : > { %5512 = vmatpush3.bf16.msra.mxu1 %v5925_v15  ;;  %5491 = vmatprep.subr.bf16.mxu0 %v5926_v16  ;;  %v5976_v15 = vld [vmem:[%s7397_s1 + $0x228] sm:$0xff]  }
 0x12a   : > { %5513 = vmatprep.subr.bf16.mxu1 %v5927_v17  ;;  %3826 = vmatprep.mubr.bf16.mxu0 %v6797_v23  ;;  %v5936_v23 = vld [vmem:[%s7397_s1 + $0x18] sm:$0xff]   ;;  %v5977_v16 = vld [vmem:[%s7397_s1 + $0x2a8] sm:$0xff]   ;;  %v5978_v17 = vld [vmem:[%s7397_s1 + $0x270] sm:$0xff]  }
 0x12b   : > { %3866 = vmatprep.mubr.bf16.mxu1 %v6810_v27  ;;  %v5937_v27 = vld [vmem:[%s7397_s1 + $0x98] sm:$0xff]  }
 0x12c   : > { %5492 = vmatpush3.bf16.msra.mxu0 %v5928_v18  ;;  %v5979_v18 = vld [vmem:[%s7397_s1 + $0x2f0] sm:$0xff]  }
 0x12d   : > { %5514 = vmatpush3.bf16.msra.mxu1 %v5929_v20  ;;  %5493 = vmatprep.subr.bf16.mxu0 %v5930_v21 }
 0x12e   : > { %5515 = vmatprep.subr.bf16.mxu1 %v5931_v22  ;;  %v5980_v22 = vld [vmem:[%s7397_s1 + $0x230] sm:$0xff]  }
 0x130   : > { %5494 = vmatpush3.bf16.msra.mxu0 %v5932_v25  ;;  %v5981_v25 = vld [vmem:[%s7397_s1 + $0x2b0] sm:$0xff]  }
 0x131   : > { %5516 = vmatpush3.bf16.msra.mxu1 %v5933_v26  ;;  %5495 = vmatprep.subr.bf16.mxu0 %v5934_v28  ;;  %v5022_v26 = vld [vmem:[%s6156_s27 + $0x18] sm:$0xff] }
 0x132   : > { %5517 = vmatprep.subr.bf16.mxu1 %v5935_v29 }
 0x134   : > { %5496 = vmatpush3.bf16.msra.mxu0 %v5936_v23  ;;  %v5982_v23 = vld [vmem:[%s7397_s1 + $0x278] sm:$0xff]  }
 0x135   : > { %5518 = vmatpush3.bf16.msra.mxu1 %v5937_v27  ;;  %5497 = vmatprep.subr.bf16.mxu0 %v5938_v30  ;;  %v5983_v27 = vld [vmem:[%s7397_s1 + $0x2f8] sm:$0xff]   ;;  %v7242_v30 = vrot.slane %v5022_v26, %v6171_v41 }
 0x136   : > { %5519 = vmatprep.subr.bf16.mxu1 %v5939_v31  ;;  %v3941_v31 = vcombine.high %v5022_v26, %v5022_v26 }
 0x138   : > { %5498 = vmatpush3.bf16.msra.mxu0 %v5940_v32 }
 0x139   : > { %5520 = vmatpush3.bf16.msra.mxu1 %v5941_v33  ;;  %5499 = vmatprep.subr.bf16.mxu0 %v5942_v34 }
 0x13a   : > { %5521 = vmatprep.subr.bf16.mxu1 %v5943_v35  ;;  %v5197_v38 = vpop.f32.mrb[8].mxu0 }
 0x13b   : > { %v5219_v39 = vpop.f32.mrb[8].mxu1  ;;  %v5198_v45 = vpop.f32.mrb[9].mxu0 }
 0x13c   : > { %v5220_v43 = vpop.f32.mrb[9].mxu1  ;;  %v5199_v44 = vadd.f32 %v5198_v45, %v5197_v38  ;;  %v5200_v47 = vpop.f32.mrb[10].mxu0  ;;  %5500 = vmatpush3.bf16.msra.mxu0 %v5944_v36  ;;  %v7247_v36 = vld [vmem:[%s7398_s2] ss:$0 sm:$0xff]  ;;  %v7252_v38 = vrot.slane %v3941_v31, %v6171_v41 }
 0x13d   : > { %v5221_v46 = vadd.f32 %v5220_v43, %v5219_v39  ;;  %v5222_v48 = vpop.f32.mrb[10].mxu1  ;;  %5522 = vmatpush3.bf16.msra.mxu1 %v5945_v37  ;;  %v5201_v49 = vpop.f32.mrb[11].mxu0  ;;  %5501 = vmatprep.subr.bf16.mxu0 %v5946_v58  ;;  %v5987_v43 = vld [vmem:[%s7397_s1 + $0x340] sm:$0xff]  }
 0x13e   : > { %v5223_v50 = vpop.f32.mrb[11].mxu1  ;;  %5523 = vmatprep.subr.bf16.mxu1 %v5947_v62  ;;  %v3956_v62 = vcombine.high %v7242_v30, %v7242_v30  ;;  %v3957_v45 = vcombine.high %v7252_v38, %v7252_v38  ;;  %v5989_v48 = vld [vmem:[%s7397_s1 + $0x300] sm:$0xff]  }
 0x13f   : > { %v1255_v53 = vadd.f32 %v5221_v46, %v5199_v44  ;;  %v5988_v46 = vld [vmem:[%s7397_s1 + $0x3c0] sm:$0xff]  }
 0x140   : > { %5502 = vmatpush3.bf16.msra.mxu0 %v5948_v40  ;;  %v5984_v40 = vld [vmem:[%s7397_s1 + $0x238] sm:$0xff]   ;;  %v4328_v44 = vshll.u32 %v3956_v62, 16  ;;  %v5990_v49 = vld [vmem:[%s7397_s1 + $0x380] sm:$0xff]   ;;  %v4326_v50 = vshrl.u32 %v3956_v62, 16 }
 0x141   : > { %v7145_v57 = vadd.f32 %v1255_v53, %v7042_v11  ;;  %5524 = vmatpush3.bf16.msra.mxu1 %v5949_v42  ;;  %5503 = vmatprep.subr.bf16.mxu0 %v5950_v51  ;;  %v5972_v11 = vld [vmem:[%s7397_s1 + $0x220] sm:$0xff]   ;;  %v5985_v42 = vld [vmem:[%s7397_s1 + $0x2b8] sm:$0xff]  }
 0x142   : > { %5525 = vmatprep.subr.bf16.mxu1 %v5951_v52  ;;  %v4330_v51 = vrot.slane %v4328_v44, 1  ;;  %v1661_v53 = vld [vmem:[%s7267_s28] sm:$0x3]  ;;  %v6018_v44 = vld [vmem:[%s7397_s1 + $0x3b8] sm:$0xff]  }
 0x144   : > { %5504 = vmatpush3.bf16.msra.mxu0 %v5952_v55  ;;  %v4340_v55 = vshrl.u32 %v3957_v45, 16 }
 0x145   : > { %5526 = vmatpush3.bf16.msra.mxu1 %v5953_v56  ;;  %5533 = vmatprep.subr.bf16.mxu0 %v5954_v60  ;;  %v4342_v56 = vshll.u32 %v3957_v45, 16  ;;  %v5991_v60 = vld [vmem:[%s7397_s1 + $0x348] sm:$0xff]  }
 0x146   : > { %5555 = vmatprep.subr.bf16.mxu1 %v5955_v61  ;;  %v5992_v61 = vld [vmem:[%s7397_s1 + $0x3c8] sm:$0xff]  }
 0x147   : > { %3827 = vmatmul.mubr.bf16.vlgmr.msra.gmra.mrb[36].mxu0 %v6787_v19  ;;  %v5964_v19 = vld [vmem:[%s7397_s1 + $0x210] sm:$0xff]  }
 0x148   : > { %3867 = vmatmul.mubr.bf16.vlgmr.msra.gmra.mrb[36].mxu1 %v6800_v24  ;;  %5534 = vmatpush3.bf16.msra.mxu0 %v5956_v63  ;;  %v5965_v24 = vld [vmem:[%s7397_s1 + $0x290] sm:$0xff]   ;;  %v4344_v63 = vrot.slane %v4342_v56, 1 }
 0x149   : > { %5556 = vmatpush3.bf16.msra.mxu1 %v5957_v0  ;;  %5535 = vmatprep.subr.bf16.mxu0 %v5958_v1  ;;  %v5993_v1 = vld [vmem:[%s7397_s1 + $0x308] sm:$0xff]  }
 0x14a   : > { %5557 = vmatprep.subr.bf16.mxu1 %v5959_v2  ;;  %4186 = vmatprep.mubr.bf16.mxu0 %v3956_v62  ;;  %v4331_v2 = vor.u32 %v4330_v51, %v4326_v50  ;;  %v6016_v62 = vld [vmem:[%s7397_s1 + $0x3f8] sm:$0xff]  }
 0x14b   : > { %4226 = vmatprep.mubr.bf16.mxu1 %v3957_v45  ;;  %v4333_v45 = vshrl.u32 %v7252_v38, 16 }
 0x14c   : > { %5536 = vmatpush3.bf16.msra.mxu0 %v5960_v3  ;;  %v5994_v3 = vld [vmem:[%s7397_s1 + $0x388] sm:$0xff]  }
 0x14d   : > { %5558 = vmatpush3.bf16.msra.mxu1 %v5961_v4  ;;  %5537 = vmatprep.subr.bf16.mxu0 %v5962_v54  ;;  %v4345_v4 = vor.u32 %v4344_v63, %v4340_v55 }
 0x14e   : > { %5559 = vmatprep.subr.bf16.mxu1 %v5963_v59  ;;  %v5995_v59 = vld [vmem:[%s7397_s1 + $0x350] sm:$0xff]  }
 0x150   : > { %5538 = vmatpush3.bf16.msra.mxu0 %v5964_v19  ;;  %v5996_v19 = vld [vmem:[%s7397_s1 + $0x3d0] sm:$0xff]  }
 0x151   : > { %5560 = vmatpush3.bf16.msra.mxu1 %v5965_v24  ;;  %5539 = vmatprep.subr.bf16.mxu0 %v5966_v5  ;;  %v5997_v24 = vld [vmem:[%s7397_s1 + $0x310] sm:$0xff]  }
 0x152   : > { %5561 = vmatprep.subr.bf16.mxu1 %v5967_v6  ;;  %v5998_v5 = vld [vmem:[%s7397_s1 + $0x390] sm:$0xff]   ;;  %v5999_v6 = vld [vmem:[%s7397_s1 + $0x358] sm:$0xff]  }
 0x154   : > { %5540 = vmatpush3.bf16.msra.mxu0 %v5968_v7  ;;  %v6000_v7 = vld [vmem:[%s7397_s1 + $0x3d8] sm:$0xff]  }
 0x155   : > { %5562 = vmatpush3.bf16.msra.mxu1 %v5969_v8  ;;  %5541 = vmatprep.subr.bf16.mxu0 %v5970_v9  ;;  %v6001_v8 = vld [vmem:[%s7397_s1 + $0x318] sm:$0xff]  }
 0x156   : > { %5563 = vmatprep.subr.bf16.mxu1 %v5971_v10  ;;  %v6002_v9 = vld [vmem:[%s7397_s1 + $0x398] sm:$0xff]   ;;  %v6003_v10 = vld [vmem:[%s7397_s1 + $0x360] sm:$0xff]  }
 0x158   : > { %5542 = vmatpush3.bf16.msra.mxu0 %v5972_v11  ;;  %v6004_v11 = vld [vmem:[%s7397_s1 + $0x3e0] sm:$0xff]  }
 0x159   : > { %5564 = vmatpush3.bf16.msra.mxu1 %v5973_v12  ;;  %5543 = vmatprep.subr.bf16.mxu0 %v5974_v13  ;;  %v6005_v12 = vld [vmem:[%s7397_s1 + $0x320] sm:$0xff]  }
 0x15a   : > { %5565 = vmatprep.subr.bf16.mxu1 %v5975_v14  ;;  %v5241_v20 = vpop.f32.mrb[12].mxu0  ;;  %v6006_v13 = vld [vmem:[%s7397_s1 + $0x3a0] sm:$0xff]   ;;  %v6007_v14 = vld [vmem:[%s7397_s1 + $0x368] sm:$0xff]  }
 0x15b   : > { %v5263_v21 = vpop.f32.mrb[12].mxu1  ;;  %v5242_v28 = vpop.f32.mrb[13].mxu0 }
 0x15c   : > { %v5264_v29 = vpop.f32.mrb[13].mxu1  ;;  %v5243_v32 = vadd.f32 %v5242_v28, %v5241_v20  ;;  %v5244_v34 = vpop.f32.mrb[14].mxu0  ;;  %5544 = vmatpush3.bf16.msra.mxu0 %v5976_v15  ;;  %v6008_v15 = vld [vmem:[%s7397_s1 + $0x3e8] sm:$0xff]   ;;  %v6012_v20 = vld [vmem:[%s7397_s1 + $0x3f0] sm:$0xff]   ;;  %v4321_v28 = vshll.u32 %v7242_v30, 16 }
 0x15d   : > { %v5265_v33 = vadd.f32 %v5264_v29, %v5263_v21  ;;  %v5266_v35 = vpop.f32.mrb[14].mxu1  ;;  %5566 = vmatpush3.bf16.msra.mxu1 %v5977_v16  ;;  %v5245_v37 = vpop.f32.mrb[15].mxu0  ;;  %5545 = vmatprep.subr.bf16.mxu0 %v5978_v17  ;;  %v6009_v16 = vld [vmem:[%s7397_s1 + $0x328] sm:$0xff]   ;;  %v4335_v29 = vshll.u32 %v7252_v38, 16  ;;  %v6014_v34 = vld [vmem:[%s7397_s1 + $0x3b0] sm:$0xff]  }
 0x15e   : > { %v5267_v58 = vpop.f32.mrb[15].mxu1  ;;  %5567 = vmatprep.subr.bf16.mxu1 %v5979_v18  ;;  %v6010_v17 = vld [vmem:[%s7397_s1 + $0x3a8] sm:$0xff]   ;;  %v6011_v18 = vld [vmem:[%s7397_s1 + $0x370] sm:$0xff]  }
 0x15f   : > { %v1643_v39 = vadd.f32 %v5265_v33, %v5243_v32  ;;  %v6013_v33 = vld [vmem:[%s7397_s1 + $0x330] sm:$0xff]   ;;  %v6015_v58 = vld [vmem:[%s7397_s1 + $0x378] sm:$0xff]  }
 0x160   : > { %5546 = vmatpush3.bf16.msra.mxu0 %v5980_v22 }
 0x161   : > { %v1648_v41 = vadd.f32 %v1643_v39, %v7145_v57  ;;  %5568 = vmatpush3.bf16.msra.mxu1 %v5981_v25  ;;  %5547 = vmatprep.subr.bf16.mxu0 %v5982_v23 }
 0x162   : > { %5569 = vmatprep.subr.bf16.mxu1 %v5983_v27 }
 0x163   : > { %v1655_v47 = vadd.f32 %v7247_v36, %v1648_v41  ;;  %v4337_v41 = vrot.slane %v4335_v29, 1 }
 0x164   : > { %5548 = vmatpush3.bf16.msra.mxu0 %v5984_v40  ;;  %v4319_v40 = vshrl.u32 %v7242_v30, 16 }
 0x165   : > { %v1656_v57 = vmax.f32 %v1655_v47, 0.0  ;;  %5570 = vmatpush3.bf16.msra.mxu1 %v5985_v42  ;;  %5577 = vmatprep.subr.bf16.mxu0 %v5987_v43  ;;  %v4323_v42 = vrot.slane %v4321_v28, 1  ;;  %v6017_v43 = vld [vmem:[%s7397_s1 + $0x338] sm:$0xff]   ;;  %v4338_v47 = vor.u32 %v4337_v41, %v4333_v45 }
 0x166   : > { %5599 = vmatprep.subr.bf16.mxu1 %v5988_v46 }
 0x167   : > { %v1657_v0 = vpack.c.bf16 %v1656_v57, %v1656_v57  ;;  %4187 = vmatmul.mubr.bf16.vlgmr.msra.gmra.mrb[40].mxu0 %v7242_v30  ;;  %v4324_v46 = vor.u32 %v4323_v42, %v4319_v40 }
 0x168   : > { %4227 = vmatmul.mubr.bf16.vlgmr.msra.gmra.mrb[40].mxu1 %v7252_v38  ;;  %5578 = vmatpush3.bf16.msra.mxu0 %v5989_v48 }
 0x169   : > { %v1662_v54 = vsel %vm7285_vm2, %v1657_v0, %v1661_v53  ;;  %5600 = vmatpush3.bf16.msra.mxu1 %v5990_v49  ;;  %5579 = vmatprep.subr.bf16.mxu0 %v5991_v60 }
 0x16a   : > { %1663 = vst [vmem:[%s7267_s28] sm:$0x3] %v1662_v54  ;;  %5601 = vmatprep.subr.bf16.mxu1 %v5992_v61  ;;  %4574 = vmatprep.mubr.bf16.mxu0 %v4331_v2 }
 0x16b   : > { %4614 = vmatprep.mubr.bf16.mxu1 %v4345_v4 }
 0x16c   : > { %5580 = vmatpush3.bf16.msra.mxu0 %v5993_v1 }
 0x16d   : > { %5602 = vmatpush3.bf16.msra.mxu1 %v5994_v3  ;;  %5581 = vmatprep.subr.bf16.mxu0 %v5995_v59 }
 0x16e   : > { %5603 = vmatprep.subr.bf16.mxu1 %v5996_v19 }
 0x170   : > { %5582 = vmatpush3.bf16.msra.mxu0 %v5997_v24 }
 0x171   : > { %5604 = vmatpush3.bf16.msra.mxu1 %v5998_v5  ;;  %5583 = vmatprep.subr.bf16.mxu0 %v5999_v6 }
 0x172   : > { %5605 = vmatprep.subr.bf16.mxu1 %v6000_v7 }
 0x174   : > { %5584 = vmatpush3.bf16.msra.mxu0 %v6001_v8 }
 0x175   : > { %5606 = vmatpush3.bf16.msra.mxu1 %v6002_v9  ;;  %5585 = vmatprep.subr.bf16.mxu0 %v6003_v10 }
 0x176   : > { %5607 = vmatprep.subr.bf16.mxu1 %v6004_v11 }
 0x178   : > { %5586 = vmatpush3.bf16.msra.mxu0 %v6005_v12 }
 0x179   : > { %5608 = vmatpush3.bf16.msra.mxu1 %v6006_v13  ;;  %5587 = vmatprep.subr.bf16.mxu0 %v6007_v14 }
 0x17a   : > { %5609 = vmatprep.subr.bf16.mxu1 %v6008_v15  ;;  %v5285_v21 = vpop.f32.mrb[16].mxu0 }
 0x17b   : > { %v5307_v22 = vpop.f32.mrb[16].mxu1  ;;  %v5286_v25 = vpop.f32.mrb[17].mxu0 }
 0x17c   : > { %v5308_v26 = vpop.f32.mrb[17].mxu1  ;;  %v5287_v23 = vadd.f32 %v5286_v25, %v5285_v21  ;;  %v5288_v31 = vpop.f32.mrb[18].mxu0  ;;  %5588 = vmatpush3.bf16.msra.mxu0 %v6009_v16 }
 0x17d   : > { %v5309_v27 = vadd.f32 %v5308_v26, %v5307_v22  ;;  %v5310_v32 = vpop.f32.mrb[18].mxu1  ;;  %5610 = vmatpush3.bf16.msra.mxu1 %v6010_v17  ;;  %v5289_v35 = vpop.f32.mrb[19].mxu0  ;;  %5589 = vmatprep.subr.bf16.mxu0 %v6011_v18  ;;  %v4955_v22 = vld [vmem:[%s7267_s28 + $0x2] sm:$0x3] }
 0x17e   : > { %v5311_v37 = vpop.f32.mrb[19].mxu1  ;;  %5611 = vmatprep.subr.bf16.mxu1 %v6012_v20 }
 0x17f   : > { %v2110_v39 = vadd.f32 %v5309_v27, %v5287_v23 }
 0x180   : > { %5590 = vmatpush3.bf16.msra.mxu0 %v6013_v33 }
 0x181   : > { %5612 = vmatpush3.bf16.msra.mxu1 %v6014_v34  ;;  %5591 = vmatprep.subr.bf16.mxu0 %v6015_v58 }
 0x182   : > { %5613 = vmatprep.subr.bf16.mxu1 %v6016_v62 }
 0x184   : > { %5592 = vmatpush3.bf16.msra.mxu0 %v6017_v43 }
 0x185   : > { %5614 = vmatpush3.bf16.msra.mxu1 %v6018_v44 }
 0x187   : > { %4575 = vmatmul.mubr.bf16.vlgmr.msra.gmra.mrb[44].mxu0 %v4324_v46 }
 0x188   : > { %4615 = vmatmul.mubr.bf16.vlgmr.msra.gmra.mrb[44].mxu1 %v4338_v47 }
 0x19a   : > { %v5329_v30 = vpop.f32.mrb[20].mxu0 }
 0x19b   : > { %v5351_v38 = vpop.f32.mrb[20].mxu1  ;;  %v5330_v48 = vpop.f32.mrb[21].mxu0 }
 0x19c   : > { %v5352_v49 = vpop.f32.mrb[21].mxu1  ;;  %v5331_v50 = vadd.f32 %v5330_v48, %v5329_v30  ;;  %v5332_v53 = vpop.f32.mrb[22].mxu0 }
 0x19d   : > { %v5353_v51 = vadd.f32 %v5352_v49, %v5351_v38  ;;  %v5354_v55 = vpop.f32.mrb[22].mxu1  ;;  %v5333_v56 = vpop.f32.mrb[23].mxu0 }
 0x19e   : > { %v5355_v57 = vpop.f32.mrb[23].mxu1  ;;  %v2346_v60 = vadd.f32 %v5331_v50, %v2110_v39 }
 0x1a0   : > { %v2386_v61 = vadd.f32 %v5353_v51, %v2346_v60 }
 0x1ba   : > { %v5373_v63 = vpop.f32.mrb[24].mxu0 }
 0x1bb   : > { %v5395_v0 = vpop.f32.mrb[24].mxu1  ;;  %v5374_v1 = vpop.f32.mrb[25].mxu0 }
 0x1bc   : > { %v5396_v2 = vpop.f32.mrb[25].mxu1  ;;  %v5375_v3 = vadd.f32 %v5374_v1, %v5373_v63  ;;  %v5376_v54 = vpop.f32.mrb[26].mxu0 }
 0x1bd   : > { %v5397_v4 = vadd.f32 %v5396_v2, %v5395_v0  ;;  %v5398_v59 = vpop.f32.mrb[26].mxu1  ;;  %v5377_v19 = vpop.f32.mrb[27].mxu0 }
 0x1be   : > { %v5399_v24 = vpop.f32.mrb[27].mxu1 }
 0x1bf   : > { %v2746_v5 = vadd.f32 %v5397_v4, %v5375_v3 }
 0x1c1   : > { %v2751_v6 = vadd.f32 %v2746_v5, %v2386_v61 }
 0x1da   : > { %v5417_v7 = vpop.f32.mrb[28].mxu0 }
 0x1db   : > { %v5439_v8 = vpop.f32.mrb[28].mxu1  ;;  %v5418_v9 = vpop.f32.mrb[29].mxu0 }
 0x1dc   : > { %v5440_v10 = vpop.f32.mrb[29].mxu1  ;;  %v5419_v11 = vadd.f32 %v5418_v9, %v5417_v7  ;;  %v5420_v13 = vpop.f32.mrb[30].mxu0 }
 0x1dd   : > { %v5441_v12 = vadd.f32 %v5440_v10, %v5439_v8  ;;  %v5442_v14 = vpop.f32.mrb[30].mxu1  ;;  %v5421_v15 = vpop.f32.mrb[31].mxu0 }
 0x1de   : > { %v5443_v16 = vpop.f32.mrb[31].mxu1 }
 0x1df   : > { %v3134_v17 = vadd.f32 %v5441_v12, %v5419_v11  ;;  %v5088_v11 = vld [vmem:[%s7267_s28 + $0x4] sm:$0x3] }
 0x1e1   : > { %v3139_v18 = vadd.f32 %v3134_v17, %v2751_v6 }
 0x1e3   : > { %v3140_v20 = vadd.f32 %v7247_v36, %v3139_v18 }
 0x1e5   : > { %v3141_v21 = vmax.f32 %v3140_v20, 0.0 }
 0x1e7   : > { %v3142_v25 = vpack.c.bf16 %v3141_v21, %v3141_v21 }
 0x1e9   : > { %v3145_v26 = vsel %vm7285_vm2, %v3142_v25, %v4955_v22 }
 0x1ea   : > { %4956 = vst [vmem:[%s7267_s28 + $0x2] sm:$0x3] %v3145_v26 }
 0x1fa   : > { %v5461_v28 = vpop.f32.mrb[32].mxu0 }
 0x1fb   : > { %v5483_v29 = vpop.f32.mrb[32].mxu1  ;;  %v5462_v23 = vpop.f32.mrb[33].mxu0 }
 0x1fc   : > { %v5484_v27 = vpop.f32.mrb[33].mxu1  ;;  %v5463_v31 = vadd.f32 %v5462_v23, %v5461_v28  ;;  %v5464_v33 = vpop.f32.mrb[34].mxu0 }
 0x1fd   : > { %v5485_v32 = vadd.f32 %v5484_v27, %v5483_v29  ;;  %v5486_v34 = vpop.f32.mrb[34].mxu1  ;;  %v5465_v35 = vpop.f32.mrb[35].mxu0 }
 0x1fe   : > { %v5487_v37 = vpop.f32.mrb[35].mxu1 }
 0x1ff   : > { %v3593_v58 = vadd.f32 %v5485_v32, %v5463_v31 }
 0x21a   : > { %v5505_v62 = vpop.f32.mrb[36].mxu0 }
 0x21b   : > { %v5527_v39 = vpop.f32.mrb[36].mxu1  ;;  %v5506_v40 = vpop.f32.mrb[37].mxu0 }
 0x21c   : > { %v5528_v42 = vpop.f32.mrb[37].mxu1  ;;  %v5507_v45 = vadd.f32 %v5506_v40, %v5505_v62  ;;  %v5508_v43 = vpop.f32.mrb[38].mxu0 }
 0x21d   : > { %v5529_v41 = vadd.f32 %v5528_v42, %v5527_v39  ;;  %v5530_v44 = vpop.f32.mrb[38].mxu1  ;;  %v5509_v46 = vpop.f32.mrb[39].mxu0 }
 0x21e   : > { %v5531_v47 = vpop.f32.mrb[39].mxu1  ;;  %v3829_v30 = vadd.f32 %v5507_v45, %v3593_v58 }
 0x220   : > { %v3869_v38 = vadd.f32 %v5529_v41, %v3829_v30 }
 0x23a   : > { %v5549_v48 = vpop.f32.mrb[40].mxu0 }
 0x23b   : > { %v5571_v49 = vpop.f32.mrb[40].mxu1  ;;  %v5550_v50 = vpop.f32.mrb[41].mxu0 }
 0x23c   : > { %v5572_v51 = vpop.f32.mrb[41].mxu1  ;;  %v5551_v53 = vadd.f32 %v5550_v50, %v5549_v48  ;;  %v5552_v56 = vpop.f32.mrb[42].mxu0 }
 0x23d   : > { %v5573_v55 = vadd.f32 %v5572_v51, %v5571_v49  ;;  %v5574_v57 = vpop.f32.mrb[42].mxu1  ;;  %v5553_v60 = vpop.f32.mrb[43].mxu0 }
 0x23e   : > { %v5575_v61 = vpop.f32.mrb[43].mxu1 }
 0x23f   : > { %v4229_v63 = vadd.f32 %v5573_v55, %v5551_v53 }
 0x241   : > { %v4234_v0 = vadd.f32 %v4229_v63, %v3869_v38 }
 0x25a   : > { %v5593_v1 = vpop.f32.mrb[44].mxu0 }
 0x25b   : > { %v5615_v2 = vpop.f32.mrb[44].mxu1  ;;  %v5594_v3 = vpop.f32.mrb[45].mxu0 }
 0x25c   : > { %v5616_v4 = vpop.f32.mrb[45].mxu1  ;;  %v5595_v54 = vadd.f32 %v5594_v3, %v5593_v1  ;;  %v5596_v19 = vpop.f32.mrb[46].mxu0 }
 0x25d   : > { %v5617_v59 = vadd.f32 %v5616_v4, %v5615_v2  ;;  %v5618_v24 = vpop.f32.mrb[46].mxu1  ;;  %v5597_v5 = vpop.f32.mrb[47].mxu0 }
 0x25e   : > { %v5619_v6 = vpop.f32.mrb[47].mxu1 }
 0x25f   : > { %v4617_v7 = vadd.f32 %v5617_v59, %v5595_v54 }
 0x261   : > { %v4622_v8 = vadd.f32 %v4617_v7, %v4234_v0 }
 0x263   : > { %v4623_v9 = vadd.f32 %v7247_v36, %v4622_v8 }
 0x265   : > { %v4624_v10 = vmax.f32 %v4623_v9, 0.0 }
 0x267   : > { %v4625_v12 = vpack.c.bf16 %v4624_v10, %v4624_v10 }
 0x269   : > { %v4628_v13 = vsel %vm7285_vm2, %v4625_v12, %v5088_v11 }
 0x26a   : > { %5089 = vst [vmem:[%s7267_s28 + $0x4] sm:$0x3] %v4628_v13 }
 0x26b PF: > { %s13_s12 = sadd.s32 1, %s6025_s12  }
 0x26c   : > { %p10_p4 = scmp.ge.s32.totalorder %s13_s12, 4  }
 0x26e   :  { %12 = sbr.rel (!%p10_p4) target bundleno = 1 (0x1), region = 67 }

</bundles_post_ra>
